<compile_context>
chip_gen: v6e
topology: v6e:2x2x1
jax: 0.10.0
libtpu: 0.0.40
codegen_flags: <defaults>
</compile_context>

<pallas_src>
import numpy as np

import jax
import jax.numpy as jnp
from jax.experimental import pallas as pl
from jax.experimental.pallas import tpu as pltpu


# ---------------------------------------------------------------------------
# Fused forward kernel (one image per grid step)
# ---------------------------------------------------------------------------
def _convnet_kernel(x_ref,                       # [1, 28, 28] input image
                    b1w_ref, b1b_ref,            # conv1 banded weights/bias
                    e1e_ref, e1o_ref,            # pool1 row selectors
                    s1e_ref, s1o_ref,            # pool1 lane selectors
                    b2w_ref, b2b_ref,            # conv2 banded weights/bias
                    e2e_ref, e2o_ref,            # pool2 row selectors
                    s2e_ref, s2o_ref,            # pool2 lane selectors
                    fcw_ref, fcb_ref,            # fc weights (padded to 512)
                    o_ref,                       # [1, 1, 512] output
                    p1_ref, p2_ref):             # VMEM scratch
    f32 = jnp.float32

    # ---- conv1 (1->20, k=5) + bias + ReLU:  a1[oh, ow*20+oc] --------------
    a1 = jnp.dot(x_ref[0, 0:24, :], b1w_ref[0], preferred_element_type=f32)
    for dh in range(1, 5):
        a1 = a1 + jnp.dot(x_ref[0, dh:dh + 24, :], b1w_ref[dh],
                          preferred_element_type=f32)
    a1 = jnp.maximum(a1 + b1b_ref[...], 0.0)                     # [24, 480]

    # ---- max_pool2d(2): rows via left selection matmul, lanes via right ---
    rmax = jnp.maximum(jnp.dot(e1e_ref[...], a1, preferred_element_type=f32),
                       jnp.dot(e1o_ref[...], a1, preferred_element_type=f32))
    p1_ref[...] = jnp.maximum(
        jnp.dot(rmax, s1e_ref[...], preferred_element_type=f32),
        jnp.dot(rmax, s1o_ref[...], preferred_element_type=f32))  # [12, 240]

    # ---- conv2 (20->50, k=5) + bias + ReLU:  a2[oh, ow*50+oc] -------------
    a2 = jnp.dot(p1_ref[0:8, :], b2w_ref[0], preferred_element_type=f32)
    for dh in range(1, 5):
        a2 = a2 + jnp.dot(p1_ref[dh:dh + 8, :], b2w_ref[dh],
                          preferred_element_type=f32)
    a2 = jnp.maximum(a2 + b2b_ref[...], 0.0)                     # [8, 400]

    # ---- max_pool2d(2) -----------------------------------------------------
    rmax2 = jnp.maximum(jnp.dot(e2e_ref[...], a2, preferred_element_type=f32),
                        jnp.dot(e2o_ref[...], a2, preferred_element_type=f32))
    p2_ref[...] = jnp.maximum(
        jnp.dot(rmax2, s2e_ref[...], preferred_element_type=f32),
        jnp.dot(rmax2, s2o_ref[...], preferred_element_type=f32))  # [4, 200]

    # ---- Linear(800 -> 500, padded to 512) + bias + ReLU -------------------
    y = jnp.dot(p2_ref[0:1, :], fcw_ref[0], preferred_element_type=f32)
    for ph in range(1, 4):
        y = y + jnp.dot(p2_ref[ph:ph + 1, :], fcw_ref[ph],
                        preferred_element_type=f32)
    o_ref[0] = jnp.maximum(y + fcb_ref[...], 0.0)                # [1, 512]


# ---------------------------------------------------------------------------
# One-time weight repacking (torch layout -> kernel operands)
# ---------------------------------------------------------------------------
def pack_params(params):
    w1 = np.asarray(params["w1"], np.float32)   # [20, 1, 5, 5]  (OC, IC, kh, kw)
    b1 = np.asarray(params["b1"], np.float32)   # [20]
    w2 = np.asarray(params["w2"], np.float32)   # [50, 20, 5, 5]
    b2 = np.asarray(params["b2"], np.float32)   # [50]
    wl = np.asarray(params["wl"], np.float32)   # [500, 800]     (out, in)
    bl = np.asarray(params["bl"], np.float32)   # [500]

    # conv1 banded weights: B1[dh, w_in, ow*20+oc] = w1[oc, 0, dh, w_in-ow]
    B1 = np.zeros((5, 28, 24, 20), np.float32)
    for dh in range(5):
        for dw in range(5):
            B1[dh, dw + np.arange(24), np.arange(24), :] = w1[:, 0, dh, dw][None, :]
    B1 = B1.reshape(5, 28, 24 * 20)
    b1t = np.tile(b1, 24)[None, :]                               # [1, 480]

    # conv2 banded weights: B2[dh, w_in*20+c, ow*50+oc] = w2[oc, c, dh, w_in-ow]
    B2 = np.zeros((5, 12, 20, 8, 50), np.float32)
    for dh in range(5):
        for dw in range(5):
            for ow in range(8):
                B2[dh, dw + ow, :, ow, :] = w2[:, :, dh, dw].T   # [c, oc]
    B2 = B2.reshape(5, 12 * 20, 8 * 50)
    b2t = np.tile(b2, 8)[None, :]                                # [1, 400]

    # exact 0/1 selection matrices for the 2x2 max-pools
    def row_sel(n_out, parity):                                  # [n_out, 2*n_out]
        m = np.zeros((n_out, 2 * n_out), np.float32)
        m[np.arange(n_out), 2 * np.arange(n_out) + parity] = 1.0
        return m

    def lane_sel(n_pairs, c, parity):                            # [2*n_pairs*c, n_pairs*c]
        m = np.zeros((2 * n_pairs * c, n_pairs * c), np.float32)
        src = (2 * np.repeat(np.arange(n_pairs), c) + parity) * c \
            + np.tile(np.arange(c), n_pairs)
        m[src, np.arange(n_pairs * c)] = 1.0
        return m

    E1e, E1o = row_sel(12, 0), row_sel(12, 1)                    # [12, 24]
    S1e, S1o = lane_sel(12, 20, 0), lane_sel(12, 20, 1)          # [480, 240]
    E2e, E2o = row_sel(4, 0), row_sel(4, 1)                      # [4, 8]
    S2e, S2o = lane_sel(4, 50, 0), lane_sel(4, 50, 1)            # [400, 200]

    # fc: Wfc[ph, pw*50+oc, n] = wl[n, oc*16 + ph*4 + pw]; pad N 500 -> 512
    wl4 = wl.reshape(500, 50, 4, 4)                              # [n, oc, ph, pw]
    Wfc = np.zeros((4, 4, 50, 512), np.float32)
    Wfc[:, :, :, :500] = wl4.transpose(2, 3, 1, 0)               # [ph, pw, oc, n]
    Wfc = Wfc.reshape(4, 200, 512)
    blp = np.zeros((1, 512), np.float32)
    blp[0, :500] = bl

    packed = dict(B1=B1, b1t=b1t, E1e=E1e, E1o=E1o, S1e=S1e, S1o=S1o,
                  B2=B2, b2t=b2t, E2e=E2e, E2o=E2o, S2e=S2e, S2o=S2o,
                  Wfc=Wfc, blp=blp)
    return {k: jnp.asarray(v) for k, v in packed.items()}


# ---------------------------------------------------------------------------
# Forward pass
# ---------------------------------------------------------------------------
@jax.jit
def convnet_forward(x_nchw, packed):
    # x_nchw: [B, 1, 28, 28] (PyTorch layout)
    B = x_nchw.shape[0]
    assert x_nchw.shape[1:] == (1, 28, 28)
    x = x_nchw.reshape(B, 28, 28)                                # drop C=1

    resident2 = lambda b: (0, 0)          # weights: fetched once, VMEM-resident
    resident3 = lambda b: (0, 0, 0)

    out = pl.pallas_call(
        _convnet_kernel,
        out_shape=jax.ShapeDtypeStruct((B, 1, 512), jnp.float32),
        grid_spec=pltpu.PrefetchScalarGridSpec(
            num_scalar_prefetch=0,
            grid=(B,),
            in_specs=[
                pl.BlockSpec((1, 28, 28), lambda b: (b, 0, 0)),   # image
                pl.BlockSpec((5, 28, 480), resident3),            # B1
                pl.BlockSpec((1, 480), resident2),                # b1t
                pl.BlockSpec((12, 24), resident2),                # E1e
                pl.BlockSpec((12, 24), resident2),                # E1o
                pl.BlockSpec((480, 240), resident2),              # S1e
                pl.BlockSpec((480, 240), resident2),              # S1o
                pl.BlockSpec((5, 240, 400), resident3),           # B2
                pl.BlockSpec((1, 400), resident2),                # b2t
                pl.BlockSpec((4, 8), resident2),                  # E2e
                pl.BlockSpec((4, 8), resident2),                  # E2o
                pl.BlockSpec((400, 200), resident2),              # S2e
                pl.BlockSpec((400, 200), resident2),              # S2o
                pl.BlockSpec((4, 200, 512), resident3),           # Wfc
                pl.BlockSpec((1, 512), resident2),                # blp
            ],
            out_specs=pl.BlockSpec((1, 1, 512), lambda b: (b, 0, 0)),
            scratch_shapes=[pltpu.VMEM((12, 240), jnp.float32),   # pooled1
                            pltpu.VMEM((4, 200), jnp.float32)],   # pooled2
        ),
        compiler_params=pltpu.CompilerParams(
            dimension_semantics=("parallel",),       # megacore-shard the batch
            vmem_limit_bytes=32 * 1024 * 1024,       # ~13 MiB needed; safe on v5e/v6e/v7x
        ),
    )(x, packed["B1"], packed["b1t"], packed["E1e"], packed["E1o"],
      packed["S1e"], packed["S1o"], packed["B2"], packed["b2t"],
      packed["E2e"], packed["E2o"], packed["S2e"], packed["S2o"],
      packed["Wfc"], packed["blp"])

    return out[:, 0, :500]                                       # drop lane padding


# ---------------------------------------------------------------------------
# Parameters (deterministic, synthetic; shapes match the nn.Module)
# ---------------------------------------------------------------------------
def init_params(key):
    k1, k2, k3, k4, k5, k6 = jax.random.split(key, 6)
    return {
        "w1": jax.random.normal(k1, (20, 1, 5, 5), jnp.float32) * 0.1,
        "b1": jax.random.normal(k2, (20,), jnp.float32) * 0.1,
        "w2": jax.random.normal(k3, (50, 20, 5, 5), jnp.float32) * 0.05,
        "b2": jax.random.normal(k4, (50,), jnp.float32) * 0.05,
        "wl": jax.random.normal(k5, (500, 800), jnp.float32) * 0.02,
        "bl": jax.random.normal(k6, (500,), jnp.float32) * 0.02,
    }


def reference_forward(x_nchw, params):
    # Plain-JAX reference mirroring the PyTorch module (for self-validation).
    dn = ("NCHW", "OIHW", "NCHW")
    y = jax.lax.conv_general_dilated(x_nchw, params["w1"], (1, 1), "VALID",
                                     dimension_numbers=dn)
    y = jax.nn.relu(y + params["b1"][None, :, None, None])
    y = jax.lax.reduce_window(y, -jnp.inf, jax.lax.max,
                              (1, 1, 2, 2), (1, 1, 2, 2), "VALID")
    y = jax.lax.conv_general_dilated(y, params["w2"], (1, 1), "VALID",
                                     dimension_numbers=dn)
    y = jax.nn.relu(y + params["b2"][None, :, None, None])
    y = jax.lax.reduce_window(y, -jnp.inf, jax.lax.max,
                              (1, 1, 2, 2), (1, 1, 2, 2), "VALID")
    y = y.reshape(y.shape[0], -1)
    return jax.nn.relu(y @ params["wl"].T + params["bl"])


if __name__ == "__main__":
    key = jax.random.PRNGKey(0)
    kx, kp = jax.random.split(key)
    # Spatial 28x28 is implied by Linear(800, .) (50 * 4 * 4 = 800).
    x = jax.random.normal(kx, (2, 1, 28, 28), jnp.float32)
    params = init_params(kp)
    packed = pack_params(params)           # one-time weight repacking (at init)

    out = convnet_forward(x, packed)
    out = jax.block_until_ready(out)

    assert out.shape == (2, 500)
    assert bool(jnp.all(out >= 0.0))       # post-ReLU

    # Numerical self-check against the plain-JAX reference (loose tol for MXU).
    ref = reference_forward(x, params)
    max_err = float(jnp.max(jnp.abs(out - ref)))
    assert max_err < 1e-1, f"max abs error vs reference: {max_err}"

    print("KERNEL_OK")
</pallas_src>

<mosaic_0001>
module attributes {stable_mosaic.version = 11 : i64} {
  func.func @_convnet_kernel(%arg0: i32, %arg1: memref<1x28x28xf32, #tpu.memory_space<vmem>>, %arg2: memref<5x28x480xf32, #tpu.memory_space<vmem>>, %arg3: memref<1x480xf32, #tpu.memory_space<vmem>>, %arg4: memref<12x24xf32, #tpu.memory_space<vmem>>, %arg5: memref<12x24xf32, #tpu.memory_space<vmem>>, %arg6: memref<480x240xf32, #tpu.memory_space<vmem>>, %arg7: memref<480x240xf32, #tpu.memory_space<vmem>>, %arg8: memref<5x240x400xf32, #tpu.memory_space<vmem>>, %arg9: memref<1x400xf32, #tpu.memory_space<vmem>>, %arg10: memref<4x8xf32, #tpu.memory_space<vmem>>, %arg11: memref<4x8xf32, #tpu.memory_space<vmem>>, %arg12: memref<400x200xf32, #tpu.memory_space<vmem>>, %arg13: memref<400x200xf32, #tpu.memory_space<vmem>>, %arg14: memref<4x200x512xf32, #tpu.memory_space<vmem>>, %arg15: memref<1x512xf32, #tpu.memory_space<vmem>>, %arg16: memref<1x1x512xf32, #tpu.memory_space<vmem>>, %arg17: memref<12x240xf32, #tpu.memory_space<vmem>>, %arg18: memref<4x200xf32, #tpu.memory_space<vmem>>) attributes {dimension_semantics = [#tpu.dimension_semantics<parallel>], iteration_bounds = array<i64: 2>, scalar_prefetch = 0 : i64, scratch_operands = 2 : i64, tpu.core_type = #tpu.core_type<tc>, window_params = [{transform_indices = @transform_0, window_bounds = array<i64: 1, 28, 28>}, {pipeline_mode = #tpu.pipeline_mode<synchronous>, transform_indices = @transform_1, window_bounds = array<i64: 5, 28, 480>}, {pipeline_mode = #tpu.pipeline_mode<synchronous>, transform_indices = @transform_2, window_bounds = array<i64: 1, 480>}, {pipeline_mode = #tpu.pipeline_mode<synchronous>, transform_indices = @transform_3, window_bounds = array<i64: 12, 24>}, {pipeline_mode = #tpu.pipeline_mode<synchronous>, transform_indices = @transform_4, window_bounds = array<i64: 12, 24>}, {pipeline_mode = #tpu.pipeline_mode<synchronous>, transform_indices = @transform_5, window_bounds = array<i64: 480, 240>}, {pipeline_mode = #tpu.pipeline_mode<synchronous>, transform_indices = @transform_6, window_bounds = array<i64: 480, 240>}, {pipeline_mode = #tpu.pipeline_mode<synchronous>, transform_indices = @transform_7, window_bounds = array<i64: 5, 240, 400>}, {pipeline_mode = #tpu.pipeline_mode<synchronous>, transform_indices = @transform_8, window_bounds = array<i64: 1, 400>}, {pipeline_mode = #tpu.pipeline_mode<synchronous>, transform_indices = @transform_9, window_bounds = array<i64: 4, 8>}, {pipeline_mode = #tpu.pipeline_mode<synchronous>, transform_indices = @transform_10, window_bounds = array<i64: 4, 8>}, {pipeline_mode = #tpu.pipeline_mode<synchronous>, transform_indices = @transform_11, window_bounds = array<i64: 400, 200>}, {pipeline_mode = #tpu.pipeline_mode<synchronous>, transform_indices = @transform_12, window_bounds = array<i64: 400, 200>}, {pipeline_mode = #tpu.pipeline_mode<synchronous>, transform_indices = @transform_13, window_bounds = array<i64: 4, 200, 512>}, {pipeline_mode = #tpu.pipeline_mode<synchronous>, transform_indices = @transform_14, window_bounds = array<i64: 1, 512>}, {transform_indices = @transform_15, window_bounds = array<i64: 1, 1, 512>}]} {
    %c0 = arith.constant 0 : index
    %c0_0 = arith.constant 0 : index
    %c0_1 = arith.constant 0 : index
    %0 = vector.load %arg1[%c0, %c0_0, %c0_1] : memref<1x28x28xf32, #tpu.memory_space<vmem>>, vector<1x24x28xf32>
    %1 = vector.shape_cast %0 : vector<1x24x28xf32> to vector<24x28xf32>
    %c0_2 = arith.constant 0 : index
    %c0_3 = arith.constant 0 : index
    %c0_4 = arith.constant 0 : index
    %2 = vector.load %arg2[%c0_2, %c0_3, %c0_4] : memref<5x28x480xf32, #tpu.memory_space<vmem>>, vector<1x28x480xf32>
    %3 = vector.shape_cast %2 : vector<1x28x480xf32> to vector<28x480xf32>
    %cst = arith.constant dense<0.000000e+00> : vector<24x480xf32>
    %4 = tpu.matmul %1, %3, %cst {dimension_numbers = #tpu.dot_dimension_numbers<[1], [0], [0], [1], [0, 0, 1, 1], [], []>} : vector<24x28xf32>, vector<28x480xf32>, vector<24x480xf32> -> vector<24x480xf32>
    %c0_5 = arith.constant 0 : index
    %c1 = arith.constant 1 : index
    %c0_6 = arith.constant 0 : index
    %5 = vector.load %arg1[%c0_5, %c1, %c0_6] : memref<1x28x28xf32, #tpu.memory_space<vmem>>, vector<1x24x28xf32>
    %6 = vector.shape_cast %5 : vector<1x24x28xf32> to vector<24x28xf32>
    %c1_7 = arith.constant 1 : index
    %c0_8 = arith.constant 0 : index
    %c0_9 = arith.constant 0 : index
    %7 = vector.load %arg2[%c1_7, %c0_8, %c0_9] : memref<5x28x480xf32, #tpu.memory_space<vmem>>, vector<1x28x480xf32>
    %8 = vector.shape_cast %7 : vector<1x28x480xf32> to vector<28x480xf32>
    %cst_10 = arith.constant dense<0.000000e+00> : vector<24x480xf32>
    %9 = tpu.matmul %6, %8, %cst_10 {dimension_numbers = #tpu.dot_dimension_numbers<[1], [0], [0], [1], [0, 0, 1, 1], [], []>} : vector<24x28xf32>, vector<28x480xf32>, vector<24x480xf32> -> vector<24x480xf32>
    %10 = arith.addf %4, %9 : vector<24x480xf32>
    %c0_11 = arith.constant 0 : index
    %c2 = arith.constant 2 : index
    %c0_12 = arith.constant 0 : index
    %11 = vector.load %arg1[%c0_11, %c2, %c0_12] : memref<1x28x28xf32, #tpu.memory_space<vmem>>, vector<1x24x28xf32>
    %12 = vector.shape_cast %11 : vector<1x24x28xf32> to vector<24x28xf32>
    %c2_13 = arith.constant 2 : index
    %c0_14 = arith.constant 0 : index
    %c0_15 = arith.constant 0 : index
    %13 = vector.load %arg2[%c2_13, %c0_14, %c0_15] : memref<5x28x480xf32, #tpu.memory_space<vmem>>, vector<1x28x480xf32>
    %14 = vector.shape_cast %13 : vector<1x28x480xf32> to vector<28x480xf32>
    %cst_16 = arith.constant dense<0.000000e+00> : vector<24x480xf32>
    %15 = tpu.matmul %12, %14, %cst_16 {dimension_numbers = #tpu.dot_dimension_numbers<[1], [0], [0], [1], [0, 0, 1, 1], [], []>} : vector<24x28xf32>, vector<28x480xf32>, vector<24x480xf32> -> vector<24x480xf32>
    %16 = arith.addf %10, %15 : vector<24x480xf32>
    %c0_17 = arith.constant 0 : index
    %c3 = arith.constant 3 : index
    %c0_18 = arith.constant 0 : index
    %17 = vector.load %arg1[%c0_17, %c3, %c0_18] : memref<1x28x28xf32, #tpu.memory_space<vmem>>, vector<1x24x28xf32>
    %18 = vector.shape_cast %17 : vector<1x24x28xf32> to vector<24x28xf32>
    %c3_19 = arith.constant 3 : index
    %c0_20 = arith.constant 0 : index
    %c0_21 = arith.constant 0 : index
    %19 = vector.load %arg2[%c3_19, %c0_20, %c0_21] : memref<5x28x480xf32, #tpu.memory_space<vmem>>, vector<1x28x480xf32>
    %20 = vector.shape_cast %19 : vector<1x28x480xf32> to vector<28x480xf32>
    %cst_22 = arith.constant dense<0.000000e+00> : vector<24x480xf32>
    %21 = tpu.matmul %18, %20, %cst_22 {dimension_numbers = #tpu.dot_dimension_numbers<[1], [0], [0], [1], [0, 0, 1, 1], [], []>} : vector<24x28xf32>, vector<28x480xf32>, vector<24x480xf32> -> vector<24x480xf32>
    %22 = arith.addf %16, %21 : vector<24x480xf32>
    %c0_23 = arith.constant 0 : index
    %c4 = arith.constant 4 : index
    %c0_24 = arith.constant 0 : index
    %23 = vector.load %arg1[%c0_23, %c4, %c0_24] : memref<1x28x28xf32, #tpu.memory_space<vmem>>, vector<1x24x28xf32>
    %24 = vector.shape_cast %23 : vector<1x24x28xf32> to vector<24x28xf32>
    %c4_25 = arith.constant 4 : index
    %c0_26 = arith.constant 0 : index
    %c0_27 = arith.constant 0 : index
    %25 = vector.load %arg2[%c4_25, %c0_26, %c0_27] : memref<5x28x480xf32, #tpu.memory_space<vmem>>, vector<1x28x480xf32>
    %26 = vector.shape_cast %25 : vector<1x28x480xf32> to vector<28x480xf32>
    %cst_28 = arith.constant dense<0.000000e+00> : vector<24x480xf32>
    %27 = tpu.matmul %24, %26, %cst_28 {dimension_numbers = #tpu.dot_dimension_numbers<[1], [0], [0], [1], [0, 0, 1, 1], [], []>} : vector<24x28xf32>, vector<28x480xf32>, vector<24x480xf32> -> vector<24x480xf32>
    %28 = arith.addf %22, %27 : vector<24x480xf32>
    %c0_29 = arith.constant 0 : index
    %c0_30 = arith.constant 0 : index
    %29 = vector.load %arg3[%c0_29, %c0_30] : memref<1x480xf32, #tpu.memory_space<vmem>>, vector<1x480xf32>
    %30 = vector.broadcast %29 : vector<1x480xf32> to vector<24x480xf32>
    %31 = arith.addf %28, %30 : vector<24x480xf32>
    %cst_31 = arith.constant 0.000000e+00 : f32
    %32 = vector.broadcast %cst_31 : f32 to vector<24x480xf32>
    %33 = arith.maximumf %31, %32 : vector<24x480xf32>
    %c0_32 = arith.constant 0 : index
    %c0_33 = arith.constant 0 : index
    %34 = vector.load %arg4[%c0_32, %c0_33] : memref<12x24xf32, #tpu.memory_space<vmem>>, vector<12x24xf32>
    %cst_34 = arith.constant dense<0.000000e+00> : vector<12x480xf32>
    %35 = tpu.matmul %34, %33, %cst_34 {dimension_numbers = #tpu.dot_dimension_numbers<[1], [0], [0], [1], [0, 0, 1, 1], [], []>} : vector<12x24xf32>, vector<24x480xf32>, vector<12x480xf32> -> vector<12x480xf32>
    %c0_35 = arith.constant 0 : index
    %c0_36 = arith.constant 0 : index
    %36 = vector.load %arg5[%c0_35, %c0_36] : memref<12x24xf32, #tpu.memory_space<vmem>>, vector<12x24xf32>
    %cst_37 = arith.constant dense<0.000000e+00> : vector<12x480xf32>
    %37 = tpu.matmul %36, %33, %cst_37 {dimension_numbers = #tpu.dot_dimension_numbers<[1], [0], [0], [1], [0, 0, 1, 1], [], []>} : vector<12x24xf32>, vector<24x480xf32>, vector<12x480xf32> -> vector<12x480xf32>
    %38 = arith.maximumf %35, %37 : vector<12x480xf32>
    %c0_38 = arith.constant 0 : index
    %c0_39 = arith.constant 0 : index
    %39 = vector.load %arg6[%c0_38, %c0_39] : memref<480x240xf32, #tpu.memory_space<vmem>>, vector<480x240xf32>
    %cst_40 = arith.constant dense<0.000000e+00> : vector<12x240xf32>
    %40 = tpu.matmul %38, %39, %cst_40 {dimension_numbers = #tpu.dot_dimension_numbers<[1], [0], [0], [1], [0, 0, 1, 1], [], []>} : vector<12x480xf32>, vector<480x240xf32>, vector<12x240xf32> -> vector<12x240xf32>
    %c0_41 = arith.constant 0 : index
    %c0_42 = arith.constant 0 : index
    %41 = vector.load %arg7[%c0_41, %c0_42] : memref<480x240xf32, #tpu.memory_space<vmem>>, vector<480x240xf32>
    %cst_43 = arith.constant dense<0.000000e+00> : vector<12x240xf32>
    %42 = tpu.matmul %38, %41, %cst_43 {dimension_numbers = #tpu.dot_dimension_numbers<[1], [0], [0], [1], [0, 0, 1, 1], [], []>} : vector<12x480xf32>, vector<480x240xf32>, vector<12x240xf32> -> vector<12x240xf32>
    %43 = arith.maximumf %40, %42 : vector<12x240xf32>
    %c0_44 = arith.constant 0 : index
    %c0_45 = arith.constant 0 : index
    %44 = vector.load %arg17[%c0_44, %c0_45] : memref<12x240xf32, #tpu.memory_space<vmem>>, vector<12x240xf32>
    tpu.vector_store %arg17[%c0_44, %c0_45], %43 {strides = array<i32>} : memref<12x240xf32, #tpu.memory_space<vmem>>, vector<12x240xf32>,
    %c0_46 = arith.constant 0 : index
    %c0_47 = arith.constant 0 : index
    %45 = vector.load %arg17[%c0_46, %c0_47] : memref<12x240xf32, #tpu.memory_space<vmem>>, vector<8x240xf32>
    %c0_48 = arith.constant 0 : index
    %c0_49 = arith.constant 0 : index
    %c0_50 = arith.constant 0 : index
    %46 = vector.load %arg8[%c0_48, %c0_49, %c0_50] : memref<5x240x400xf32, #tpu.memory_space<vmem>>, vector<1x240x400xf32>
    %47 = vector.shape_cast %46 : vector<1x240x400xf32> to vector<240x400xf32>
    %cst_51 = arith.constant dense<0.000000e+00> : vector<8x400xf32>
    %48 = tpu.matmul %45, %47, %cst_51 {dimension_numbers = #tpu.dot_dimension_numbers<[1], [0], [0], [1], [0, 0, 1, 1], [], []>} : vector<8x240xf32>, vector<240x400xf32>, vector<8x400xf32> -> vector<8x400xf32>
    %c1_52 = arith.constant 1 : index
    %c0_53 = arith.constant 0 : index
    %49 = vector.load %arg17[%c1_52, %c0_53] : memref<12x240xf32, #tpu.memory_space<vmem>>, vector<8x240xf32>
    %c1_54 = arith.constant 1 : index
    %c0_55 = arith.constant 0 : index
    %c0_56 = arith.constant 0 : index
    %50 = vector.load %arg8[%c1_54, %c0_55, %c0_56] : memref<5x240x400xf32, #tpu.memory_space<vmem>>, vector<1x240x400xf32>
    %51 = vector.shape_cast %50 : vector<1x240x400xf32> to vector<240x400xf32>
    %cst_57 = arith.constant dense<0.000000e+00> : vector<8x400xf32>
    %52 = tpu.matmul %49, %51, %cst_57 {dimension_numbers = #tpu.dot_dimension_numbers<[1], [0], [0], [1], [0, 0, 1, 1], [], []>} : vector<8x240xf32>, vector<240x400xf32>, vector<8x400xf32> -> vector<8x400xf32>
    %53 = arith.addf %48, %52 : vector<8x400xf32>
    %c2_58 = arith.constant 2 : index
    %c0_59 = arith.constant 0 : index
    %54 = vector.load %arg17[%c2_58, %c0_59] : memref<12x240xf32, #tpu.memory_space<vmem>>, vector<8x240xf32>
    %c2_60 = arith.constant 2 : index
    %c0_61 = arith.constant 0 : index
    %c0_62 = arith.constant 0 : index
    %55 = vector.load %arg8[%c2_60, %c0_61, %c0_62] : memref<5x240x400xf32, #tpu.memory_space<vmem>>, vector<1x240x400xf32>
    %56 = vector.shape_cast %55 : vector<1x240x400xf32> to vector<240x400xf32>
    %cst_63 = arith.constant dense<0.000000e+00> : vector<8x400xf32>
    %57 = tpu.matmul %54, %56, %cst_63 {dimension_numbers = #tpu.dot_dimension_numbers<[1], [0], [0], [1], [0, 0, 1, 1], [], []>} : vector<8x240xf32>, vector<240x400xf32>, vector<8x400xf32> -> vector<8x400xf32>
    %58 = arith.addf %53, %57 : vector<8x400xf32>
    %c3_64 = arith.constant 3 : index
    %c0_65 = arith.constant 0 : index
    %59 = vector.load %arg17[%c3_64, %c0_65] : memref<12x240xf32, #tpu.memory_space<vmem>>, vector<8x240xf32>
    %c3_66 = arith.constant 3 : index
    %c0_67 = arith.constant 0 : index
    %c0_68 = arith.constant 0 : index
    %60 = vector.load %arg8[%c3_66, %c0_67, %c0_68] : memref<5x240x400xf32, #tpu.memory_space<vmem>>, vector<1x240x400xf32>
    %61 = vector.shape_cast %60 : vector<1x240x400xf32> to vector<240x400xf32>
    %cst_69 = arith.constant dense<0.000000e+00> : vector<8x400xf32>
    %62 = tpu.matmul %59, %61, %cst_69 {dimension_numbers = #tpu.dot_dimension_numbers<[1], [0], [0], [1], [0, 0, 1, 1], [], []>} : vector<8x240xf32>, vector<240x400xf32>, vector<8x400xf32> -> vector<8x400xf32>
    %63 = arith.addf %58, %62 : vector<8x400xf32>
    %c4_70 = arith.constant 4 : index
    %c0_71 = arith.constant 0 : index
    %64 = vector.load %arg17[%c4_70, %c0_71] : memref<12x240xf32, #tpu.memory_space<vmem>>, vector<8x240xf32>
    %c4_72 = arith.constant 4 : index
    %c0_73 = arith.constant 0 : index
    %c0_74 = arith.constant 0 : index
    %65 = vector.load %arg8[%c4_72, %c0_73, %c0_74] : memref<5x240x400xf32, #tpu.memory_space<vmem>>, vector<1x240x400xf32>
    %66 = vector.shape_cast %65 : vector<1x240x400xf32> to vector<240x400xf32>
    %cst_75 = arith.constant dense<0.000000e+00> : vector<8x400xf32>
    %67 = tpu.matmul %64, %66, %cst_75 {dimension_numbers = #tpu.dot_dimension_numbers<[1], [0], [0], [1], [0, 0, 1, 1], [], []>} : vector<8x240xf32>, vector<240x400xf32>, vector<8x400xf32> -> vector<8x400xf32>
    %68 = arith.addf %63, %67 : vector<8x400xf32>
    %c0_76 = arith.constant 0 : index
    %c0_77 = arith.constant 0 : index
    %69 = vector.load %arg9[%c0_76, %c0_77] : memref<1x400xf32, #tpu.memory_space<vmem>>, vector<1x400xf32>
    %70 = vector.broadcast %69 : vector<1x400xf32> to vector<8x400xf32>
    %71 = arith.addf %68, %70 : vector<8x400xf32>
    %cst_78 = arith.constant 0.000000e+00 : f32
    %72 = vector.broadcast %cst_78 : f32 to vector<8x400xf32>
    %73 = arith.maximumf %71, %72 : vector<8x400xf32>
    %c0_79 = arith.constant 0 : index
    %c0_80 = arith.constant 0 : index
    %74 = vector.load %arg10[%c0_79, %c0_80] : memref<4x8xf32, #tpu.memory_space<vmem>>, vector<4x8xf32>
    %cst_81 = arith.constant dense<0.000000e+00> : vector<4x400xf32>
    %75 = tpu.matmul %74, %73, %cst_81 {dimension_numbers = #tpu.dot_dimension_numbers<[1], [0], [0], [1], [0, 0, 1, 1], [], []>} : vector<4x8xf32>, vector<8x400xf32>, vector<4x400xf32> -> vector<4x400xf32>
    %c0_82 = arith.constant 0 : index
    %c0_83 = arith.constant 0 : index
    %76 = vector.load %arg11[%c0_82, %c0_83] : memref<4x8xf32, #tpu.memory_space<vmem>>, vector<4x8xf32>
    %cst_84 = arith.constant dense<0.000000e+00> : vector<4x400xf32>
    %77 = tpu.matmul %76, %73, %cst_84 {dimension_numbers = #tpu.dot_dimension_numbers<[1], [0], [0], [1], [0, 0, 1, 1], [], []>} : vector<4x8xf32>, vector<8x400xf32>, vector<4x400xf32> -> vector<4x400xf32>
    %78 = arith.maximumf %75, %77 : vector<4x400xf32>
    %c0_85 = arith.constant 0 : index
    %c0_86 = arith.constant 0 : index
    %79 = vector.load %arg12[%c0_85, %c0_86] : memref<400x200xf32, #tpu.memory_space<vmem>>, vector<400x200xf32>
    %cst_87 = arith.constant dense<0.000000e+00> : vector<4x200xf32>
    %80 = tpu.matmul %78, %79, %cst_87 {dimension_numbers = #tpu.dot_dimension_numbers<[1], [0], [0], [1], [0, 0, 1, 1], [], []>} : vector<4x400xf32>, vector<400x200xf32>, vector<4x200xf32> -> vector<4x200xf32>
    %c0_88 = arith.constant 0 : index
    %c0_89 = arith.constant 0 : index
    %81 = vector.load %arg13[%c0_88, %c0_89] : memref<400x200xf32, #tpu.memory_space<vmem>>, vector<400x200xf32>
    %cst_90 = arith.constant dense<0.000000e+00> : vector<4x200xf32>
    %82 = tpu.matmul %78, %81, %cst_90 {dimension_numbers = #tpu.dot_dimension_numbers<[1], [0], [0], [1], [0, 0, 1, 1], [], []>} : vector<4x400xf32>, vector<400x200xf32>, vector<4x200xf32> -> vector<4x200xf32>
    %83 = arith.maximumf %80, %82 : vector<4x200xf32>
    %c0_91 = arith.constant 0 : index
    %c0_92 = arith.constant 0 : index
    %84 = vector.load %arg18[%c0_91, %c0_92] : memref<4x200xf32, #tpu.memory_space<vmem>>, vector<4x200xf32>
    tpu.vector_store %arg18[%c0_91, %c0_92], %83 {strides = array<i32>} : memref<4x200xf32, #tpu.memory_space<vmem>>, vector<4x200xf32>,
    %c0_93 = arith.constant 0 : index
    %c0_94 = arith.constant 0 : index
    %85 = vector.load %arg18[%c0_93, %c0_94] : memref<4x200xf32, #tpu.memory_space<vmem>>, vector<1x200xf32>
    %c0_95 = arith.constant 0 : index
    %c0_96 = arith.constant 0 : index
    %c0_97 = arith.constant 0 : index
    %86 = vector.load %arg14[%c0_95, %c0_96, %c0_97] : memref<4x200x512xf32, #tpu.memory_space<vmem>>, vector<1x200x512xf32>
    %87 = vector.shape_cast %86 : vector<1x200x512xf32> to vector<200x512xf32>
    %cst_98 = arith.constant dense<0.000000e+00> : vector<1x512xf32>
    %88 = tpu.matmul %85, %87, %cst_98 {dimension_numbers = #tpu.dot_dimension_numbers<[1], [0], [0], [1], [0, 0, 1, 1], [], []>} : vector<1x200xf32>, vector<200x512xf32>, vector<1x512xf32> -> vector<1x512xf32>
    %c1_99 = arith.constant 1 : index
    %c0_100 = arith.constant 0 : index
    %89 = vector.load %arg18[%c1_99, %c0_100] : memref<4x200xf32, #tpu.memory_space<vmem>>, vector<1x200xf32>
    %c1_101 = arith.constant 1 : index
    %c0_102 = arith.constant 0 : index
    %c0_103 = arith.constant 0 : index
    %90 = vector.load %arg14[%c1_101, %c0_102, %c0_103] : memref<4x200x512xf32, #tpu.memory_space<vmem>>, vector<1x200x512xf32>
    %91 = vector.shape_cast %90 : vector<1x200x512xf32> to vector<200x512xf32>
    %cst_104 = arith.constant dense<0.000000e+00> : vector<1x512xf32>
    %92 = tpu.matmul %89, %91, %cst_104 {dimension_numbers = #tpu.dot_dimension_numbers<[1], [0], [0], [1], [0, 0, 1, 1], [], []>} : vector<1x200xf32>, vector<200x512xf32>, vector<1x512xf32> -> vector<1x512xf32>
    %93 = arith.addf %88, %92 : vector<1x512xf32>
    %c2_105 = arith.constant 2 : index
    %c0_106 = arith.constant 0 : index
    %94 = vector.load %arg18[%c2_105, %c0_106] : memref<4x200xf32, #tpu.memory_space<vmem>>, vector<1x200xf32>
    %c2_107 = arith.constant 2 : index
    %c0_108 = arith.constant 0 : index
    %c0_109 = arith.constant 0 : index
    %95 = vector.load %arg14[%c2_107, %c0_108, %c0_109] : memref<4x200x512xf32, #tpu.memory_space<vmem>>, vector<1x200x512xf32>
    %96 = vector.shape_cast %95 : vector<1x200x512xf32> to vector<200x512xf32>
    %cst_110 = arith.constant dense<0.000000e+00> : vector<1x512xf32>
    %97 = tpu.matmul %94, %96, %cst_110 {dimension_numbers = #tpu.dot_dimension_numbers<[1], [0], [0], [1], [0, 0, 1, 1], [], []>} : vector<1x200xf32>, vector<200x512xf32>, vector<1x512xf32> -> vector<1x512xf32>
    %98 = arith.addf %93, %97 : vector<1x512xf32>
    %c3_111 = arith.constant 3 : index
    %c0_112 = arith.constant 0 : index
    %99 = vector.load %arg18[%c3_111, %c0_112] : memref<4x200xf32, #tpu.memory_space<vmem>>, vector<1x200xf32>
    %c3_113 = arith.constant 3 : index
    %c0_114 = arith.constant 0 : index
    %c0_115 = arith.constant 0 : index
    %100 = vector.load %arg14[%c3_113, %c0_114, %c0_115] : memref<4x200x512xf32, #tpu.memory_space<vmem>>, vector<1x200x512xf32>
    %101 = vector.shape_cast %100 : vector<1x200x512xf32> to vector<200x512xf32>
    %cst_116 = arith.constant dense<0.000000e+00> : vector<1x512xf32>
    %102 = tpu.matmul %99, %101, %cst_116 {dimension_numbers = #tpu.dot_dimension_numbers<[1], [0], [0], [1], [0, 0, 1, 1], [], []>} : vector<1x200xf32>, vector<200x512xf32>, vector<1x512xf32> -> vector<1x512xf32>
    %103 = arith.addf %98, %102 : vector<1x512xf32>
    %c0_117 = arith.constant 0 : index
    %c0_118 = arith.constant 0 : index
    %104 = vector.load %arg15[%c0_117, %c0_118] : memref<1x512xf32, #tpu.memory_space<vmem>>, vector<1x512xf32>
    %105 = arith.addf %103, %104 : vector<1x512xf32>
    %cst_119 = arith.constant 0.000000e+00 : f32
    %106 = vector.broadcast %cst_119 : f32 to vector<1x512xf32>
    %107 = arith.maximumf %105, %106 : vector<1x512xf32>
    %c0_120 = arith.constant 0 : index
    %c0_121 = arith.constant 0 : index
    %c0_122 = arith.constant 0 : index
    %108 = vector.load %arg16[%c0_120, %c0_121, %c0_122] : memref<1x1x512xf32, #tpu.memory_space<vmem>>, vector<1x1x512xf32>
    %109 = vector.shape_cast %108 : vector<1x1x512xf32> to vector<1x512xf32>
    %110 = vector.shape_cast %107 : vector<1x512xf32> to vector<1x1x512xf32>
    tpu.vector_store %arg16[%c0_120, %c0_121, %c0_122], %110 {strides = array<i32>} : memref<1x1x512xf32, #tpu.memory_space<vmem>>, vector<1x1x512xf32>,
    return
  }
  func.func @transform_0(%arg0: i32) -> (i32, i32, i32) {
    %c0_i32 = arith.constant 0 : i32
    %c0_i32_0 = arith.constant 0 : i32
    %c0_i32_1 = arith.constant 0 : i32
    return %arg0, %c0_i32, %c0_i32_0 : i32, i32, i32
  }
  func.func @transform_1(%arg0: i32) -> (i32, i32, i32) {
    %c0_i32 = arith.constant 0 : i32
    %c0_i32_0 = arith.constant 0 : i32
    %c0_i32_1 = arith.constant 0 : i32
    %c0_i32_2 = arith.constant 0 : i32
    return %c0_i32, %c0_i32_0, %c0_i32_1 : i32, i32, i32
  }
  func.func @transform_2(%arg0: i32) -> (i32, i32) {
    %c0_i32 = arith.constant 0 : i32
    %c0_i32_0 = arith.constant 0 : i32
    %c0_i32_1 = arith.constant 0 : i32
    return %c0_i32, %c0_i32_0 : i32, i32
  }
  func.func @transform_3(%arg0: i32) -> (i32, i32) {
    %c0_i32 = arith.constant 0 : i32
    %c0_i32_0 = arith.constant 0 : i32
    %c0_i32_1 = arith.constant 0 : i32
    return %c0_i32, %c0_i32_0 : i32, i32
  }
  func.func @transform_4(%arg0: i32) -> (i32, i32) {
    %c0_i32 = arith.constant 0 : i32
    %c0_i32_0 = arith.constant 0 : i32
    %c0_i32_1 = arith.constant 0 : i32
    return %c0_i32, %c0_i32_0 : i32, i32
  }
  func.func @transform_5(%arg0: i32) -> (i32, i32) {
    %c0_i32 = arith.constant 0 : i32
    %c0_i32_0 = arith.constant 0 : i32
    %c0_i32_1 = arith.constant 0 : i32
    return %c0_i32, %c0_i32_0 : i32, i32
  }
  func.func @transform_6(%arg0: i32) -> (i32, i32) {
    %c0_i32 = arith.constant 0 : i32
    %c0_i32_0 = arith.constant 0 : i32
    %c0_i32_1 = arith.constant 0 : i32
    return %c0_i32, %c0_i32_0 : i32, i32
  }
  func.func @transform_7(%arg0: i32) -> (i32, i32, i32) {
    %c0_i32 = arith.constant 0 : i32
    %c0_i32_0 = arith.constant 0 : i32
    %c0_i32_1 = arith.constant 0 : i32
    %c0_i32_2 = arith.constant 0 : i32
    return %c0_i32, %c0_i32_0, %c0_i32_1 : i32, i32, i32
  }
  func.func @transform_8(%arg0: i32) -> (i32, i32) {
    %c0_i32 = arith.constant 0 : i32
    %c0_i32_0 = arith.constant 0 : i32
    %c0_i32_1 = arith.constant 0 : i32
    return %c0_i32, %c0_i32_0 : i32, i32
  }
  func.func @transform_9(%arg0: i32) -> (i32, i32) {
    %c0_i32 = arith.constant 0 : i32
    %c0_i32_0 = arith.constant 0 : i32
    %c0_i32_1 = arith.constant 0 : i32
    return %c0_i32, %c0_i32_0 : i32, i32
  }
  func.func @transform_10(%arg0: i32) -> (i32, i32) {
    %c0_i32 = arith.constant 0 : i32
    %c0_i32_0 = arith.constant 0 : i32
    %c0_i32_1 = arith.constant 0 : i32
    return %c0_i32, %c0_i32_0 : i32, i32
  }
  func.func @transform_11(%arg0: i32) -> (i32, i32) {
    %c0_i32 = arith.constant 0 : i32
    %c0_i32_0 = arith.constant 0 : i32
    %c0_i32_1 = arith.constant 0 : i32
    return %c0_i32, %c0_i32_0 : i32, i32
  }
  func.func @transform_12(%arg0: i32) -> (i32, i32) {
    %c0_i32 = arith.constant 0 : i32
    %c0_i32_0 = arith.constant 0 : i32
    %c0_i32_1 = arith.constant 0 : i32
    return %c0_i32, %c0_i32_0 : i32, i32
  }
  func.func @transform_13(%arg0: i32) -> (i32, i32, i32) {
    %c0_i32 = arith.constant 0 : i32
    %c0_i32_0 = arith.constant 0 : i32
    %c0_i32_1 = arith.constant 0 : i32
    %c0_i32_2 = arith.constant 0 : i32
    return %c0_i32, %c0_i32_0, %c0_i32_1 : i32, i32, i32
  }
  func.func @transform_14(%arg0: i32) -> (i32, i32) {
    %c0_i32 = arith.constant 0 : i32
    %c0_i32_0 = arith.constant 0 : i32
    %c0_i32_1 = arith.constant 0 : i32
    return %c0_i32, %c0_i32_0 : i32, i32
  }
  func.func @transform_15(%arg0: i32) -> (i32, i32, i32) {
    %c0_i32 = arith.constant 0 : i32
    %c0_i32_0 = arith.constant 0 : i32
    %c0_i32_1 = arith.constant 0 : i32
    return %arg0, %c0_i32, %c0_i32_0 : i32, i32, i32
  }
}

</mosaic_0001>

<bundles_post_ra>
// kernel: convnet_forward.1
= control target key start
LH: loop header
LB: loop body
LE: loop exit
PB: predicated region body
PF: predicated region fallthrough
CT: control target
= control target key end

     0   :  { %s6928_s18 = smov 0   ;;  %s11823_s0 = inlined_call_operand.vmem [shape: f32[2,28,28], index: 0, kind: input, shape index: {}]   ;;  %s11824_s1 = inlined_call_operand.vmem [shape: f32[5,28,480], index: 1, kind: input, shape index: {}]   ;;  %s11825_s2 = inlined_call_operand.vmem [shape: f32[1,480], index: 2, kind: input, shape index: {}]   ;;  %s11826_s3 = inlined_call_operand.vmem [shape: f32[12,24], index: 3, kind: input, shape index: {}]   ;;  %s11827_s4 = inlined_call_operand.vmem [shape: f32[12,24], index: 4, kind: input, shape index: {}]   ;;  %s11828_s5 = inlined_call_operand.vmem [shape: f32[480,240], index: 5, kind: input, shape index: {}]   ;;  %s11829_s6 = inlined_call_operand.vmem [shape: f32[480,240], index: 6, kind: input, shape index: {}]   ;;  %s11830_s7 = inlined_call_operand.vmem [shape: f32[5,240,400], index: 7, kind: input, shape index: {}]   ;;  %s11831_s8 = inlined_call_operand.vmem [shape: f32[1,400], index: 8, kind: input, shape index: {}]   ;;  %s11832_s9 = inlined_call_operand.vmem [shape: f32[4,8], index: 9, kind: input, shape index: {}]   ;;  %s11833_s10 = inlined_call_operand.vmem [shape: f32[4,8], index: 10, kind: input, shape index: {}]   ;;  %s11834_s11 = inlined_call_operand.vmem [shape: f32[400,200], index: 11, kind: input, shape index: {}]   ;;  %s11835_s12 = inlined_call_operand.vmem [shape: f32[400,200], index: 12, kind: input, shape index: {}]   ;;  %s11836_s13 = inlined_call_operand.vmem [shape: f32[4,200,512], index: 13, kind: input, shape index: {}]   ;;  %s11837_s14 = inlined_call_operand.vmem [shape: f32[1,512], index: 14, kind: input, shape index: {}]   ;;  %s11838_s15 = inlined_call_operand.vmem [shape: f32[2,1,512], index: 15, kind: output, shape index: {}]  }
   0x1 LB: > { %s5887_s19 = sadd.s32 4294967295, %s6844_s18   ;;  %p5891_p0 = scmp.ge.s32.totalorder %s6844_s18, 1  ;;  %s6844_s18 = sphi %s6928_s18, %s25_s18  }
   0x2   : > { %p437_p1 = scmp.lt.s32.totalorder %s6844_s18, 3 }
   0x4   : > { %p438_p2 = pnand %p5891_p0, %p437_p1 }
   0x6   : > { %441 = sbr.rel (%p438_p2) target bundleno = 2076 (0x81c), region = 80 }
   0xb   : > { %v5908_v0 = vld [vmem:[%s11824_s1 + $0xe8] sm:$0xf]  ;;  %vm542_vm0 = vcmask 1043456   ;;  %v5910_v1 = vld [vmem:[%s11824_s1 + $0xf8] sm:$0xf]  ;;  %v5903_v6 = vld [vmem:[%s11824_s1 + $0xc0] sm:$0xff] }
   0xc   : > { %v5904_v2 = vld [vmem:[%s11824_s1 + $0xc8] sm:$0xff]  ;;  %5911 = vmatprep.subr.msk.mxu0 %vm542_vm0, %v5908_v0  ;;  %5916 = vmatprep.subr.msk.mxu1 %vm542_vm0, %v5910_v1  ;;  %v5907_v3 = vld [vmem:[%s11824_s1 + $0xe0] sm:$0xf]  ;;  %v5909_v4 = vld [vmem:[%s11824_s1 + $0xf0] sm:$0xf]  ;;  %p484_p3 = scmp.lt.s32.totalorder %s5887_s19, 1 }
   0xd   : > { %v5906_v5 = vld [vmem:[%s11824_s1 + $0xd8] sm:$0xff]  ;;  %5912 = vmatpush1.msk.msra.mxu0 %vm542_vm0, %v5907_v3  ;;  %5917 = vmatpush1.msk.msra.mxu1 %vm542_vm0, %v5909_v4  ;;  %v5905_v7 = vld [vmem:[%s11824_s1 + $0xd0] sm:$0xff]  ;;  %v5900_v8 = vld [vmem:[%s11824_s1 + $0xa8] sm:$0xff]  ;;  %vm532_vm1 = vcmask 228352   ;;  %v11840_v16 = vmov 0.0   ;;  %vm1613_vm2 = vcmask 195584  }
   0xe   : > { %581 = vmatprep.subr.mxu0 %v5904_v2  ;;  %664 = vmatprep.subr.mxu1 %v5906_v5  ;;  %v5902_v9 = vld [vmem:[%s11824_s1 + $0xb8] sm:$0xff]  ;;  %v5899_v10 = vld [vmem:[%s11824_s1 + $0xa0] sm:$0xff]  ;;  %v5901_v11 = vld [vmem:[%s11824_s1 + $0xb0] sm:$0xff]  ;;  %s11869_s19 = smov (!%p484_p3, %s5887_s19), 1  ;;  %vm2064_vm3 = vcmask 785408   ;;  %vm2504_vm4 = vcmask 916480  }
   0xf   : > { %582 = vmatpush1.msra.mxu0 %v5903_v6  ;;  %665 = vmatpush1.msra.mxu1 %v5905_v7  ;;  %v5896_v12 = vld [vmem:[%s11824_s1 + $0x88] sm:$0xff]  ;;  %v5898_v13 = vld [vmem:[%s11824_s1 + $0x98] sm:$0xff]  ;;  %v5895_v14 = vld [vmem:[%s11824_s1 + $0x80] sm:$0xff]  ;;  %s6827_s26 = sshll.u32 %s11869_s19, 5  ;;  %vm2507_vm5 = vcmask 912384   ;;  %vm2760_vm6 = vcmask 1046528  }
  0x10   : > { %583 = vmatprep.subr.mxu0 %v5900_v8  ;;  %666 = vmatprep.subr.mxu1 %v5902_v9  ;;  %v5897_v15 = vld [vmem:[%s11824_s1 + $0x90] sm:$0xff]  ;;  %s6994_s29 = scalar_lea.vmem %s11823_s0, %s6827_s26  ;;  %v509_v18 = vld [vmem:[%s11824_s1 + $0x68] sm:$0xf]  ;;  %v511_v19 = vld [vmem:[%s11824_s1 + $0x78] sm:$0xf]  ;;  %vm3186_vm7 = vcmask 1045504  }
  0x11   : > { %584 = vmatpush1.msra.mxu0 %v5899_v10  ;;  %667 = vmatpush1.msra.mxu1 %v5901_v11  ;;  %v512_v17 = vld [vmem:[%s6994_s29 + $0x1] sm:$0xff]  ;;  %v510_v21 = vld [vmem:[%s11824_s1 + $0x70] sm:$0xf]  ;;  %v507_v24 = vld [vmem:[%s11824_s1 + $0x58] sm:$0xff]  ;;  %vm3471_vm8 = vcmask 1044480   ;;  %vm3942_vm9 = vcmask 64512  }
  0x12   : > { %585 = vmatprep.subr.mxu0 %v5896_v12  ;;  %668 = vmatprep.subr.mxu1 %v5898_v13  ;;  %v508_v20 = vld [vmem:[%s11824_s1 + $0x60] sm:$0xf]  ;;  %v513_v22 = vld [vmem:[%s6994_s29 + $0x9] sm:$0xff]  ;;  %v514_v27 = vld [vmem:[%s6994_s29 + $0x11] sm:$0xff]  ;;  %vm4338_vm10 = vcmask 130048   ;;  %vm4732_vm11 = vcmask 588804  }
  0x13   : > { %586 = vmatpush1.msra.mxu0 %v5895_v14  ;;  %619 = vmatprep.mubr.f32.mxu0 %v11840_v16  ;;  %v505_v23 = vld [vmem:[%s11824_s1 + $0x48] sm:$0xff]  ;;  %v504_v25 = vld [vmem:[%s11824_s1 + $0x40] sm:$0xff]  ;;  %v506_v26 = vld [vmem:[%s11824_s1 + $0x50] sm:$0xff]  ;;  %vm4949_vm13 = vcmask 588800   ;;  %s5894_s24 = sshll.u32 %s11869_s19, 2 }
  0x14   : > { %669 = vmatpush1.msra.mxu1 %v5897_v15  ;;  %702 = vmatprep.mubr.f32.mxu1 %v11840_v16  ;;  %v501_v28 = vld [vmem:[%s11824_s1 + $0x28] sm:$0xff]  ;;  %v503_v29 = vld [vmem:[%s11824_s1 + $0x38] sm:$0xff]  ;;  %v500_v30 = vld [vmem:[%s11824_s1 + $0x20] sm:$0xff]  ;;  %s492_s26 = scalar_lea.vmem %s11838_s15, %s5894_s24 }
  0x15   : > { %5913 = vmatmul.mubr.msk.f32.vlgmr.msra.gmra.mxu0 %vm532_vm1, %v512_v17  ;;  %5918 = vmatmul.mubr.msk.f32.vlgmr.msra.gmra.mxu1 %vm532_vm1, %v512_v17  ;;  %v502_v31 = vld [vmem:[%s11824_s1 + $0x30] sm:$0xff]  ;;  %v497_v32 = vld [vmem:[%s11824_s1 + $0x8] sm:$0xff]  ;;  %v499_v33 = vld [vmem:[%s11824_s1 + $0x18] sm:$0xff] }
  0x16   : > { %625 = vmatprep.mubr.f32.mxu0 %v11840_v16  ;;  %708 = vmatprep.mubr.f32.mxu1 %v11840_v16  ;;  %v496_v34 = vld [vmem:[%s11824_s1] sm:$0xff]  ;;  %v498_v35 = vld [vmem:[%s11824_s1 + $0x10] sm:$0xff]  ;;  %v5944_v37 = vld [vmem:[%s11824_s1 + $0x168] sm:$0xf] }
  0x17   : > { %5921 = vmatprep.subr.msk.mxu0 %vm542_vm0, %v509_v18  ;;  %5926 = vmatprep.subr.msk.mxu1 %vm542_vm0, %v511_v19  ;;  %v493_v36 = vld [vmem:[%s6994_s29] sm:$0xff]  ;;  %v5946_v38 = vld [vmem:[%s11824_s1 + $0x178] sm:$0xf]  ;;  %v5945_v40 = vld [vmem:[%s11824_s1 + $0x170] sm:$0xf] }
  0x18   : > { %5922 = vmatpush1.msk.msra.mxu0 %vm542_vm0, %v508_v20  ;;  %5927 = vmatpush1.msk.msra.mxu1 %vm542_vm0, %v510_v21  ;;  %v5943_v39 = vld [vmem:[%s11824_s1 + $0x160] sm:$0xf]  ;;  %v494_v41 = vld [vmem:[%s6994_s29 + $0x8] sm:$0xff]  ;;  %v5942_v43 = vld [vmem:[%s11824_s1 + $0x158] sm:$0xff] }
  0x19   : > { %5914 = vmatmul.mubr.msk.f32.gmra.mxu0 %vm532_vm1, %v513_v22  ;;  %5919 = vmatmul.mubr.msk.f32.gmra.mxu1 %vm532_vm1, %v513_v22  ;;  %v5940_v42 = vld [vmem:[%s11824_s1 + $0x148] sm:$0xff]  ;;  %v5939_v44 = vld [vmem:[%s11824_s1 + $0x140] sm:$0xff]  ;;  %v5941_v45 = vld [vmem:[%s11824_s1 + $0x150] sm:$0xff] }
  0x1a   : > { %768 = vmatprep.subr.mxu0 %v505_v23  ;;  %851 = vmatprep.subr.mxu1 %v507_v24  ;;  %v495_v46 = vld [vmem:[%s6994_s29 + $0x10] sm:$0xff]  ;;  %v5936_v47 = vld [vmem:[%s11824_s1 + $0x128] sm:$0xff]  ;;  %v5938_v48 = vld [vmem:[%s11824_s1 + $0x138] sm:$0xff] }
  0x1b   : > { %631 = vmatprep.mubr.f32.mxu0 %v11840_v16  ;;  %714 = vmatprep.mubr.f32.mxu1 %v11840_v16  ;;  %v5935_v49 = vld [vmem:[%s11824_s1 + $0x120] sm:$0xff]  ;;  %v5937_v50 = vld [vmem:[%s11824_s1 + $0x130] sm:$0xff]  ;;  %v5932_v51 = vld [vmem:[%s11824_s1 + $0x108] sm:$0xff] }
  0x1c   : > { %769 = vmatpush1.msra.mxu0 %v504_v25  ;;  %852 = vmatpush1.msra.mxu1 %v506_v26  ;;  %v5934_v52 = vld [vmem:[%s11824_s1 + $0x118] sm:$0xff]  ;;  %v5931_v53 = vld [vmem:[%s11824_s1 + $0x100] sm:$0xff]  ;;  %v5933_v54 = vld [vmem:[%s11824_s1 + $0x110] sm:$0xff] }
  0x1d   : > { %5915 = vmatmul.mubr.msk.f32.gmra.mxu0 %vm532_vm1, %v514_v27  ;;  %5920 = vmatmul.mubr.msk.f32.gmra.mxu1 %vm532_vm1, %v514_v27  ;;  %v908_v55 = vld [vmem:[%s6994_s29 + $0x2] sm:$0xff]  ;;  %v5972_v57 = vld [vmem:[%s11824_s1 + $0x1f8] sm:$0xf]  ;;  %v5971_v59 = vld [vmem:[%s11824_s1 + $0x1f0] sm:$0xf] }
  0x1e   : > { %770 = vmatprep.subr.mxu0 %v501_v28  ;;  %853 = vmatprep.subr.mxu1 %v503_v29  ;;  %v5970_v56 = vld [vmem:[%s11824_s1 + $0x1e8] sm:$0xf]  ;;  %v5969_v58 = vld [vmem:[%s11824_s1 + $0x1e0] sm:$0xf]  ;;  %v5968_v62 = vld [vmem:[%s11824_s1 + $0x1d8] sm:$0xff] }
  0x1f   : > { %771 = vmatpush1.msra.mxu0 %v500_v30  ;;  %854 = vmatpush1.msra.mxu1 %v502_v31  ;;  %v909_v60 = vld [vmem:[%s6994_s29 + $0xa] sm:$0xff]  ;;  %v5965_v63 = vld [vmem:[%s11824_s1 + $0x1c0] sm:$0xff]  ;;  %v910_v1 = vld [vmem:[%s6994_s29 + $0x12] sm:$0xff] }
  0x20   : > { %772 = vmatprep.subr.mxu0 %v497_v32  ;;  %855 = vmatprep.subr.mxu1 %v499_v33  ;;  %v5966_v61 = vld [vmem:[%s11824_s1 + $0x1c8] sm:$0xff]  ;;  %v5967_v0 = vld [vmem:[%s11824_s1 + $0x1d0] sm:$0xff]  ;;  %v5964_v3 = vld [vmem:[%s11824_s1 + $0x1b8] sm:$0xff] }
  0x21   : > { %773 = vmatpush1.msra.mxu0 %v496_v34  ;;  %806 = vmatprep.mubr.f32.mxu0 %v11840_v16  ;;  %v5962_v2 = vld [vmem:[%s11824_s1 + $0x1a8] sm:$0xff]  ;;  %v5961_v4 = vld [vmem:[%s11824_s1 + $0x1a0] sm:$0xff]  ;;  %v5963_v5 = vld [vmem:[%s11824_s1 + $0x1b0] sm:$0xff] }
  0x22   : > { %856 = vmatpush1.msra.mxu1 %v498_v35  ;;  %889 = vmatprep.mubr.f32.mxu1 %v11840_v16  ;;  %v5958_v6 = vld [vmem:[%s11824_s1 + $0x188] sm:$0xff]  ;;  %v5960_v7 = vld [vmem:[%s11824_s1 + $0x198] sm:$0xff]  ;;  %v5957_v8 = vld [vmem:[%s11824_s1 + $0x180] sm:$0xff] }
  0x23   : > { %5923 = vmatmul.mubr.msk.f32.vlgmr.msra.gmra.mxu0 %vm532_vm1, %v493_v36  ;;  %5928 = vmatmul.mubr.msk.f32.vlgmr.msra.gmra.mxu1 %vm532_vm1, %v493_v36  ;;  %v5959_v9 = vld [vmem:[%s11824_s1 + $0x190] sm:$0xff]  ;;  %v1127_v10 = vld [vmem:[%s6994_s29 + $0x3] sm:$0xff]  ;;  %v5998_v12 = vld [vmem:[%s11824_s1 + $0x278] sm:$0xf] }
  0x24   : > { %812 = vmatprep.mubr.f32.mxu0 %v11840_v16  ;;  %895 = vmatprep.mubr.f32.mxu1 %v11840_v16  ;;  %v5996_v11 = vld [vmem:[%s11824_s1 + $0x268] sm:$0xf]  ;;  %v5995_v13 = vld [vmem:[%s11824_s1 + $0x260] sm:$0xf]  ;;  %v5997_v14 = vld [vmem:[%s11824_s1 + $0x270] sm:$0xf] }
  0x25   : > { %5947 = vmatprep.subr.msk.mxu0 %vm542_vm0, %v5944_v37  ;;  %5952 = vmatprep.subr.msk.mxu1 %vm542_vm0, %v5946_v38  ;;  %v1128_v15 = vld [vmem:[%s6994_s29 + $0xb] sm:$0xff]  ;;  %v5994_v18 = vld [vmem:[%s11824_s1 + $0x258] sm:$0xff]  ;;  %v5991_v19 = vld [vmem:[%s11824_s1 + $0x240] sm:$0xff] }
  0x26   : > { %5948 = vmatpush1.msk.msra.mxu0 %vm542_vm0, %v5943_v39  ;;  %5953 = vmatpush1.msk.msra.mxu1 %vm542_vm0, %v5945_v40  ;;  %v5992_v17 = vld [vmem:[%s11824_s1 + $0x248] sm:$0xff]  ;;  %v5993_v20 = vld [vmem:[%s11824_s1 + $0x250] sm:$0xff]  ;;  %v5990_v23 = vld [vmem:[%s11824_s1 + $0x238] sm:$0xff] }
  0x27   : > { %5924 = vmatmul.mubr.msk.f32.gmra.mxu0 %vm532_vm1, %v494_v41  ;;  %5929 = vmatmul.mubr.msk.f32.gmra.mxu1 %vm532_vm1, %v494_v41  ;;  %v1129_v21 = vld [vmem:[%s6994_s29 + $0x13] sm:$0xff]  ;;  %v5988_v22 = vld [vmem:[%s11824_s1 + $0x228] sm:$0xff]  ;;  %v5987_v24 = vld [vmem:[%s11824_s1 + $0x220] sm:$0xff] }
  0x28   : > { %975 = vmatprep.subr.mxu0 %v5940_v42  ;;  %1058 = vmatprep.subr.mxu1 %v5942_v43  ;;  %v5989_v25 = vld [vmem:[%s11824_s1 + $0x230] sm:$0xff]  ;;  %v5984_v26 = vld [vmem:[%s11824_s1 + $0x208] sm:$0xff]  ;;  %v5986_v27 = vld [vmem:[%s11824_s1 + $0x218] sm:$0xff] }
  0x29   : > { %818 = vmatprep.mubr.f32.mxu0 %v11840_v16  ;;  %901 = vmatprep.mubr.f32.mxu1 %v11840_v16  ;;  %v5983_v28 = vld [vmem:[%s11824_s1 + $0x200] sm:$0xff]  ;;  %v5985_v29 = vld [vmem:[%s11824_s1 + $0x210] sm:$0xff]  ;;  %vm4733_vm12 = vmor %vm4732_vm11, %vm542_vm0 }
  0x2a   : > { %976 = vmatpush1.msra.mxu0 %v5939_v44  ;;  %1059 = vmatpush1.msra.mxu1 %v5941_v45  ;;  %v1346_v30 = vld [vmem:[%s6994_s29 + $0x4] sm:$0xff]  ;;  %v1347_v31 = vld [vmem:[%s6994_s29 + $0xc] sm:$0xff]  ;;  %v1348_v32 = vld [vmem:[%s6994_s29 + $0x14] sm:$0xff] }
  0x2b   : > { %5925 = vmatmul.mubr.msk.f32.gmra.mxu0 %vm532_vm1, %v495_v46  ;;  %5930 = vmatmul.mubr.msk.f32.gmra.mxu1 %vm532_vm1, %v495_v46 }
  0x2c   : > { %977 = vmatprep.subr.mxu0 %v5936_v47  ;;  %1060 = vmatprep.subr.mxu1 %v5938_v48 }
  0x2d   : > { %978 = vmatpush1.msra.mxu0 %v5935_v49  ;;  %1061 = vmatpush1.msra.mxu1 %v5937_v50 }
  0x2e   : > { %979 = vmatprep.subr.mxu0 %v5932_v51  ;;  %1062 = vmatprep.subr.mxu1 %v5934_v52 }
  0x2f   : > { %980 = vmatpush1.msra.mxu0 %v5931_v53  ;;  %1013 = vmatprep.mubr.f32.mxu0 %v11840_v16 }
  0x30   : > { %1063 = vmatpush1.msra.mxu1 %v5933_v54  ;;  %1096 = vmatprep.mubr.f32.mxu1 %v11840_v16 }
  0x31   : > { %5949 = vmatmul.mubr.msk.f32.vlgmr.msra.gmra.mxu0 %vm532_vm1, %v908_v55  ;;  %5954 = vmatmul.mubr.msk.f32.vlgmr.msra.gmra.mxu1 %vm532_vm1, %v908_v55 }
  0x32   : > { %1019 = vmatprep.mubr.f32.mxu0 %v11840_v16  ;;  %1102 = vmatprep.mubr.f32.mxu1 %v11840_v16 }
  0x33   : > { %5973 = vmatprep.subr.msk.mxu0 %vm542_vm0, %v5970_v56  ;;  %5978 = vmatprep.subr.msk.mxu1 %vm542_vm0, %v5972_v57 }
  0x34   : > { %5974 = vmatpush1.msk.msra.mxu0 %vm542_vm0, %v5969_v58  ;;  %5979 = vmatpush1.msk.msra.mxu1 %vm542_vm0, %v5971_v59 }
  0x35   : > { %5950 = vmatmul.mubr.msk.f32.gmra.mxu0 %vm532_vm1, %v909_v60  ;;  %5955 = vmatmul.mubr.msk.f32.gmra.mxu1 %vm532_vm1, %v909_v60 }
  0x36   : > { %1194 = vmatprep.subr.mxu0 %v5966_v61  ;;  %1277 = vmatprep.subr.mxu1 %v5968_v62 }
  0x37   : > { %1025 = vmatprep.mubr.f32.mxu0 %v11840_v16  ;;  %1108 = vmatprep.mubr.f32.mxu1 %v11840_v16 }
  0x38   : > { %1195 = vmatpush1.msra.mxu0 %v5965_v63  ;;  %1278 = vmatpush1.msra.mxu1 %v5967_v0 }
  0x39   : > { %5951 = vmatmul.mubr.msk.f32.gmra.mxu0 %vm532_vm1, %v910_v1  ;;  %5956 = vmatmul.mubr.msk.f32.gmra.mxu1 %vm532_vm1, %v910_v1 }
  0x3a   : > { %1196 = vmatprep.subr.mxu0 %v5962_v2  ;;  %1279 = vmatprep.subr.mxu1 %v5964_v3 }
  0x3b   : > { %1197 = vmatpush1.msra.mxu0 %v5961_v4  ;;  %1280 = vmatpush1.msra.mxu1 %v5963_v5 }
  0x3c   : > { %1198 = vmatprep.subr.mxu0 %v5958_v6  ;;  %1281 = vmatprep.subr.mxu1 %v5960_v7 }
  0x3d   : > { %1199 = vmatpush1.msra.mxu0 %v5957_v8  ;;  %1232 = vmatprep.mubr.f32.mxu0 %v11840_v16 }
  0x3e   : > { %1282 = vmatpush1.msra.mxu1 %v5959_v9  ;;  %1315 = vmatprep.mubr.f32.mxu1 %v11840_v16  ;;  %v11839_v9 = vlaneseq }
  0x3f   : > { %5975 = vmatmul.mubr.msk.f32.vlgmr.msra.gmra.mxu0 %vm532_vm1, %v1127_v10  ;;  %5980 = vmatmul.mubr.msk.f32.vlgmr.msra.gmra.mxu1 %vm532_vm1, %v1127_v10 }
  0x40   : > { %1238 = vmatprep.mubr.f32.mxu0 %v11840_v16  ;;  %1321 = vmatprep.mubr.f32.mxu1 %v11840_v16 }
  0x41   : > { %5999 = vmatprep.subr.msk.mxu0 %vm542_vm0, %v5996_v11  ;;  %6004 = vmatprep.subr.msk.mxu1 %vm542_vm0, %v5998_v12 }
  0x42   : > { %6000 = vmatpush1.msk.msra.mxu0 %vm542_vm0, %v5995_v13  ;;  %6005 = vmatpush1.msk.msra.mxu1 %vm542_vm0, %v5997_v14  ;;  %v7298_v14 = vshrl.u32 %v11839_v9, 7 }
  0x43   : > { %5976 = vmatmul.mubr.msk.f32.gmra.mxu0 %vm532_vm1, %v1128_v15  ;;  %5981 = vmatmul.mubr.msk.f32.gmra.mxu1 %vm532_vm1, %v1128_v15 }
  0x44   : > { %1413 = vmatprep.subr.mxu0 %v5992_v17  ;;  %1496 = vmatprep.subr.mxu1 %v5994_v18  ;;  %11853 = vst [vmem:[#allocation7_spill] sm:$0xff] %v7298_v14 }
  0x45   : > { %1244 = vmatprep.mubr.f32.mxu0 %v11840_v16  ;;  %1327 = vmatprep.mubr.f32.mxu1 %v11840_v16 }
  0x46   : > { %1414 = vmatpush1.msra.mxu0 %v5991_v19  ;;  %1497 = vmatpush1.msra.mxu1 %v5993_v20  ;;  %v7301_v20 = vsub.s32 0, %v7298_v14 }
  0x47   : > { %5977 = vmatmul.mubr.msk.f32.gmra.mxu0 %vm532_vm1, %v1129_v21  ;;  %5982 = vmatmul.mubr.msk.f32.gmra.mxu1 %vm532_vm1, %v1129_v21  ;;  %v7304_v21 = vsub.s32 2, %v7298_v14 }
  0x48   : > { %1415 = vmatprep.subr.mxu0 %v5988_v22  ;;  %1498 = vmatprep.subr.mxu1 %v5990_v23  ;;  %11854 = vst [vmem:[#allocation8_spill] sm:$0xff] %v7301_v20  ;;  %v1565_v22 = vld [vmem:[%s11825_s2] sm:$0xf]  ;;  %v7310_v23 = vsub.s32 1, %v7298_v14 }
  0x49   : > { %1416 = vmatpush1.msra.mxu0 %v5987_v24  ;;  %1499 = vmatpush1.msra.mxu1 %v5989_v25  ;;  %11855 = vst [vmem:[#allocation9_spill] sm:$0xff] %v7304_v21  ;;  %v7313_v24 = vsub.s32 3, %v7298_v14 }
  0x4a   : > { %1417 = vmatprep.subr.mxu0 %v5984_v26  ;;  %1500 = vmatprep.subr.mxu1 %v5986_v27  ;;  %v7316_v26 = vrot.slane %v1565_v22, %v7301_v20 }
  0x4b   : > { %1418 = vmatpush1.msra.mxu0 %v5983_v28  ;;  %1451 = vmatprep.mubr.f32.mxu0 %v11840_v16  ;;  %11856 = vst [vmem:[#allocation10_spill] sm:$0xff] %v7313_v24  ;;  %v7319_v28 = vrot.slane %v1565_v22, %v7304_v21 }
  0x4c   : > { %1501 = vmatpush1.msra.mxu1 %v5985_v29  ;;  %1534 = vmatprep.mubr.f32.mxu1 %v11840_v16  ;;  %11857 = vst [vmem:[#allocation11_spill] sm:$0xff] %v7316_v26 }
  0x4d   : > { %6001 = vmatmul.mubr.msk.f32.vlgmr.msra.gmra.mxu0 %vm532_vm1, %v1346_v30  ;;  %6006 = vmatmul.mubr.msk.f32.vlgmr.msra.gmra.mxu1 %vm532_vm1, %v1346_v30 }
  0x4e   : > { %1457 = vmatprep.mubr.f32.mxu0 %v11840_v16  ;;  %1540 = vmatprep.mubr.f32.mxu1 %v11840_v16 }
  0x51   : > { %6002 = vmatmul.mubr.msk.f32.gmra.mxu0 %vm532_vm1, %v1347_v31  ;;  %6007 = vmatmul.mubr.msk.f32.gmra.mxu1 %vm532_vm1, %v1347_v31  ;;  %v7322_v31 = vrot.slane %v1565_v22, %v7310_v23 }
  0x52   : > { %1463 = vmatprep.mubr.f32.mxu0 %v11840_v16  ;;  %1546 = vmatprep.mubr.f32.mxu1 %v11840_v16 }
  0x55   : > { %6003 = vmatmul.mubr.msk.f32.gmra.mxu0 %vm532_vm1, %v1348_v32  ;;  %6008 = vmatmul.mubr.msk.f32.gmra.mxu1 %vm532_vm1, %v1348_v32  ;;  %v7325_v32 = vrot.slane %v1565_v22, %v7313_v24 }
  0x56   : > { %1684 = vmatprep.mubr.f32.mxu0 %v11840_v16  ;;  %1761 = vmatprep.mubr.f32.mxu1 %v11840_v16 }
  0xd5   : > { %v621_v33 = vpop.f32.mrf.mxu0  ;;  %v704_v34 = vpop.f32.mrf.mxu1 }
  0xd7   : > { %v623_v35 = vpop.f32.mrf.mxu0  ;;  %v706_v36 = vpop.f32.mrf.mxu1 }
  0xd9   : > { %v627_v37 = vpop.f32.mrf.mxu0  ;;  %v710_v38 = vpop.f32.mrf.mxu1 }
  0xdb   : > { %v7281_v39 = vpop.f32.mrf.mxu0  ;;  %v7283_v40 = vpop.f32.mrf.mxu1 }
  0xdd   : > { %v7285_v41 = vpop.f32.mrf.mxu0  ;;  %v7287_v42 = vpop.f32.mrf.mxu1 }
  0xdf   : > { %v7289_v43 = vpop.f32.mrf.mxu0  ;;  %v7291_v44 = vpop.f32.mrf.mxu1 }
  0xe0   : > { %11850 = vst [vmem:[#allocation4_spill] sm:$0xff] %v7291_v44 }
  0xe3   : > { %v808_v45 = vpop.f32.mrf.mxu0  ;;  %v891_v46 = vpop.f32.mrf.mxu1 }
  0xe4   : > { %v809_v29 = vadd.f32 %v808_v45, %v621_v33  ;;  %v892_v30 = vadd.f32 %v891_v46, %v704_v34 }
  0xe5   : > { %v810_v47 = vpop.f32.mrf.mxu0  ;;  %v893_v48 = vpop.f32.mrf.mxu1 }
  0xe6   : > { %v811_v9 = vadd.f32 %v810_v47, %v623_v35  ;;  %v894_v16 = vadd.f32 %v893_v48, %v706_v36 }
  0xe7   : > { %v814_v49 = vpop.f32.mrf.mxu0  ;;  %v897_v50 = vpop.f32.mrf.mxu1  ;;  %v11858_v45 = vld [vmem:[#allocation4_spill] sm:$0xff] }
  0xe8   : > { %v815_v14 = vadd.f32 %v814_v49, %v627_v37 }
  0xe9   : > { %v816_v51 = vpop.f32.mrf.mxu0  ;;  %v899_v52 = vpop.f32.mrf.mxu1 }
  0xea   : > { %v817_v20 = vadd.f32 %v816_v51, %v7281_v39  ;;  %v900_v26 = vadd.f32 %v899_v52, %v7283_v40 }
  0xeb   : > { %v820_v53 = vpop.f32.mrf.mxu0  ;;  %v903_v54 = vpop.f32.mrf.mxu1 }
  0xec   : > { %v821_v21 = vadd.f32 %v820_v53, %v7285_v41  ;;  %v904_v33 = vadd.f32 %v903_v54, %v7287_v42 }
  0xed   : > { %v822_v55 = vpop.f32.mrf.mxu0  ;;  %v905_v56 = vpop.f32.mrf.mxu1 }
  0xee   : > { %v823_v34 = vadd.f32 %v822_v55, %v7289_v43  ;;  %v906_v46 = vadd.f32 %v905_v56, %v11858_v45 }
  0xf1   : > { %v1015_v57 = vpop.f32.mrf.mxu0  ;;  %v1098_v58 = vpop.f32.mrf.mxu1 }
  0xf2   : > { %v1115_v22 = vadd.f32 %v1015_v57, %v809_v29  ;;  %v1117_v24 = vadd.f32 %v1098_v58, %v892_v30 }
  0xf3   : > { %v1017_v59 = vpop.f32.mrf.mxu0  ;;  %v1100_v60 = vpop.f32.mrf.mxu1 }
  0xf4   : > { %v1116_v37 = vadd.f32 %v1017_v59, %v811_v9 }
  0xf5   : > { %v1021_v61 = vpop.f32.mrf.mxu0  ;;  %v1104_v62 = vpop.f32.mrf.mxu1 }
  0xf6   : > { %v1119_v49 = vadd.f32 %v1021_v61, %v815_v14 }
  0xf7   : > { %v1023_v63 = vpop.f32.mrf.mxu0  ;;  %v1106_v0 = vpop.f32.mrf.mxu1 }
  0xf8   : > { %v1122_v40 = vadd.f32 %v1106_v0, %v900_v26 }
  0xf9   : > { %v1027_v1 = vpop.f32.mrf.mxu0  ;;  %v1110_v2 = vpop.f32.mrf.mxu1 }
  0xfa   : > { %v1123_v47 = vadd.f32 %v1027_v1, %v821_v21  ;;  %v1125_v48 = vadd.f32 %v1110_v2, %v904_v33 }
  0xfb   : > { %v1029_v3 = vpop.f32.mrf.mxu0  ;;  %v1112_v4 = vpop.f32.mrf.mxu1 }
  0xfc   : > { %v1124_v52 = vadd.f32 %v1029_v3, %v823_v34  ;;  %v1126_v42 = vadd.f32 %v1112_v4, %v906_v46 }
  0xff   : > { %v7293_v5 = vpop.f32.mrf.mxu0  ;;  %v7295_v6 = vpop.f32.mrf.mxu1 }
 0x100   : > { %11851 = vst [vmem:[#allocation5_spill] sm:$0xff] %v7293_v5  ;;  %11852 = vst [vmem:[#allocation6_spill] sm:$0xff] %v7295_v6  ;;  %v898_v6 = vadd.f32 %v897_v50, %v710_v38  ;;  %v1118_v38 = vadd.f32 %v1100_v60, %v894_v16  ;;  %v1120_v50 = vadd.f32 %v1023_v63, %v817_v20  ;;  %v11861_v20 = vld [vmem:[#allocation11_spill] sm:$0xff] }
 0x101   : > { %v1236_v7 = vpop.f32.mrf.mxu0  ;;  %v1319_v8 = vpop.f32.mrf.mxu1 }
 0x102   : > { %v1121_v39 = vadd.f32 %v1104_v62, %v898_v6  ;;  %v1335_v54 = vadd.f32 %v1236_v7, %v1116_v37  ;;  %v1337_v55 = vadd.f32 %v1319_v8, %v1118_v38 }
 0x103   : > { %v1240_v10 = vpop.f32.mrf.mxu0  ;;  %v1323_v11 = vpop.f32.mrf.mxu1 }
 0x104   : > { %v1338_v59 = vadd.f32 %v1240_v10, %v1119_v49  ;;  %v1340_v16 = vadd.f32 %v1323_v11, %v1121_v39  ;;  %v1612_v39 = vld [vmem:[%s11826_s3 + $0x8] sm:$0xf] }
 0x105   : > { %v1242_v12 = vpop.f32.mrf.mxu0  ;;  %v1325_v13 = vpop.f32.mrf.mxu1 }
 0x106   : > { %v1339_v56 = vadd.f32 %v1242_v12, %v1120_v50  ;;  %v1341_v57 = vadd.f32 %v1325_v13, %v1122_v40  ;;  %v11862_v50 = vmov 0.0   ;;  %v1774_v40 = vld [vmem:[%s11827_s4] sm:$0xff] }
 0x107   : > { %v1246_v15 = vpop.f32.mrf.mxu0  ;;  %v1329_v17 = vpop.f32.mrf.mxu1  ;;  %v11859_v3 = vld [vmem:[#allocation5_spill] sm:$0xff]  ;;  %v11860_v9 = vld [vmem:[#allocation6_spill] sm:$0xff] }
 0x108   : > { %v1342_v53 = vadd.f32 %v1246_v15, %v1123_v47  ;;  %v1344_v43 = vadd.f32 %v1329_v17, %v1125_v48  ;;  %v1334_v4 = vadd.f32 %v11859_v3, %v1115_v22  ;;  %v1336_v14 = vadd.f32 %v11860_v9, %v1117_v24  ;;  %v2029_v3 = vld [vmem:[%s11828_s5 + $0x2a8] sm:$0xff]  ;;  %v2028_v9 = vld [vmem:[%s11828_s5 + $0x2a0] sm:$0xff] }
 0x109   : > { %v1248_v18 = vpop.f32.mrf.mxu0  ;;  %v1331_v19 = vpop.f32.mrf.mxu1 }
 0x10a   : > { %v1343_v61 = vadd.f32 %v1248_v18, %v1124_v52  ;;  %v1345_v62 = vadd.f32 %v1331_v19, %v1126_v42  ;;  %v1974_v52 = vld [vmem:[%s11828_s5 + $0xf0] sm:$0xff] }
 0x10b   : > { %v2038_v42 = vld [vmem:[%s11828_s5 + $0x2f0] sm:$0xff] }
 0x10d   : > { %v1453_v25 = vpop.f32.mrf.mxu0  ;;  %v1536_v27 = vpop.f32.mrf.mxu1 }
 0x10e   : > { %v1553_v10 = vadd.f32 %v1453_v25, %v1334_v4  ;;  %v1555_v11 = vadd.f32 %v1536_v27, %v1336_v14  ;;  %v1964_v4 = vld [vmem:[%s11828_s5 + $0xa0] sm:$0xff]  ;;  %v1963_v14 = vld [vmem:[%s11828_s5 + $0x98] sm:$0xff] }
 0x10f   : > { %v1455_v5 = vpop.f32.mrf.mxu0  ;;  %v1538_v44 = vpop.f32.mrf.mxu1 }
 0x110   : > { %v1554_v12 = vadd.f32 %v1455_v5, %v1335_v54  ;;  %v1556_v13 = vadd.f32 %v1538_v44, %v1337_v55  ;;  %v1587_v45 = vadd.f32 %v11861_v20, %v1553_v10  ;;  %v1589_v46 = vadd.f32 %v7319_v28, %v1555_v11  ;;  %v2037_v54 = vld [vmem:[%s11828_s5 + $0x2e8] sm:$0xff]  ;;  %v1972_v55 = vld [vmem:[%s11828_s5 + $0xe0] sm:$0xff]  ;;  %v1959_v11 = vld [vmem:[%s11828_s5 + $0x78] sm:$0xff] }
 0x111   : > { %v1459_v35 = vpop.f32.mrf.mxu0  ;;  %v1542_v36 = vpop.f32.mrf.mxu1  ;;  %v2024_v10 = vld [vmem:[%s11828_s5 + $0x280] sm:$0xff] }
 0x112   : > { %v1557_v7 = vadd.f32 %v1459_v35, %v1338_v59  ;;  %v1559_v8 = vadd.f32 %v1542_v36, %v1340_v16  ;;  %v1588_v5 = vadd.f32 %v7322_v31, %v1554_v12  ;;  %v1590_v25 = vadd.f32 %v7325_v32, %v1556_v13  ;;  %v2034_v59 = vld [vmem:[%s11828_s5 + $0x2d0] sm:$0xff]  ;;  %v1969_v16 = vld [vmem:[%s11828_s5 + $0xc8] sm:$0xff] }
 0x113   : > { %v1461_v51 = vpop.f32.mrf.mxu0  ;;  %v1544_v41 = vpop.f32.mrf.mxu1  ;;  %v1601_v49 = vmax.f32 %v1589_v46, 0.0  ;;  %v2026_v12 = vld [vmem:[%s11828_s5 + $0x290] sm:$0xff]  ;;  %v1961_v13 = vld [vmem:[%s11828_s5 + $0x88] sm:$0xff]  ;;  %v2016_v46 = vld [vmem:[%s11828_s5 + $0x240] sm:$0xff] }
 0x114   : > { %v1558_v63 = vadd.f32 %v1461_v51, %v1339_v56  ;;  %v1560_v0 = vadd.f32 %v1544_v41, %v1341_v57  ;;  %v1591_v33 = vadd.f32 %v11861_v20, %v1557_v7  ;;  %v1593_v44 = vadd.f32 %v7319_v28, %v1559_v8  ;;  %v1975_v51 = vld [vmem:[%s11828_s5 + $0xf8] sm:$0xff]  ;;  %v2036_v56 = vld [vmem:[%s11828_s5 + $0x2e0] sm:$0xff]  ;;  %v1962_v8 = vld [vmem:[%s11828_s5 + $0x90] sm:$0xff] }
 0x115   : > { %v1465_v58 = vpop.f32.mrf.mxu0  ;;  %v1548_v29 = vpop.f32.mrf.mxu1  ;;  %v1600_v48 = vmax.f32 %v1588_v5, 0.0  ;;  %v2039_v41 = vld [vmem:[%s11828_s5 + $0x2f8] sm:$0xff]  ;;  %v1954_v5 = vld [vmem:[%s11828_s5 + $0x50] sm:$0xff] }
 0x116   : > { %v1561_v60 = vadd.f32 %v1465_v58, %v1342_v53  ;;  %v1563_v1 = vadd.f32 %v1548_v29, %v1344_v43  ;;  %v1592_v19 = vadd.f32 %v7322_v31, %v1558_v63  ;;  %v1594_v26 = vadd.f32 %v7325_v32, %v1560_v0  ;;  %v1775_v53 = vld [vmem:[%s11827_s4 + $0x8] sm:$0xf]  ;;  %v1971_v57 = vld [vmem:[%s11828_s5 + $0xd8] sm:$0xff]  ;;  %v1970_v29 = vld [vmem:[%s11828_s5 + $0xd0] sm:$0xff] }
 0x117   : > { %v1467_v2 = vpop.f32.mrf.mxu0  ;;  %v1550_v6 = vpop.f32.mrf.mxu1  ;;  %v1603_v38 = vmax.f32 %v1591_v33, 0.0  ;;  %v1605_v47 = vmax.f32 %v1593_v44, 0.0  ;;  %v1973_v43 = vld [vmem:[%s11828_s5 + $0xe8] sm:$0xff]  ;;  %v2035_v58 = vld [vmem:[%s11828_s5 + $0x2d8] sm:$0xff]  ;;  %v1966_v0 = vld [vmem:[%s11828_s5 + $0xb0] sm:$0xff] }
 0x118   : > { %v1562_v15 = vadd.f32 %v1467_v2, %v1343_v61  ;;  %v1564_v17 = vadd.f32 %v1550_v6, %v1345_v62  ;;  %v1595_v21 = vadd.f32 %v11861_v20, %v1561_v60  ;;  %v1597_v18 = vadd.f32 %v7319_v28, %v1563_v1  ;;  %v1611_v28 = vld [vmem:[%s11826_s3] sm:$0xff]  ;;  %v2033_v60 = vld [vmem:[%s11828_s5 + $0x2c8] sm:$0xff]  ;;  %v1967_v62 = vld [vmem:[%s11828_s5 + $0xb8] sm:$0xff] }
 0x119   : > { %v1604_v36 = vmax.f32 %v1592_v19, 0.0  ;;  %v1606_v37 = vmax.f32 %v1594_v26, 0.0  ;;  %v1968_v1 = vld [vmem:[%s11828_s5 + $0xc0] sm:$0xff]  ;;  %v2031_v63 = vld [vmem:[%s11828_s5 + $0x2b8] sm:$0xff]  ;;  %v2030_v2 = vld [vmem:[%s11828_s5 + $0x2b0] sm:$0xff] }
 0x11a   : > { %v1596_v30 = vadd.f32 %v7322_v31, %v1562_v15  ;;  %v1598_v24 = vadd.f32 %v7325_v32, %v1564_v17  ;;  %v1607_v22 = vmax.f32 %v1595_v21, 0.0  ;;  %v1609_v35 = vmax.f32 %v1597_v18, 0.0  ;;  %v2032_v61 = vld [vmem:[%s11828_s5 + $0x2c0] sm:$0xff]  ;;  %v1965_v6 = vld [vmem:[%s11828_s5 + $0xa8] sm:$0xff]  ;;  %v2027_v7 = vld [vmem:[%s11828_s5 + $0x298] sm:$0xff] }
 0x11b   : > { %v1602_v31 = vmax.f32 %v1590_v25, 0.0  ;;  %v1599_v32 = vmax.f32 %v1587_v45, 0.0  ;;  %v2025_v15 = vld [vmem:[%s11828_s5 + $0x288] sm:$0xff]  ;;  %v1960_v17 = vld [vmem:[%s11828_s5 + $0x80] sm:$0xff]  ;;  %v2023_v20 = vld [vmem:[%s11828_s5 + $0x278] sm:$0xff] }
 0x11c   : > { %v1608_v27 = vmax.f32 %v1596_v30, 0.0  ;;  %v1610_v34 = vmax.f32 %v1598_v24, 0.0  ;;  %v1958_v21 = vld [vmem:[%s11828_s5 + $0x70] sm:$0xff]  ;;  %v1957_v19 = vld [vmem:[%s11828_s5 + $0x68] sm:$0xff]  ;;  %v1956_v30 = vld [vmem:[%s11828_s5 + $0x60] sm:$0xff] }
 0x11d   : > { %v2022_v18 = vld [vmem:[%s11828_s5 + $0x270] sm:$0xff]  ;;  %v2021_v26 = vld [vmem:[%s11828_s5 + $0x268] sm:$0xff]  ;;  %v2020_v24 = vld [vmem:[%s11828_s5 + $0x260] sm:$0xff] }
 0x11e   : > { %1646 = vmatprep.subr.mxu0 %v1608_v27  ;;  %1723 = vmatprep.subr.mxu1 %v1610_v34  ;;  %v1955_v33 = vld [vmem:[%s11828_s5 + $0x58] sm:$0xff]  ;;  %v2018_v25 = vld [vmem:[%s11828_s5 + $0x250] sm:$0xff]  ;;  %v1952_v45 = vld [vmem:[%s11828_s5 + $0x40] sm:$0xff] }
 0x11f   : > { %1647 = vmatpush1.msra.mxu0 %v1607_v22  ;;  %1724 = vmatpush1.msra.mxu1 %v1609_v35  ;;  %v2019_v44 = vld [vmem:[%s11828_s5 + $0x258] sm:$0xff] }
 0x120   : > { %1648 = vmatprep.subr.mxu0 %v1604_v36  ;;  %1725 = vmatprep.subr.mxu1 %v1606_v37 }
 0x121   : > { %1649 = vmatpush1.msra.mxu0 %v1603_v38  ;;  %1726 = vmatpush1.msra.mxu1 %v1605_v47 }
 0x122   : > { %1650 = vmatprep.subr.mxu0 %v1600_v48  ;;  %1727 = vmatprep.subr.mxu1 %v1602_v31 }
 0x123   : > { %1651 = vmatpush1.msra.mxu0 %v1599_v32  ;;  %1728 = vmatpush1.msra.mxu1 %v1601_v49 }
 0x124   : > { %6009 = vmatmul.mubr.msk.f32.vlgmr.msra.gmra.mxu0 %vm1613_vm2, %v1611_v28  ;;  %6011 = vmatmul.mubr.msk.f32.vlgmr.msra.gmra.mxu1 %vm1613_vm2, %v1611_v28  ;;  %v1946_v28 = vld [vmem:[%s11828_s5 + $0x10] sm:$0xff] }
 0x125   : > { %1808 = vmatprep.subr.mxu0 %v1608_v27  ;;  %1885 = vmatprep.subr.mxu1 %v1610_v34  ;;  %v1953_v27 = vld [vmem:[%s11828_s5 + $0x48] sm:$0xff] }
 0x126   : > { %1809 = vmatpush1.msra.mxu0 %v1607_v22  ;;  %1886 = vmatpush1.msra.mxu1 %v1609_v35  ;;  %v2017_v34 = vld [vmem:[%s11828_s5 + $0x248] sm:$0xff]  ;;  %v1951_v22 = vld [vmem:[%s11828_s5 + $0x38] sm:$0xff] }
 0x127   : > { %1810 = vmatprep.subr.mxu0 %v1604_v36  ;;  %1887 = vmatprep.subr.mxu1 %v1606_v37  ;;  %v2015_v35 = vld [vmem:[%s11828_s5 + $0x238] sm:$0xff]  ;;  %v1950_v36 = vld [vmem:[%s11828_s5 + $0x30] sm:$0xff] }
 0x128   : > { %1690 = vmatprep.mubr.f32.mxu0 %v11862_v50  ;;  %1767 = vmatprep.mubr.f32.mxu1 %v11862_v50  ;;  %v2014_v37 = vld [vmem:[%s11828_s5 + $0x230] sm:$0xff] }
 0x129   : > { %1811 = vmatpush1.msra.mxu0 %v1603_v38  ;;  %1888 = vmatpush1.msra.mxu1 %v1605_v47  ;;  %v1949_v38 = vld [vmem:[%s11828_s5 + $0x28] sm:$0xff] }
 0x12a   : > { %6010 = vmatmul.mubr.msk.f32.gmra.mxu0 %vm1613_vm2, %v1612_v39  ;;  %6012 = vmatmul.mubr.msk.f32.gmra.mxu1 %vm1613_vm2, %v1612_v39  ;;  %v2013_v47 = vld [vmem:[%s11828_s5 + $0x228] sm:$0xff]  ;;  %v2010_v39 = vld [vmem:[%s11828_s5 + $0x210] sm:$0xff] }
 0x12b   : > { %1812 = vmatprep.subr.mxu0 %v1600_v48  ;;  %1889 = vmatprep.subr.mxu1 %v1602_v31  ;;  %v1948_v48 = vld [vmem:[%s11828_s5 + $0x20] sm:$0xff] }
 0x12c   : > { %1813 = vmatpush1.msra.mxu0 %v1599_v32  ;;  %1890 = vmatpush1.msra.mxu1 %v1601_v49  ;;  %v2012_v31 = vld [vmem:[%s11828_s5 + $0x220] sm:$0xff]  ;;  %v1947_v32 = vld [vmem:[%s11828_s5 + $0x18] sm:$0xff] }
 0x12d   : > { %1846 = vmatprep.mubr.f32.mxu0 %v11862_v50  ;;  %1923 = vmatprep.mubr.f32.mxu1 %v11862_v50  ;;  %v2011_v49 = vld [vmem:[%s11828_s5 + $0x218] sm:$0xff] }
 0x12e   : > { %6013 = vmatmul.mubr.msk.f32.vlgmr.msra.gmra.mxu0 %vm1613_vm2, %v1774_v40  ;;  %6015 = vmatmul.mubr.msk.f32.vlgmr.msra.gmra.mxu1 %vm1613_vm2, %v1774_v40  ;;  %v1945_v40 = vld [vmem:[%s11828_s5 + $0x8] sm:$0xff] }
 0x12f   : > { %1852 = vmatprep.mubr.f32.mxu0 %v11862_v50  ;;  %1929 = vmatprep.mubr.f32.mxu1 %v11862_v50 }
 0x130   : > { %2071 = vmatprep.subr.mxu0 %v1975_v51  ;;  %2148 = vmatprep.subr.mxu1 %v2039_v41  ;;  %v2009_v51 = vld [vmem:[%s11828_s5 + $0x208] sm:$0xff]  ;;  %v1944_v41 = vld [vmem:[%s11828_s5] sm:$0xff] }
 0x131   : > { %2072 = vmatpush1.msra.mxu0 %v1974_v52  ;;  %2149 = vmatpush1.msra.mxu1 %v2038_v42  ;;  %v2008_v52 = vld [vmem:[%s11828_s5 + $0x200] sm:$0xff]  ;;  %v2007_v42 = vld [vmem:[%s11828_s5 + $0x1f8] sm:$0xff] }
 0x132   : > { %6014 = vmatmul.mubr.msk.f32.gmra.mxu0 %vm1613_vm2, %v1775_v53  ;;  %6016 = vmatmul.mubr.msk.f32.gmra.mxu1 %vm1613_vm2, %v1775_v53  ;;  %v2063_v53 = vld [vmem:[%s11828_s5 + $0x3b8] sm:$0xff] }
 0x133   : > { %2073 = vmatprep.subr.mxu0 %v1973_v43  ;;  %2150 = vmatprep.subr.mxu1 %v2037_v54  ;;  %v2006_v43 = vld [vmem:[%s11828_s5 + $0x1f0] sm:$0xff] }
 0x134   : > { %2074 = vmatpush1.msra.mxu0 %v1972_v55  ;;  %2151 = vmatpush1.msra.mxu1 %v2036_v56  ;;  %v2062_v54 = vld [vmem:[%s11828_s5 + $0x3b0] sm:$0xff]  ;;  %v2005_v55 = vld [vmem:[%s11828_s5 + $0x1e8] sm:$0xff] }
 0x135   : > { %2075 = vmatprep.subr.mxu0 %v1971_v57  ;;  %2152 = vmatprep.subr.mxu1 %v2035_v58  ;;  %v2061_v56 = vld [vmem:[%s11828_s5 + $0x3a8] sm:$0xff]  ;;  %v2004_v57 = vld [vmem:[%s11828_s5 + $0x1e0] sm:$0xff] }
 0x136   : > { %2076 = vmatpush1.msra.mxu0 %v1970_v29  ;;  %2153 = vmatpush1.msra.mxu1 %v2034_v59  ;;  %v2060_v58 = vld [vmem:[%s11828_s5 + $0x3a0] sm:$0xff]  ;;  %v2003_v29 = vld [vmem:[%s11828_s5 + $0x1d8] sm:$0xff] }
 0x137   : > { %2077 = vmatprep.subr.mxu0 %v1969_v16  ;;  %2154 = vmatprep.subr.mxu1 %v2033_v60  ;;  %v2059_v59 = vld [vmem:[%s11828_s5 + $0x398] sm:$0xff]  ;;  %v2002_v16 = vld [vmem:[%s11828_s5 + $0x1d0] sm:$0xff] }
 0x138   : > { %2078 = vmatpush1.msra.mxu0 %v1968_v1  ;;  %2155 = vmatpush1.msra.mxu1 %v2032_v61  ;;  %v2058_v60 = vld [vmem:[%s11828_s5 + $0x390] sm:$0xff]  ;;  %v2001_v1 = vld [vmem:[%s11828_s5 + $0x1c8] sm:$0xff] }
 0x139   : > { %2079 = vmatprep.subr.mxu0 %v1967_v62  ;;  %2156 = vmatprep.subr.mxu1 %v2031_v63  ;;  %v2057_v61 = vld [vmem:[%s11828_s5 + $0x388] sm:$0xff]  ;;  %v2000_v62 = vld [vmem:[%s11828_s5 + $0x1c0] sm:$0xff] }
 0x13a   : > { %2080 = vmatpush1.msra.mxu0 %v1966_v0  ;;  %2157 = vmatpush1.msra.mxu1 %v2030_v2  ;;  %v2056_v63 = vld [vmem:[%s11828_s5 + $0x380] sm:$0xff]  ;;  %v1999_v0 = vld [vmem:[%s11828_s5 + $0x1b8] sm:$0xff] }
 0x13b   : > { %2081 = vmatprep.subr.mxu0 %v1965_v6  ;;  %2158 = vmatprep.subr.mxu1 %v2029_v3  ;;  %v2055_v2 = vld [vmem:[%s11828_s5 + $0x378] sm:$0xff]  ;;  %v1998_v6 = vld [vmem:[%s11828_s5 + $0x1b0] sm:$0xff] }
 0x13c   : > { %2082 = vmatpush1.msra.mxu0 %v1964_v4  ;;  %2159 = vmatpush1.msra.mxu1 %v2028_v9  ;;  %v2054_v3 = vld [vmem:[%s11828_s5 + $0x370] sm:$0xff]  ;;  %v1997_v4 = vld [vmem:[%s11828_s5 + $0x1a8] sm:$0xff] }
 0x13d   : > { %2083 = vmatprep.subr.mxu0 %v1963_v14  ;;  %2160 = vmatprep.subr.mxu1 %v2027_v7  ;;  %v2053_v9 = vld [vmem:[%s11828_s5 + $0x368] sm:$0xff]  ;;  %v1996_v14 = vld [vmem:[%s11828_s5 + $0x1a0] sm:$0xff]  ;;  %v1995_v7 = vld [vmem:[%s11828_s5 + $0x198] sm:$0xff] }
 0x13e   : > { %2084 = vmatpush1.msra.mxu0 %v1962_v8  ;;  %2161 = vmatpush1.msra.mxu1 %v2026_v12  ;;  %v1994_v8 = vld [vmem:[%s11828_s5 + $0x190] sm:$0xff]  ;;  %v1993_v12 = vld [vmem:[%s11828_s5 + $0x188] sm:$0xff] }
 0x13f   : > { %2085 = vmatprep.subr.mxu0 %v1961_v13  ;;  %2162 = vmatprep.subr.mxu1 %v2025_v15  ;;  %v1992_v13 = vld [vmem:[%s11828_s5 + $0x180] sm:$0xff]  ;;  %v1991_v15 = vld [vmem:[%s11828_s5 + $0x178] sm:$0xff] }
 0x140   : > { %2086 = vmatpush1.msra.mxu0 %v1960_v17  ;;  %2163 = vmatpush1.msra.mxu1 %v2024_v10  ;;  %v1990_v17 = vld [vmem:[%s11828_s5 + $0x170] sm:$0xff]  ;;  %v1989_v10 = vld [vmem:[%s11828_s5 + $0x168] sm:$0xff] }
 0x141   : > { %2087 = vmatprep.subr.mxu0 %v1959_v11  ;;  %2164 = vmatprep.subr.mxu1 %v2023_v20  ;;  %v1988_v11 = vld [vmem:[%s11828_s5 + $0x160] sm:$0xff] }
 0x142   : > { %2088 = vmatpush1.msra.mxu0 %v1958_v21  ;;  %2165 = vmatpush1.msra.mxu1 %v2022_v18  ;;  %v2052_v20 = vld [vmem:[%s11828_s5 + $0x360] sm:$0xff]  ;;  %v1987_v21 = vld [vmem:[%s11828_s5 + $0x158] sm:$0xff] }
 0x143   : > { %2089 = vmatprep.subr.mxu0 %v1957_v19  ;;  %2166 = vmatprep.subr.mxu1 %v2021_v26  ;;  %v2051_v18 = vld [vmem:[%s11828_s5 + $0x358] sm:$0xff]  ;;  %v1986_v19 = vld [vmem:[%s11828_s5 + $0x150] sm:$0xff] }
 0x144   : > { %2090 = vmatpush1.msra.mxu0 %v1956_v30  ;;  %2167 = vmatpush1.msra.mxu1 %v2020_v24  ;;  %v2050_v26 = vld [vmem:[%s11828_s5 + $0x350] sm:$0xff]  ;;  %v1985_v30 = vld [vmem:[%s11828_s5 + $0x148] sm:$0xff] }
 0x145   : > { %2091 = vmatprep.subr.mxu0 %v1955_v33  ;;  %2168 = vmatprep.subr.mxu1 %v2019_v44  ;;  %v2049_v24 = vld [vmem:[%s11828_s5 + $0x348] sm:$0xff]  ;;  %v1984_v33 = vld [vmem:[%s11828_s5 + $0x140] sm:$0xff] }
 0x146   : > { %2092 = vmatpush1.msra.mxu0 %v1954_v5  ;;  %2169 = vmatpush1.msra.mxu1 %v2018_v25  ;;  %v2048_v44 = vld [vmem:[%s11828_s5 + $0x340] sm:$0xff]  ;;  %v1983_v5 = vld [vmem:[%s11828_s5 + $0x138] sm:$0xff] }
 0x147   : > { %2093 = vmatprep.subr.mxu0 %v1953_v27  ;;  %2170 = vmatprep.subr.mxu1 %v2017_v34  ;;  %v2047_v25 = vld [vmem:[%s11828_s5 + $0x338] sm:$0xff]  ;;  %v1982_v27 = vld [vmem:[%s11828_s5 + $0x130] sm:$0xff] }
 0x148   : > { %2094 = vmatpush1.msra.mxu0 %v1952_v45  ;;  %2171 = vmatpush1.msra.mxu1 %v2016_v46  ;;  %v2046_v34 = vld [vmem:[%s11828_s5 + $0x330] sm:$0xff]  ;;  %v1981_v45 = vld [vmem:[%s11828_s5 + $0x128] sm:$0xff] }
 0x149   : > { %2095 = vmatprep.subr.mxu0 %v1951_v22  ;;  %2172 = vmatprep.subr.mxu1 %v2015_v35  ;;  %v2045_v46 = vld [vmem:[%s11828_s5 + $0x328] sm:$0xff]  ;;  %v1980_v22 = vld [vmem:[%s11828_s5 + $0x120] sm:$0xff] }
 0x14a   : > { %2096 = vmatpush1.msra.mxu0 %v1950_v36  ;;  %2173 = vmatpush1.msra.mxu1 %v2014_v37  ;;  %v2044_v35 = vld [vmem:[%s11828_s5 + $0x320] sm:$0xff]  ;;  %v1979_v36 = vld [vmem:[%s11828_s5 + $0x118] sm:$0xff] }
 0x14b   : > { %2097 = vmatprep.subr.mxu0 %v1949_v38  ;;  %2174 = vmatprep.subr.mxu1 %v2013_v47  ;;  %v2043_v37 = vld [vmem:[%s11828_s5 + $0x318] sm:$0xff]  ;;  %v1978_v38 = vld [vmem:[%s11828_s5 + $0x110] sm:$0xff] }
 0x14c   : > { %2098 = vmatpush1.msra.mxu0 %v1948_v48  ;;  %2175 = vmatpush1.msra.mxu1 %v2012_v31  ;;  %v2042_v47 = vld [vmem:[%s11828_s5 + $0x310] sm:$0xff]  ;;  %v1977_v48 = vld [vmem:[%s11828_s5 + $0x108] sm:$0xff] }
 0x14d   : > { %2099 = vmatprep.subr.mxu0 %v1947_v32  ;;  %2176 = vmatprep.subr.mxu1 %v2011_v49  ;;  %v2041_v31 = vld [vmem:[%s11828_s5 + $0x308] sm:$0xff]  ;;  %v1976_v32 = vld [vmem:[%s11828_s5 + $0x100] sm:$0xff] }
 0x14e   : > { %2100 = vmatpush1.msra.mxu0 %v1946_v28  ;;  %2177 = vmatpush1.msra.mxu1 %v2010_v39  ;;  %v2040_v49 = vld [vmem:[%s11828_s5 + $0x300] sm:$0xff]  ;;  %v2256_v28 = vld [vmem:[%s11829_s6 + $0xf8] sm:$0xff] }
 0x14f   : > { %2101 = vmatprep.subr.mxu0 %v1945_v40  ;;  %2178 = vmatprep.subr.mxu1 %v2009_v51  ;;  %v2320_v39 = vld [vmem:[%s11829_s6 + $0x2f8] sm:$0xff] }
 0x150   : > { %2102 = vmatpush1.msra.mxu0 %v1944_v41  ;;  %2179 = vmatpush1.msra.mxu1 %v2008_v52 }
 0x151   : > { %2103 = vmatprep.subr.mxu0 %v2007_v42  ;;  %2188 = vmatprep.subr.mxu1 %v2063_v53 }
 0x152   : > { %2104 = vmatpush2.msra.mxu0 %v2006_v43  ;;  %2189 = vmatpush2.msra.mxu1 %v2062_v54 }
 0x153   : > { %2105 = vmatprep.subr.mxu0 %v2005_v55  ;;  %2190 = vmatprep.subr.mxu1 %v2061_v56 }
 0x154   : > { %2106 = vmatpush2.msra.mxu0 %v2004_v57  ;;  %2191 = vmatpush2.msra.mxu1 %v2060_v58 }
 0x155   : > { %2107 = vmatprep.subr.mxu0 %v2003_v29  ;;  %2192 = vmatprep.subr.mxu1 %v2059_v59 }
 0x156   : > { %2108 = vmatpush2.msra.mxu0 %v2002_v16  ;;  %2193 = vmatpush2.msra.mxu1 %v2058_v60 }
 0x157   : > { %2109 = vmatprep.subr.mxu0 %v2001_v1  ;;  %2194 = vmatprep.subr.mxu1 %v2057_v61 }
 0x158   : > { %2110 = vmatpush2.msra.mxu0 %v2000_v62  ;;  %2195 = vmatpush2.msra.mxu1 %v2056_v63  ;;  %v2255_v62 = vld [vmem:[%s11829_s6 + $0xf0] sm:$0xff] }
 0x159   : > { %2111 = vmatprep.subr.mxu0 %v1999_v0  ;;  %2196 = vmatprep.subr.mxu1 %v2055_v2  ;;  %v2319_v63 = vld [vmem:[%s11829_s6 + $0x2f0] sm:$0xff]  ;;  %v2254_v0 = vld [vmem:[%s11829_s6 + $0xe8] sm:$0xff] }
 0x15a   : > { %2112 = vmatpush2.msra.mxu0 %v1998_v6  ;;  %2197 = vmatpush2.msra.mxu1 %v2054_v3  ;;  %v2318_v2 = vld [vmem:[%s11829_s6 + $0x2e8] sm:$0xff] }
 0x15b   : > { %2113 = vmatprep.subr.mxu0 %v1997_v4  ;;  %2198 = vmatprep.subr.mxu1 %v2053_v9  ;;  %v2253_v4 = vld [vmem:[%s11829_s6 + $0xe0] sm:$0xff] }
 0x15c   : > { %2114 = vmatpush2.msra.mxu0 %v1996_v14  ;;  %2199 = vmatpush2.msra.mxu1 %v2052_v20  ;;  %v2317_v9 = vld [vmem:[%s11829_s6 + $0x2e0] sm:$0xff]  ;;  %v2314_v20 = vld [vmem:[%s11829_s6 + $0x2c8] sm:$0xff] }
 0x15d   : > { %2115 = vmatprep.subr.mxu0 %v1995_v7  ;;  %2200 = vmatprep.subr.mxu1 %v2051_v18  ;;  %v2313_v18 = vld [vmem:[%s11829_s6 + $0x2c0] sm:$0xff] }
 0x15e   : > { %2116 = vmatpush2.msra.mxu0 %v1994_v8  ;;  %2201 = vmatpush2.msra.mxu1 %v2050_v26  ;;  %v2252_v8 = vld [vmem:[%s11829_s6 + $0xd8] sm:$0xff] }
 0x15f   : > { %2117 = vmatprep.subr.mxu0 %v1993_v12  ;;  %2202 = vmatprep.subr.mxu1 %v2049_v24  ;;  %v2316_v12 = vld [vmem:[%s11829_s6 + $0x2d8] sm:$0xff]  ;;  %v2311_v24 = vld [vmem:[%s11829_s6 + $0x2b0] sm:$0xff] }
 0x160   : > { %2118 = vmatpush2.msra.mxu0 %v1992_v13  ;;  %2203 = vmatpush2.msra.mxu1 %v2048_v44  ;;  %v2312_v26 = vld [vmem:[%s11829_s6 + $0x2b8] sm:$0xff]  ;;  %v2310_v44 = vld [vmem:[%s11829_s6 + $0x2a8] sm:$0xff] }
 0x161   : > { %2119 = vmatprep.subr.mxu0 %v1991_v15  ;;  %2204 = vmatprep.subr.mxu1 %v2047_v25  ;;  %v2309_v25 = vld [vmem:[%s11829_s6 + $0x2a0] sm:$0xff] }
 0x162   : > { %2120 = vmatpush2.msra.mxu0 %v1990_v17  ;;  %2205 = vmatpush2.msra.mxu1 %v2046_v34  ;;  %v2251_v17 = vld [vmem:[%s11829_s6 + $0xd0] sm:$0xff]  ;;  %v2308_v34 = vld [vmem:[%s11829_s6 + $0x298] sm:$0xff] }
 0x163   : > { %2121 = vmatprep.subr.mxu0 %v1989_v10  ;;  %2206 = vmatprep.subr.mxu1 %v2045_v46  ;;  %v2315_v10 = vld [vmem:[%s11829_s6 + $0x2d0] sm:$0xff] }
 0x164   : > { %2122 = vmatpush2.msra.mxu0 %v1988_v11  ;;  %2207 = vmatpush2.msra.mxu1 %v2044_v35  ;;  %v2250_v11 = vld [vmem:[%s11829_s6 + $0xc8] sm:$0xff]  ;;  %v2307_v46 = vld [vmem:[%s11829_s6 + $0x290] sm:$0xff] }
 0x165   : > { %2123 = vmatprep.subr.mxu0 %v1987_v21  ;;  %2208 = vmatprep.subr.mxu1 %v2043_v37  ;;  %v2249_v21 = vld [vmem:[%s11829_s6 + $0xc0] sm:$0xff]  ;;  %v2306_v35 = vld [vmem:[%s11829_s6 + $0x288] sm:$0xff] }
 0x166   : > { %2124 = vmatpush2.msra.mxu0 %v1986_v19  ;;  %2209 = vmatpush2.msra.mxu1 %v2042_v47  ;;  %v2248_v19 = vld [vmem:[%s11829_s6 + $0xb8] sm:$0xff]  ;;  %v2305_v37 = vld [vmem:[%s11829_s6 + $0x280] sm:$0xff] }
 0x167   : > { %2125 = vmatprep.subr.mxu0 %v1985_v30  ;;  %2210 = vmatprep.subr.mxu1 %v2041_v31  ;;  %v2247_v30 = vld [vmem:[%s11829_s6 + $0xb0] sm:$0xff]  ;;  %v2304_v47 = vld [vmem:[%s11829_s6 + $0x278] sm:$0xff] }
 0x168   : > { %2126 = vmatpush2.msra.mxu0 %v1984_v33  ;;  %2211 = vmatpush2.msra.mxu1 %v2040_v49  ;;  %v2246_v33 = vld [vmem:[%s11829_s6 + $0xa8] sm:$0xff]  ;;  %v2303_v31 = vld [vmem:[%s11829_s6 + $0x270] sm:$0xff] }
 0x169   : > { %2127 = vmatprep.subr.mxu0 %v1983_v5  ;;  %2345 = vmatprep.subr.mxu1 %v2256_v28  ;;  %v2245_v5 = vld [vmem:[%s11829_s6 + $0xa0] sm:$0xff]  ;;  %v2302_v49 = vld [vmem:[%s11829_s6 + $0x268] sm:$0xff] }
 0x16a   : > { %2128 = vmatpush2.msra.mxu0 %v1982_v27  ;;  %v2244_v27 = vld [vmem:[%s11829_s6 + $0x98] sm:$0xff]  ;;  %v2237_v28 = vld [vmem:[%s11829_s6 + $0x60] sm:$0xff] }
 0x16b   : > { %2129 = vmatprep.subr.mxu0 %v1981_v45  ;;  %v2243_v45 = vld [vmem:[%s11829_s6 + $0x90] sm:$0xff] }
 0x16c   : > { %2130 = vmatpush2.msra.mxu0 %v1980_v22  ;;  %v2242_v22 = vld [vmem:[%s11829_s6 + $0x88] sm:$0xff] }
 0x16d   : > { %2131 = vmatprep.subr.mxu0 %v1979_v36  ;;  %v2241_v36 = vld [vmem:[%s11829_s6 + $0x80] sm:$0xff] }
 0x16e   : > { %2132 = vmatpush2.msra.mxu0 %v1978_v38  ;;  %v2240_v38 = vld [vmem:[%s11829_s6 + $0x78] sm:$0xff] }
 0x16f   : > { %2133 = vmatprep.subr.mxu0 %v1977_v48  ;;  %v2239_v48 = vld [vmem:[%s11829_s6 + $0x70] sm:$0xff] }
 0x170   : > { %2134 = vmatpush2.msra.mxu0 %v1976_v32  ;;  %v2238_v32 = vld [vmem:[%s11829_s6 + $0x68] sm:$0xff] }
 0x171   : > { %2422 = vmatprep.subr.mxu0 %v2320_v39  ;;  %v2301_v39 = vld [vmem:[%s11829_s6 + $0x260] sm:$0xff] }
 0x1e4   : > { %v1686_v40 = vpop.f32.mrf.mxu0  ;;  %v1763_v51 = vpop.f32.mrf.mxu1 }
 0x1e6   : > { %v1688_v41 = vpop.f32.mrf.mxu0  ;;  %v1765_v52 = vpop.f32.mrf.mxu1 }
 0x1ea   : > { %v1692_v42 = vpop.f32.mrf.mxu0  ;;  %v1769_v53 = vpop.f32.mrf.mxu1 }
 0x1ec   : > { %v1694_v43 = vpop.f32.mrf.mxu0  ;;  %v1771_v54 = vpop.f32.mrf.mxu1 }
 0x1ee   : > { %v1848_v55 = vpop.f32.mrf.mxu0  ;;  %v1925_v56 = vpop.f32.mrf.mxu1 }
 0x1ef   : > { %v7739_v16 = vmax.f32 %v1686_v40, %v1848_v55  ;;  %v7741_v60 = vmax.f32 %v1763_v51, %v1925_v56  ;;  %v2236_v40 = vld [vmem:[%s11829_s6 + $0x58] sm:$0xff] }
 0x1f0   : > { %v1850_v57 = vpop.f32.mrf.mxu0  ;;  %v1927_v58 = vpop.f32.mrf.mxu1  ;;  %v2300_v51 = vld [vmem:[%s11829_s6 + $0x258] sm:$0xff] }
 0x1f1   : > { %v1937_v29 = vmax.f32 %v1688_v41, %v1850_v57  ;;  %v1939_v59 = vmax.f32 %v1765_v52, %v1927_v58  ;;  %v2235_v41 = vld [vmem:[%s11829_s6 + $0x50] sm:$0xff]  ;;  %v2232_v55 = vld [vmem:[%s11829_s6 + $0x38] sm:$0xff] }
 0x1f2   : > { %v1854_v1 = vpop.f32.mrf.mxu0  ;;  %v1931_v61 = vpop.f32.mrf.mxu1  ;;  %v2299_v52 = vld [vmem:[%s11829_s6 + $0x250] sm:$0xff]  ;;  %v2296_v56 = vld [vmem:[%s11829_s6 + $0x238] sm:$0xff] }
 0x1f3   : > { %2135 = vmatprep.mubr.f32.mxu0 %v1937_v29  ;;  %6017 = vmatprep.mubr.msk.f32.mxu1 %vm2064_vm3, %v1939_v59  ;;  %v7774_v13 = vmax.f32 %v1692_v42, %v1854_v1  ;;  %v7776_v15 = vmax.f32 %v1769_v53, %v1931_v61  ;;  %v2234_v42 = vld [vmem:[%s11829_s6 + $0x48] sm:$0xff]  ;;  %v2231_v57 = vld [vmem:[%s11829_s6 + $0x30] sm:$0xff]  ;;  %v2229_v1 = vld [vmem:[%s11829_s6 + $0x20] sm:$0xff] }
 0x1f4   : > { %v1856_v6 = vpop.f32.mrf.mxu0  ;;  %v1933_v3 = vpop.f32.mrf.mxu1  ;;  %2136 = vmatmul.mubr.f32.vlgmr.msra.gmra.mxu0 %v7739_v16  ;;  %2213 = vmatmul.mubr.f32.vlgmr.msra.gmra.mxu1 %v7741_v60  ;;  %v2298_v53 = vld [vmem:[%s11829_s6 + $0x248] sm:$0xff]  ;;  %v2295_v58 = vld [vmem:[%s11829_s6 + $0x230] sm:$0xff]  ;;  %v2293_v61 = vld [vmem:[%s11829_s6 + $0x220] sm:$0xff] }
 0x1f5   : > { %v7764_v14 = vmax.f32 %v1694_v43, %v1856_v6  ;;  %v7766_v7 = vmax.f32 %v1771_v54, %v1933_v3  ;;  %2346 = vmatpush1.msra.mxu1 %v2255_v62  ;;  %2423 = vmatpush1.msra.mxu0 %v2319_v63  ;;  %v2233_v43 = vld [vmem:[%s11829_s6 + $0x40] sm:$0xff]  ;;  %v2228_v62 = vld [vmem:[%s11829_s6 + $0x18] sm:$0xff]  ;;  %v2226_v6 = vld [vmem:[%s11829_s6 + $0x8] sm:$0xff] }
 0x1f6   : > { %2347 = vmatprep.subr.mxu1 %v2254_v0  ;;  %2424 = vmatprep.subr.mxu0 %v2318_v2  ;;  %v2297_v54 = vld [vmem:[%s11829_s6 + $0x240] sm:$0xff]  ;;  %v2292_v63 = vld [vmem:[%s11829_s6 + $0x218] sm:$0xff]  ;;  %v2227_v0 = vld [vmem:[%s11829_s6 + $0x10] sm:$0xff] }
 0x1f7   : > { %2348 = vmatpush1.msra.mxu1 %v2253_v4  ;;  %2425 = vmatpush1.msra.mxu0 %v2317_v9  ;;  %v2291_v2 = vld [vmem:[%s11829_s6 + $0x210] sm:$0xff]  ;;  %v2290_v3 = vld [vmem:[%s11829_s6 + $0x208] sm:$0xff]  ;;  %v2225_v4 = vld [vmem:[%s11829_s6] sm:$0xff] }
 0x1f8   : > { %2141 = vmatprep.mubr.f32.mxu0 %v7764_v14  ;;  %6018 = vmatprep.mubr.msk.f32.mxu1 %vm2064_vm3, %v7766_v7  ;;  %v2289_v9 = vld [vmem:[%s11829_s6 + $0x200] sm:$0xff] }
 0x1f9   : > { %2349 = vmatprep.subr.mxu1 %v2252_v8  ;;  %2426 = vmatprep.subr.mxu0 %v2316_v12  ;;  %v2288_v8 = vld [vmem:[%s11829_s6 + $0x1f8] sm:$0xff] }
 0x1fa   : > { %2142 = vmatmul.mubr.f32.gmra.mxu0 %v7774_v13  ;;  %2219 = vmatmul.mubr.f32.gmra.mxu1 %v7776_v15  ;;  %v2344_v12 = vld [vmem:[%s11829_s6 + $0x3b8] sm:$0xff] }
 0x1fb   : > { %2350 = vmatpush1.msra.mxu1 %v2251_v17  ;;  %2427 = vmatpush1.msra.mxu0 %v2315_v10  ;;  %v2287_v17 = vld [vmem:[%s11829_s6 + $0x1f0] sm:$0xff] }
 0x1fc   : > { %2351 = vmatprep.subr.mxu1 %v2250_v11  ;;  %2409 = vmatprep.mubr.f32.mxu1 %v1937_v29  ;;  %v2230_v29 = vld [vmem:[%s11829_s6 + $0x28] sm:$0xff]  ;;  %v2343_v10 = vld [vmem:[%s11829_s6 + $0x3b0] sm:$0xff] }
 0x1fd   : > { %2428 = vmatprep.subr.mxu0 %v2314_v20  ;;  %6019 = vmatprep.mubr.msk.f32.mxu0 %vm2064_vm3, %v1939_v59  ;;  %v2294_v59 = vld [vmem:[%s11829_s6 + $0x228] sm:$0xff] }
 0x1fe   : > { %2352 = vmatpush1.msra.mxu1 %v2249_v21  ;;  %2429 = vmatpush1.msra.mxu0 %v2313_v18  ;;  %v2286_v11 = vld [vmem:[%s11829_s6 + $0x1e8] sm:$0xff]  ;;  %v2285_v21 = vld [vmem:[%s11829_s6 + $0x1e0] sm:$0xff] }
 0x1ff   : > { %2353 = vmatprep.subr.mxu1 %v2248_v19  ;;  %2430 = vmatprep.subr.mxu0 %v2312_v26  ;;  %v2342_v20 = vld [vmem:[%s11829_s6 + $0x3a8] sm:$0xff]  ;;  %v2341_v18 = vld [vmem:[%s11829_s6 + $0x3a0] sm:$0xff]  ;;  %v2284_v19 = vld [vmem:[%s11829_s6 + $0x1d8] sm:$0xff] }
 0x200   : > { %2354 = vmatpush1.msra.mxu1 %v2247_v30  ;;  %2431 = vmatpush1.msra.mxu0 %v2311_v24  ;;  %v2340_v26 = vld [vmem:[%s11829_s6 + $0x398] sm:$0xff]  ;;  %v2283_v30 = vld [vmem:[%s11829_s6 + $0x1d0] sm:$0xff] }
 0x201   : > { %2355 = vmatprep.subr.mxu1 %v2246_v33  ;;  %2432 = vmatprep.subr.mxu0 %v2310_v44  ;;  %v2339_v24 = vld [vmem:[%s11829_s6 + $0x390] sm:$0xff]  ;;  %v2282_v33 = vld [vmem:[%s11829_s6 + $0x1c8] sm:$0xff] }
 0x202   : > { %2356 = vmatpush1.msra.mxu1 %v2245_v5  ;;  %2433 = vmatpush1.msra.mxu0 %v2309_v25  ;;  %v2338_v44 = vld [vmem:[%s11829_s6 + $0x388] sm:$0xff]  ;;  %v2281_v5 = vld [vmem:[%s11829_s6 + $0x1c0] sm:$0xff] }
 0x203   : > { %2357 = vmatprep.subr.mxu1 %v2244_v27  ;;  %2434 = vmatprep.subr.mxu0 %v2308_v34  ;;  %v2337_v25 = vld [vmem:[%s11829_s6 + $0x380] sm:$0xff]  ;;  %v2280_v27 = vld [vmem:[%s11829_s6 + $0x1b8] sm:$0xff] }
 0x204   : > { %2358 = vmatpush1.msra.mxu1 %v2243_v45  ;;  %2435 = vmatpush1.msra.mxu0 %v2307_v46  ;;  %v2336_v34 = vld [vmem:[%s11829_s6 + $0x378] sm:$0xff]  ;;  %v2279_v45 = vld [vmem:[%s11829_s6 + $0x1b0] sm:$0xff] }
 0x205   : > { %2359 = vmatprep.subr.mxu1 %v2242_v22  ;;  %2436 = vmatprep.subr.mxu0 %v2306_v35  ;;  %v2335_v46 = vld [vmem:[%s11829_s6 + $0x370] sm:$0xff]  ;;  %v2278_v22 = vld [vmem:[%s11829_s6 + $0x1a8] sm:$0xff] }
 0x206   : > { %2360 = vmatpush1.msra.mxu1 %v2241_v36  ;;  %2437 = vmatpush1.msra.mxu0 %v2305_v37  ;;  %v2334_v35 = vld [vmem:[%s11829_s6 + $0x368] sm:$0xff]  ;;  %v2277_v36 = vld [vmem:[%s11829_s6 + $0x1a0] sm:$0xff] }
 0x207   : > { %2361 = vmatprep.subr.mxu1 %v2240_v38  ;;  %2438 = vmatprep.subr.mxu0 %v2304_v47  ;;  %v2333_v37 = vld [vmem:[%s11829_s6 + $0x360] sm:$0xff]  ;;  %v2276_v38 = vld [vmem:[%s11829_s6 + $0x198] sm:$0xff] }
 0x208   : > { %2362 = vmatpush1.msra.mxu1 %v2239_v48  ;;  %2439 = vmatpush1.msra.mxu0 %v2303_v31  ;;  %v2332_v47 = vld [vmem:[%s11829_s6 + $0x358] sm:$0xff]  ;;  %v2275_v48 = vld [vmem:[%s11829_s6 + $0x190] sm:$0xff] }
 0x209   : > { %2363 = vmatprep.subr.mxu1 %v2238_v32  ;;  %2440 = vmatprep.subr.mxu0 %v2302_v49  ;;  %v2331_v31 = vld [vmem:[%s11829_s6 + $0x350] sm:$0xff]  ;;  %v2274_v32 = vld [vmem:[%s11829_s6 + $0x188] sm:$0xff] }
 0x20a   : > { %2364 = vmatpush1.msra.mxu1 %v2237_v28  ;;  %2441 = vmatpush1.msra.mxu0 %v2301_v39  ;;  %v2330_v49 = vld [vmem:[%s11829_s6 + $0x348] sm:$0xff]  ;;  %v2273_v28 = vld [vmem:[%s11829_s6 + $0x180] sm:$0xff] }
 0x20b   : > { %2365 = vmatprep.subr.mxu1 %v2236_v40  ;;  %2442 = vmatprep.subr.mxu0 %v2300_v51  ;;  %v2329_v39 = vld [vmem:[%s11829_s6 + $0x340] sm:$0xff]  ;;  %v2272_v40 = vld [vmem:[%s11829_s6 + $0x178] sm:$0xff] }
 0x20c   : > { %2366 = vmatpush1.msra.mxu1 %v2235_v41  ;;  %2443 = vmatpush1.msra.mxu0 %v2299_v52  ;;  %v2328_v51 = vld [vmem:[%s11829_s6 + $0x338] sm:$0xff]  ;;  %v2271_v41 = vld [vmem:[%s11829_s6 + $0x170] sm:$0xff] }
 0x20d   : > { %2367 = vmatprep.subr.mxu1 %v2234_v42  ;;  %2444 = vmatprep.subr.mxu0 %v2298_v53  ;;  %v2327_v52 = vld [vmem:[%s11829_s6 + $0x330] sm:$0xff]  ;;  %v2270_v42 = vld [vmem:[%s11829_s6 + $0x168] sm:$0xff] }
 0x20e   : > { %2368 = vmatpush1.msra.mxu1 %v2233_v43  ;;  %2445 = vmatpush1.msra.mxu0 %v2297_v54  ;;  %v2326_v53 = vld [vmem:[%s11829_s6 + $0x328] sm:$0xff]  ;;  %v2269_v43 = vld [vmem:[%s11829_s6 + $0x160] sm:$0xff] }
 0x20f   : > { %2369 = vmatprep.subr.mxu1 %v2232_v55  ;;  %2446 = vmatprep.subr.mxu0 %v2296_v56  ;;  %v2325_v54 = vld [vmem:[%s11829_s6 + $0x320] sm:$0xff]  ;;  %v2268_v55 = vld [vmem:[%s11829_s6 + $0x158] sm:$0xff] }
 0x210   : > { %2370 = vmatpush1.msra.mxu1 %v2231_v57  ;;  %2447 = vmatpush1.msra.mxu0 %v2295_v58  ;;  %v2324_v56 = vld [vmem:[%s11829_s6 + $0x318] sm:$0xff]  ;;  %v2267_v57 = vld [vmem:[%s11829_s6 + $0x150] sm:$0xff] }
 0x211   : > { %2371 = vmatprep.subr.mxu1 %v2230_v29  ;;  %2448 = vmatprep.subr.mxu0 %v2294_v59  ;;  %v2323_v58 = vld [vmem:[%s11829_s6 + $0x310] sm:$0xff]  ;;  %v2266_v29 = vld [vmem:[%s11829_s6 + $0x148] sm:$0xff] }
 0x212   : > { %2372 = vmatpush1.msra.mxu1 %v2229_v1  ;;  %2449 = vmatpush1.msra.mxu0 %v2293_v61  ;;  %v2322_v59 = vld [vmem:[%s11829_s6 + $0x308] sm:$0xff]  ;;  %v2265_v1 = vld [vmem:[%s11829_s6 + $0x140] sm:$0xff] }
 0x213   : > { %2373 = vmatprep.subr.mxu1 %v2228_v62  ;;  %2450 = vmatprep.subr.mxu0 %v2292_v63  ;;  %v2321_v61 = vld [vmem:[%s11829_s6 + $0x300] sm:$0xff]  ;;  %v2264_v62 = vld [vmem:[%s11829_s6 + $0x138] sm:$0xff]  ;;  %v2263_v63 = vld [vmem:[%s11829_s6 + $0x130] sm:$0xff] }
 0x214   : > { %2374 = vmatpush1.msra.mxu1 %v2227_v0  ;;  %2451 = vmatpush1.msra.mxu0 %v2291_v2  ;;  %v2262_v0 = vld [vmem:[%s11829_s6 + $0x128] sm:$0xff]  ;;  %v2261_v2 = vld [vmem:[%s11829_s6 + $0x120] sm:$0xff] }
 0x215   : > { %2375 = vmatprep.subr.mxu1 %v2226_v6  ;;  %2452 = vmatprep.subr.mxu0 %v2290_v3  ;;  %v2260_v6 = vld [vmem:[%s11829_s6 + $0x118] sm:$0xff]  ;;  %v2259_v3 = vld [vmem:[%s11829_s6 + $0x110] sm:$0xff] }
 0x216   : > { %2376 = vmatpush1.msra.mxu1 %v2225_v4  ;;  %2453 = vmatpush1.msra.mxu0 %v2289_v9  ;;  %v6082_v4 = vld [vmem:[%s11830_s7 + $0x5a8] sm:$0xff]  ;;  %v6081_v9 = vld [vmem:[%s11830_s7 + $0x5a0] sm:$0xff] }
 0x217   : > { %2377 = vmatprep.subr.mxu1 %v2288_v8  ;;  %2462 = vmatprep.subr.mxu0 %v2344_v12  ;;  %v6077_v8 = vld [vmem:[%s11830_s7 + $0x580] sm:$0xff]  ;;  %v6079_v12 = vld [vmem:[%s11830_s7 + $0x590] sm:$0xff] }
 0x218   : > { %2378 = vmatpush2.msra.mxu1 %v2287_v17  ;;  %2463 = vmatpush2.msra.mxu0 %v2343_v10  ;;  %v6074_v17 = vld [vmem:[%s11830_s7 + $0x568] sm:$0xff]  ;;  %v6076_v10 = vld [vmem:[%s11830_s7 + $0x578] sm:$0xff] }
 0x219   : > { %2379 = vmatprep.subr.mxu1 %v2286_v11  ;;  %2464 = vmatprep.subr.mxu0 %v2342_v20  ;;  %v6073_v11 = vld [vmem:[%s11830_s7 + $0x560] sm:$0xff]  ;;  %v6075_v20 = vld [vmem:[%s11830_s7 + $0x570] sm:$0xff] }
 0x21a   : > { %2380 = vmatpush2.msra.mxu1 %v2285_v21  ;;  %2465 = vmatpush2.msra.mxu0 %v2341_v18  ;;  %v6070_v21 = vld [vmem:[%s11830_s7 + $0x548] sm:$0xff]  ;;  %v6072_v18 = vld [vmem:[%s11830_s7 + $0x558] sm:$0xff] }
 0x21b   : > { %2381 = vmatprep.subr.mxu1 %v2284_v19  ;;  %2466 = vmatprep.subr.mxu0 %v2340_v26  ;;  %v6069_v19 = vld [vmem:[%s11830_s7 + $0x540] sm:$0xff]  ;;  %v6071_v26 = vld [vmem:[%s11830_s7 + $0x550] sm:$0xff] }
 0x21c   : > { %2382 = vmatpush2.msra.mxu1 %v2283_v30  ;;  %2467 = vmatpush2.msra.mxu0 %v2339_v24  ;;  %v6066_v30 = vld [vmem:[%s11830_s7 + $0x528] sm:$0xff]  ;;  %v6068_v24 = vld [vmem:[%s11830_s7 + $0x538] sm:$0xff] }
 0x21d   : > { %2383 = vmatprep.subr.mxu1 %v2282_v33  ;;  %2468 = vmatprep.subr.mxu0 %v2338_v44  ;;  %v6065_v33 = vld [vmem:[%s11830_s7 + $0x520] sm:$0xff]  ;;  %v6067_v44 = vld [vmem:[%s11830_s7 + $0x530] sm:$0xff] }
 0x21e   : > { %2384 = vmatpush2.msra.mxu1 %v2281_v5  ;;  %2469 = vmatpush2.msra.mxu0 %v2337_v25  ;;  %v6062_v5 = vld [vmem:[%s11830_s7 + $0x508] sm:$0xff]  ;;  %v6064_v25 = vld [vmem:[%s11830_s7 + $0x518] sm:$0xff] }
 0x21f   : > { %2385 = vmatprep.subr.mxu1 %v2280_v27  ;;  %2470 = vmatprep.subr.mxu0 %v2336_v34  ;;  %v6061_v27 = vld [vmem:[%s11830_s7 + $0x500] sm:$0xff]  ;;  %v6063_v34 = vld [vmem:[%s11830_s7 + $0x510] sm:$0xff] }
 0x220   : > { %2386 = vmatpush2.msra.mxu1 %v2279_v45  ;;  %2471 = vmatpush2.msra.mxu0 %v2335_v46  ;;  %v6058_v45 = vld [vmem:[%s11830_s7 + $0x4e8] sm:$0xff]  ;;  %v6060_v46 = vld [vmem:[%s11830_s7 + $0x4f8] sm:$0xff] }
 0x221   : > { %2387 = vmatprep.subr.mxu1 %v2278_v22  ;;  %2472 = vmatprep.subr.mxu0 %v2334_v35  ;;  %v6057_v22 = vld [vmem:[%s11830_s7 + $0x4e0] sm:$0xff]  ;;  %v6059_v35 = vld [vmem:[%s11830_s7 + $0x4f0] sm:$0xff] }
 0x222   : > { %2388 = vmatpush2.msra.mxu1 %v2277_v36  ;;  %2473 = vmatpush2.msra.mxu0 %v2333_v37  ;;  %v6054_v36 = vld [vmem:[%s11830_s7 + $0x4c8] sm:$0xff]  ;;  %v6056_v37 = vld [vmem:[%s11830_s7 + $0x4d8] sm:$0xff] }
 0x223   : > { %2389 = vmatprep.subr.mxu1 %v2276_v38  ;;  %2474 = vmatprep.subr.mxu0 %v2332_v47  ;;  %v6053_v38 = vld [vmem:[%s11830_s7 + $0x4c0] sm:$0xff]  ;;  %v6055_v47 = vld [vmem:[%s11830_s7 + $0x4d0] sm:$0xff] }
 0x224   : > { %2390 = vmatpush2.msra.mxu1 %v2275_v48  ;;  %2475 = vmatpush2.msra.mxu0 %v2331_v31  ;;  %v6050_v48 = vld [vmem:[%s11830_s7 + $0x4a8] sm:$0xff]  ;;  %v6052_v31 = vld [vmem:[%s11830_s7 + $0x4b8] sm:$0xff] }
 0x225   : > { %2391 = vmatprep.subr.mxu1 %v2274_v32  ;;  %2476 = vmatprep.subr.mxu0 %v2330_v49  ;;  %v6049_v32 = vld [vmem:[%s11830_s7 + $0x4a0] sm:$0xff]  ;;  %v6051_v49 = vld [vmem:[%s11830_s7 + $0x4b0] sm:$0xff] }
 0x226   : > { %2392 = vmatpush2.msra.mxu1 %v2273_v28  ;;  %2477 = vmatpush2.msra.mxu0 %v2329_v39  ;;  %v6046_v28 = vld [vmem:[%s11830_s7 + $0x488] sm:$0xff]  ;;  %v6048_v39 = vld [vmem:[%s11830_s7 + $0x498] sm:$0xff] }
 0x227   : > { %2393 = vmatprep.subr.mxu1 %v2272_v40  ;;  %2478 = vmatprep.subr.mxu0 %v2328_v51  ;;  %v6045_v40 = vld [vmem:[%s11830_s7 + $0x480] sm:$0xff]  ;;  %v6047_v51 = vld [vmem:[%s11830_s7 + $0x490] sm:$0xff] }
 0x228   : > { %2394 = vmatpush2.msra.mxu1 %v2271_v41  ;;  %2479 = vmatpush2.msra.mxu0 %v2327_v52  ;;  %v6042_v41 = vld [vmem:[%s11830_s7 + $0x468] sm:$0xff]  ;;  %v6044_v52 = vld [vmem:[%s11830_s7 + $0x478] sm:$0xff] }
 0x229   : > { %2395 = vmatprep.subr.mxu1 %v2270_v42  ;;  %2480 = vmatprep.subr.mxu0 %v2326_v53  ;;  %v6041_v42 = vld [vmem:[%s11830_s7 + $0x460] sm:$0xff]  ;;  %v6043_v53 = vld [vmem:[%s11830_s7 + $0x470] sm:$0xff] }
 0x22a   : > { %2396 = vmatpush2.msra.mxu1 %v2269_v43  ;;  %2481 = vmatpush2.msra.mxu0 %v2325_v54  ;;  %v6038_v43 = vld [vmem:[%s11830_s7 + $0x448] sm:$0xff]  ;;  %v6040_v54 = vld [vmem:[%s11830_s7 + $0x458] sm:$0xff] }
 0x22b   : > { %2397 = vmatprep.subr.mxu1 %v2268_v55  ;;  %2482 = vmatprep.subr.mxu0 %v2324_v56  ;;  %v6037_v55 = vld [vmem:[%s11830_s7 + $0x440] sm:$0xff]  ;;  %v6039_v56 = vld [vmem:[%s11830_s7 + $0x450] sm:$0xff] }
 0x22c   : > { %2398 = vmatpush2.msra.mxu1 %v2267_v57  ;;  %2483 = vmatpush2.msra.mxu0 %v2323_v58  ;;  %v6034_v57 = vld [vmem:[%s11830_s7 + $0x428] sm:$0xff]  ;;  %v6036_v58 = vld [vmem:[%s11830_s7 + $0x438] sm:$0xff] }
 0x22d   : > { %2399 = vmatprep.subr.mxu1 %v2266_v29  ;;  %2484 = vmatprep.subr.mxu0 %v2322_v59  ;;  %v6033_v29 = vld [vmem:[%s11830_s7 + $0x420] sm:$0xff]  ;;  %v6035_v59 = vld [vmem:[%s11830_s7 + $0x430] sm:$0xff] }
 0x22e   : > { %2400 = vmatpush2.msra.mxu1 %v2265_v1  ;;  %2485 = vmatpush2.msra.mxu0 %v2321_v61  ;;  %v6030_v1 = vld [vmem:[%s11830_s7 + $0x408] sm:$0xff]  ;;  %v6032_v61 = vld [vmem:[%s11830_s7 + $0x418] sm:$0xff] }
 0x22f   : > { %2401 = vmatprep.subr.mxu1 %v2264_v62  ;;  %2487 = vmatmul.mubr.f32.vlgmr.msra.gmra.mxu0 %v7741_v60  ;;  %v2258_v60 = vld [vmem:[%s11829_s6 + $0x108] sm:$0xff]  ;;  %v6029_v62 = vld [vmem:[%s11830_s7 + $0x400] sm:$0xff] }
 0x230   : > { %2402 = vmatpush2.msra.mxu1 %v2263_v63  ;;  %6020 = vmatprep.mubr.msk.f32.mxu0 %vm2064_vm3, %v7766_v7  ;;  %v2257_v7 = vld [vmem:[%s11829_s6 + $0x100] sm:$0xff]  ;;  %v6031_v63 = vld [vmem:[%s11830_s7 + $0x410] sm:$0xff] }
 0x231   : > { %2403 = vmatprep.subr.mxu1 %v2262_v0  ;;  %2770 = vmatprep.subr.mxu0 %v6082_v4  ;;  %v6026_v0 = vld [vmem:[%s11830_s7 + $0x3e8] sm:$0xff]  ;;  %v6021_v4 = vld [vmem:[%s11830_s7 + $0x3c0] sm:$0xff] }
 0x232   : > { %2404 = vmatpush2.msra.mxu1 %v2261_v2  ;;  %2771 = vmatpush1.msra.mxu0 %v6081_v9  ;;  %v6028_v2 = vld [vmem:[%s11830_s7 + $0x3f8] sm:$0xff]  ;;  %v6138_v9 = vld [vmem:[%s11830_s7 + $0x768] sm:$0xff] }
 0x233   : > { %2405 = vmatprep.subr.mxu1 %v2260_v6  ;;  %2493 = vmatmul.mubr.f32.gmra.mxu0 %v7776_v15  ;;  %v6084_v15 = vld [vmem:[%s11830_s7 + $0x5b8] sm:$0xff]  ;;  %v6025_v6 = vld [vmem:[%s11830_s7 + $0x3e0] sm:$0xff] }
 0x234   : > { %2406 = vmatpush2.msra.mxu1 %v2259_v3  ;;  %v6027_v3 = vld [vmem:[%s11830_s7 + $0x3f0] sm:$0xff] }
 0x235   : > { %2407 = vmatprep.subr.mxu1 %v2258_v60  ;;  %v6022_v60 = vld [vmem:[%s11830_s7 + $0x3c8] sm:$0xff] }
 0x236   : > { %2408 = vmatpush2.msra.mxu1 %v2257_v7  ;;  %v6024_v7 = vld [vmem:[%s11830_s7 + $0x3d8] sm:$0xff] }
 0x237   : > { %2410 = vmatmul.mubr.f32.vlgmr.msra.gmra.mxu1 %v7739_v16  ;;  %2841 = vmatprep.subr.mxu1 %v6084_v15  ;;  %v6083_v16 = vld [vmem:[%s11830_s7 + $0x5b0] sm:$0xff] }
 0x238   : > { %2415 = vmatprep.mubr.f32.mxu1 %v7764_v14  ;;  %v6078_v14 = vld [vmem:[%s11830_s7 + $0x588] sm:$0xff]  ;;  %2842 = vmatpush1.msra.mxu1 %v6083_v16  ;;  %v6023_v15 = vld [vmem:[%s11830_s7 + $0x3d0] sm:$0xff]  ;;  %v6140_v16 = vld [vmem:[%s11830_s7 + $0x778] sm:$0xff] }
 0x239   : > { %2772 = vmatprep.subr.mxu0 %v6078_v14  ;;  %v6137_v14 = vld [vmem:[%s11830_s7 + $0x760] sm:$0xff] }
 0x23a   : > { %2773 = vmatpush1.msra.mxu0 %v6077_v8  ;;  %v6134_v8 = vld [vmem:[%s11830_s7 + $0x748] sm:$0xff] }
 0x23b   : > { %2416 = vmatmul.mubr.f32.gmra.mxu1 %v7774_v13  ;;  %v6080_v13 = vld [vmem:[%s11830_s7 + $0x598] sm:$0xff]  ;;  %2774 = vmatprep.subr.mxu0 %v6074_v17  ;;  %v6133_v17 = vld [vmem:[%s11830_s7 + $0x740] sm:$0xff] }
 0x23c   : > { %2843 = vmatprep.subr.mxu1 %v6080_v13  ;;  %2775 = vmatpush1.msra.mxu0 %v6073_v11  ;;  %v6139_v13 = vld [vmem:[%s11830_s7 + $0x770] sm:$0xff]  ;;  %v6130_v11 = vld [vmem:[%s11830_s7 + $0x728] sm:$0xff] }
 0x23d   : > { %2844 = vmatpush1.msra.mxu1 %v6079_v12  ;;  %2776 = vmatprep.subr.mxu0 %v6070_v21  ;;  %v6136_v12 = vld [vmem:[%s11830_s7 + $0x758] sm:$0xff]  ;;  %v6129_v21 = vld [vmem:[%s11830_s7 + $0x720] sm:$0xff] }
 0x23e   : > { %2845 = vmatprep.subr.mxu1 %v6076_v10  ;;  %2777 = vmatpush1.msra.mxu0 %v6069_v19  ;;  %v6135_v10 = vld [vmem:[%s11830_s7 + $0x750] sm:$0xff]  ;;  %v6126_v19 = vld [vmem:[%s11830_s7 + $0x708] sm:$0xff] }
 0x23f   : > { %2846 = vmatpush1.msra.mxu1 %v6075_v20  ;;  %2778 = vmatprep.subr.mxu0 %v6066_v30  ;;  %v6132_v20 = vld [vmem:[%s11830_s7 + $0x738] sm:$0xff]  ;;  %v6125_v30 = vld [vmem:[%s11830_s7 + $0x700] sm:$0xff] }
 0x240   : > { %2847 = vmatprep.subr.mxu1 %v6072_v18  ;;  %2779 = vmatpush1.msra.mxu0 %v6065_v33  ;;  %v6131_v18 = vld [vmem:[%s11830_s7 + $0x730] sm:$0xff]  ;;  %v6122_v33 = vld [vmem:[%s11830_s7 + $0x6e8] sm:$0xff] }
 0x241   : > { %2848 = vmatpush1.msra.mxu1 %v6071_v26  ;;  %2780 = vmatprep.subr.mxu0 %v6062_v5  ;;  %v6128_v26 = vld [vmem:[%s11830_s7 + $0x718] sm:$0xff]  ;;  %v6121_v5 = vld [vmem:[%s11830_s7 + $0x6e0] sm:$0xff] }
 0x242   : > { %2849 = vmatprep.subr.mxu1 %v6068_v24  ;;  %2781 = vmatpush1.msra.mxu0 %v6061_v27  ;;  %v6127_v24 = vld [vmem:[%s11830_s7 + $0x710] sm:$0xff]  ;;  %v6118_v27 = vld [vmem:[%s11830_s7 + $0x6c8] sm:$0xff] }
 0x243   : > { %2850 = vmatpush1.msra.mxu1 %v6067_v44  ;;  %2782 = vmatprep.subr.mxu0 %v6058_v45  ;;  %v6124_v44 = vld [vmem:[%s11830_s7 + $0x6f8] sm:$0xff]  ;;  %v6117_v45 = vld [vmem:[%s11830_s7 + $0x6c0] sm:$0xff] }
 0x244   : > { %2851 = vmatprep.subr.mxu1 %v6064_v25  ;;  %2783 = vmatpush1.msra.mxu0 %v6057_v22  ;;  %v6123_v25 = vld [vmem:[%s11830_s7 + $0x6f0] sm:$0xff]  ;;  %v6114_v22 = vld [vmem:[%s11830_s7 + $0x6a8] sm:$0xff] }
 0x245   : > { %2852 = vmatpush1.msra.mxu1 %v6063_v34  ;;  %2784 = vmatprep.subr.mxu0 %v6054_v36  ;;  %v6120_v34 = vld [vmem:[%s11830_s7 + $0x6d8] sm:$0xff]  ;;  %v6113_v36 = vld [vmem:[%s11830_s7 + $0x6a0] sm:$0xff] }
 0x246   : > { %2853 = vmatprep.subr.mxu1 %v6060_v46  ;;  %2785 = vmatpush1.msra.mxu0 %v6053_v38  ;;  %v6119_v46 = vld [vmem:[%s11830_s7 + $0x6d0] sm:$0xff]  ;;  %v6110_v38 = vld [vmem:[%s11830_s7 + $0x688] sm:$0xff] }
 0x247   : > { %2854 = vmatpush1.msra.mxu1 %v6059_v35  ;;  %2786 = vmatprep.subr.mxu0 %v6050_v48  ;;  %v6116_v35 = vld [vmem:[%s11830_s7 + $0x6b8] sm:$0xff]  ;;  %v6109_v48 = vld [vmem:[%s11830_s7 + $0x680] sm:$0xff] }
 0x248   : > { %2855 = vmatprep.subr.mxu1 %v6056_v37  ;;  %2787 = vmatpush1.msra.mxu0 %v6049_v32  ;;  %v6115_v37 = vld [vmem:[%s11830_s7 + $0x6b0] sm:$0xff]  ;;  %v6106_v32 = vld [vmem:[%s11830_s7 + $0x668] sm:$0xff] }
 0x249   : > { %2856 = vmatpush1.msra.mxu1 %v6055_v47  ;;  %2788 = vmatprep.subr.mxu0 %v6046_v28  ;;  %v6112_v47 = vld [vmem:[%s11830_s7 + $0x698] sm:$0xff]  ;;  %v6105_v28 = vld [vmem:[%s11830_s7 + $0x660] sm:$0xff] }
 0x24a   : > { %2857 = vmatprep.subr.mxu1 %v6052_v31  ;;  %2789 = vmatpush1.msra.mxu0 %v6045_v40  ;;  %v6111_v31 = vld [vmem:[%s11830_s7 + $0x690] sm:$0xff]  ;;  %v6102_v40 = vld [vmem:[%s11830_s7 + $0x648] sm:$0xff] }
 0x24b   : > { %2858 = vmatpush1.msra.mxu1 %v6051_v49  ;;  %2790 = vmatprep.subr.mxu0 %v6042_v41  ;;  %v6108_v49 = vld [vmem:[%s11830_s7 + $0x678] sm:$0xff]  ;;  %v6101_v41 = vld [vmem:[%s11830_s7 + $0x640] sm:$0xff] }
 0x24c   : > { %2859 = vmatprep.subr.mxu1 %v6048_v39  ;;  %2791 = vmatpush1.msra.mxu0 %v6041_v42  ;;  %v6107_v39 = vld [vmem:[%s11830_s7 + $0x670] sm:$0xff]  ;;  %v6098_v42 = vld [vmem:[%s11830_s7 + $0x628] sm:$0xff] }
 0x24d   : > { %2860 = vmatpush1.msra.mxu1 %v6047_v51  ;;  %2792 = vmatprep.subr.mxu0 %v6038_v43  ;;  %v6104_v51 = vld [vmem:[%s11830_s7 + $0x658] sm:$0xff]  ;;  %v6097_v43 = vld [vmem:[%s11830_s7 + $0x620] sm:$0xff] }
 0x24e   : > { %2861 = vmatprep.subr.mxu1 %v6044_v52  ;;  %2793 = vmatpush1.msra.mxu0 %v6037_v55  ;;  %v6103_v52 = vld [vmem:[%s11830_s7 + $0x650] sm:$0xff]  ;;  %v6094_v55 = vld [vmem:[%s11830_s7 + $0x608] sm:$0xff] }
 0x24f   : > { %2862 = vmatpush1.msra.mxu1 %v6043_v53  ;;  %2794 = vmatprep.subr.mxu0 %v6034_v57  ;;  %v6100_v53 = vld [vmem:[%s11830_s7 + $0x638] sm:$0xff]  ;;  %v6093_v57 = vld [vmem:[%s11830_s7 + $0x600] sm:$0xff] }
 0x250   : > { %2863 = vmatprep.subr.mxu1 %v6040_v54  ;;  %2795 = vmatpush1.msra.mxu0 %v6033_v29  ;;  %v6099_v54 = vld [vmem:[%s11830_s7 + $0x630] sm:$0xff]  ;;  %v6090_v29 = vld [vmem:[%s11830_s7 + $0x5e8] sm:$0xff] }
 0x251   : > { %2864 = vmatpush1.msra.mxu1 %v6039_v56  ;;  %2796 = vmatprep.subr.mxu0 %v6030_v1  ;;  %v6096_v56 = vld [vmem:[%s11830_s7 + $0x618] sm:$0xff]  ;;  %v6089_v1 = vld [vmem:[%s11830_s7 + $0x5e0] sm:$0xff] }
 0x252   : > { %2865 = vmatprep.subr.mxu1 %v6036_v58  ;;  %2797 = vmatpush1.msra.mxu0 %v6029_v62  ;;  %v6095_v58 = vld [vmem:[%s11830_s7 + $0x610] sm:$0xff]  ;;  %v6086_v62 = vld [vmem:[%s11830_s7 + $0x5c8] sm:$0xff] }
 0x253   : > { %2866 = vmatpush1.msra.mxu1 %v6035_v59  ;;  %2798 = vmatprep.subr.mxu0 %v6026_v0  ;;  %v6092_v59 = vld [vmem:[%s11830_s7 + $0x5f8] sm:$0xff]  ;;  %v6085_v0 = vld [vmem:[%s11830_s7 + $0x5c0] sm:$0xff] }
 0x254   : > { %2867 = vmatprep.subr.mxu1 %v6032_v61  ;;  %2799 = vmatpush1.msra.mxu0 %v6025_v6  ;;  %v6091_v61 = vld [vmem:[%s11830_s7 + $0x5f0] sm:$0xff]  ;;  %v2572_v6 = vld [vmem:[%s11830_s7 + $0x1e8] sm:$0xff] }
 0x255   : > { %2868 = vmatpush1.msra.mxu1 %v6031_v63  ;;  %2800 = vmatprep.subr.mxu0 %v6022_v60  ;;  %v6088_v63 = vld [vmem:[%s11830_s7 + $0x5d8] sm:$0xff] }
 0x256   : > { %2869 = vmatprep.subr.mxu1 %v6028_v2  ;;  %2801 = vmatpush1.msra.mxu0 %v6021_v4  ;;  %v6087_v2 = vld [vmem:[%s11830_s7 + $0x5d0] sm:$0xff] }
 0x257   : > { %2870 = vmatpush1.msra.mxu1 %v6027_v3  ;;  %2806 = vmatprep.subr.mxu0 %v6138_v9  ;;  %v2574_v3 = vld [vmem:[%s11830_s7 + $0x1f8] sm:$0xff] }
 0x258   : > { %2871 = vmatprep.subr.mxu1 %v6024_v7  ;;  %2807 = vmatpush2.msra.mxu0 %v6137_v14 }
 0x259   : > { %2872 = vmatpush1.msra.mxu1 %v6023_v15  ;;  %2808 = vmatprep.subr.mxu0 %v6134_v8 }
 0x25a   : > { %2877 = vmatprep.subr.mxu1 %v6140_v16  ;;  %2809 = vmatpush2.msra.mxu0 %v6133_v17 }
 0x25b   : > { %2878 = vmatpush2.msra.mxu1 %v6139_v13  ;;  %2810 = vmatprep.subr.mxu0 %v6130_v11 }
 0x25c   : > { %2879 = vmatprep.subr.mxu1 %v6136_v12  ;;  %2811 = vmatpush2.msra.mxu0 %v6129_v21 }
 0x25d   : > { %2880 = vmatpush2.msra.mxu1 %v6135_v10  ;;  %2812 = vmatprep.subr.mxu0 %v6126_v19 }
 0x25e   : > { %2881 = vmatprep.subr.mxu1 %v6132_v20  ;;  %2813 = vmatpush2.msra.mxu0 %v6125_v30 }
 0x25f   : > { %2882 = vmatpush2.msra.mxu1 %v6131_v18  ;;  %2814 = vmatprep.subr.mxu0 %v6122_v33 }
 0x260   : > { %2883 = vmatprep.subr.mxu1 %v6128_v26  ;;  %2815 = vmatpush2.msra.mxu0 %v6121_v5 }
 0x261   : > { %2884 = vmatpush2.msra.mxu1 %v6127_v24  ;;  %2816 = vmatprep.subr.mxu0 %v6118_v27 }
 0x262   : > { %2885 = vmatprep.subr.mxu1 %v6124_v44  ;;  %2817 = vmatpush2.msra.mxu0 %v6117_v45 }
 0x263   : > { %2886 = vmatpush2.msra.mxu1 %v6123_v25  ;;  %2818 = vmatprep.subr.mxu0 %v6114_v22 }
 0x264   : > { %2887 = vmatprep.subr.mxu1 %v6120_v34  ;;  %2819 = vmatpush2.msra.mxu0 %v6113_v36 }
 0x265   : > { %2888 = vmatpush2.msra.mxu1 %v6119_v46  ;;  %2820 = vmatprep.subr.mxu0 %v6110_v38 }
 0x266   : > { %2889 = vmatprep.subr.mxu1 %v6116_v35  ;;  %2821 = vmatpush2.msra.mxu0 %v6109_v48 }
 0x267   : > { %2890 = vmatpush2.msra.mxu1 %v6115_v37  ;;  %2822 = vmatprep.subr.mxu0 %v6106_v32 }
 0x268   : > { %2891 = vmatprep.subr.mxu1 %v6112_v47  ;;  %2823 = vmatpush2.msra.mxu0 %v6105_v28  ;;  %v2573_v28 = vld [vmem:[%s11830_s7 + $0x1f0] sm:$0xff] }
 0x269   : > { %2892 = vmatpush2.msra.mxu1 %v6111_v31  ;;  %2824 = vmatprep.subr.mxu0 %v6102_v40  ;;  %v2568_v40 = vld [vmem:[%s11830_s7 + $0x1c8] sm:$0xff] }
 0x26a   : > { %2893 = vmatprep.subr.mxu1 %v6108_v49  ;;  %2825 = vmatpush2.msra.mxu0 %v6101_v41  ;;  %v2571_v49 = vld [vmem:[%s11830_s7 + $0x1e0] sm:$0xff] }
 0x26b   : > { %2894 = vmatpush2.msra.mxu1 %v6107_v39  ;;  %2826 = vmatprep.subr.mxu0 %v6098_v42  ;;  %v2569_v42 = vld [vmem:[%s11830_s7 + $0x1d0] sm:$0xff] }
 0x26c   : > { %2895 = vmatprep.subr.mxu1 %v6104_v51  ;;  %2827 = vmatpush2.msra.mxu0 %v6097_v43  ;;  %v2570_v51 = vld [vmem:[%s11830_s7 + $0x1d8] sm:$0xff] }
 0x26d   : > { %2896 = vmatpush2.msra.mxu1 %v6103_v52  ;;  %2828 = vmatprep.subr.mxu0 %v6094_v55  ;;  %v2567_v52 = vld [vmem:[%s11830_s7 + $0x1c0] sm:$0xff]  ;;  %v2566_v43 = vld [vmem:[%s11830_s7 + $0x1b8] sm:$0xff]  ;;  %v2565_v55 = vld [vmem:[%s11830_s7 + $0x1b0] sm:$0xff] }
 0x26e   : > { %2897 = vmatprep.subr.mxu1 %v6100_v53  ;;  %2829 = vmatpush2.msra.mxu0 %v6093_v57  ;;  %v2564_v53 = vld [vmem:[%s11830_s7 + $0x1a8] sm:$0xff]  ;;  %v2562_v57 = vld [vmem:[%s11830_s7 + $0x198] sm:$0xff] }
 0x26f   : > { %2898 = vmatpush2.msra.mxu1 %v6099_v54  ;;  %2830 = vmatprep.subr.mxu0 %v6090_v29  ;;  %v2563_v54 = vld [vmem:[%s11830_s7 + $0x1a0] sm:$0xff]  ;;  %v2561_v29 = vld [vmem:[%s11830_s7 + $0x190] sm:$0xff] }
 0x270   : > { %2899 = vmatprep.subr.mxu1 %v6096_v56  ;;  %2831 = vmatpush2.msra.mxu0 %v6089_v1  ;;  %v2560_v56 = vld [vmem:[%s11830_s7 + $0x188] sm:$0xff]  ;;  %v2558_v1 = vld [vmem:[%s11830_s7 + $0x178] sm:$0xff] }
 0x271   : > { %2900 = vmatpush2.msra.mxu1 %v6095_v58  ;;  %2832 = vmatprep.subr.mxu0 %v6086_v62  ;;  %v2559_v58 = vld [vmem:[%s11830_s7 + $0x180] sm:$0xff]  ;;  %v2557_v62 = vld [vmem:[%s11830_s7 + $0x170] sm:$0xff] }
 0x272   : > { %2901 = vmatprep.subr.mxu1 %v6092_v59  ;;  %2833 = vmatpush2.msra.mxu0 %v6085_v0  ;;  %v2556_v59 = vld [vmem:[%s11830_s7 + $0x168] sm:$0xff]  ;;  %v2554_v0 = vld [vmem:[%s11830_s7 + $0x158] sm:$0xff] }
 0x273   : > { %2902 = vmatpush2.msra.mxu1 %v6091_v61  ;;  %2915 = vmatprep.subr.mxu0 %v2572_v6  ;;  %v2555_v61 = vld [vmem:[%s11830_s7 + $0x160] sm:$0xff]  ;;  %v2553_v6 = vld [vmem:[%s11830_s7 + $0x150] sm:$0xff] }
 0x274   : > { %2903 = vmatprep.subr.mxu1 %v6088_v63  ;;  %v2552_v63 = vld [vmem:[%s11830_s7 + $0x148] sm:$0xff] }
 0x275   : > { %2904 = vmatpush2.msra.mxu1 %v6087_v2  ;;  %v2551_v2 = vld [vmem:[%s11830_s7 + $0x140] sm:$0xff] }
 0x276   : > { %2986 = vmatprep.subr.mxu1 %v2574_v3  ;;  %v2548_v3 = vld [vmem:[%s11830_s7 + $0x128] sm:$0xff] }
 0x2b4   : > { %v2137_v60 = vpop.f32.mrf.mxu0  ;;  %v2214_v4 = vpop.f32.mrf.mxu1 }
 0x2b5   : > { %v2215_v10 = vadd.f32 %v2214_v4, %v2137_v60  ;;  %v2550_v60 = vld [vmem:[%s11830_s7 + $0x138] sm:$0xff]  ;;  %v2549_v4 = vld [vmem:[%s11830_s7 + $0x130] sm:$0xff] }
 0x2b6   : > { %v2139_v7 = vpop.f32.mrf.mxu0  ;;  %v2216_v9 = vpop.f32.mrf.mxu1 }
 0x2b7   : > { %v2217_v18 = vadd.f32 %v2216_v9, %v2139_v7  ;;  %v2547_v7 = vld [vmem:[%s11830_s7 + $0x120] sm:$0xff]  ;;  %v2546_v9 = vld [vmem:[%s11830_s7 + $0x118] sm:$0xff] }
 0x2ba   : > { %v2143_v15 = vpop.f32.mrf.mxu0  ;;  %v2220_v14 = vpop.f32.mrf.mxu1 }
 0x2bb   : > { %v2221_v24 = vadd.f32 %v2220_v14, %v2143_v15  ;;  %v2544_v15 = vld [vmem:[%s11830_s7 + $0x108] sm:$0xff]  ;;  %v2545_v14 = vld [vmem:[%s11830_s7 + $0x110] sm:$0xff] }
 0x2bc   : > { %v2145_v16 = vpop.f32.mrf.mxu0  ;;  %v2222_v8 = vpop.f32.mrf.mxu1 }
 0x2bd   : > { %v2223_v27 = vadd.f32 %v2222_v8, %v2145_v16  ;;  %v2543_v16 = vld [vmem:[%s11830_s7 + $0x100] sm:$0xff]  ;;  %v2542_v8 = vld [vmem:[%s11830_s7 + $0xf8] sm:$0xff] }
 0x2ef   : > { %v2488_v13 = vpop.f32.mrf.mxu0 }
 0x2f1   : > { %v2490_v12 = vpop.f32.mrf.mxu0 }
 0x2f3   : > { %v2494_v20 = vpop.f32.mrf.mxu0 }
 0x2f5   : > { %v2496_v5 = vpop.f32.mrf.mxu0 }
 0x2f7   : > { %v2411_v17 = vpop.f32.mrf.mxu1 }
 0x2f8   : > { %v2489_v11 = vadd.f32 %v2488_v13, %v2411_v17  ;;  %v2540_v13 = vld [vmem:[%s11830_s7 + $0xe8] sm:$0xff]  ;;  %v2541_v17 = vld [vmem:[%s11830_s7 + $0xf0] sm:$0xff] }
 0x2f9   : > { %v2413_v21 = vpop.f32.mrf.mxu1 }
 0x2fa   : > { %v8487_v19 = vmax.f32 %v2215_v10, %v2489_v11  ;;  %v2491_v26 = vadd.f32 %v2490_v12, %v2413_v21  ;;  %v2539_v12 = vld [vmem:[%s11830_s7 + $0xe0] sm:$0xff]  ;;  %v2536_v10 = vld [vmem:[%s11830_s7 + $0xc8] sm:$0xff]  ;;  %v2538_v11 = vld [vmem:[%s11830_s7 + $0xd8] sm:$0xff] }
 0x2fb   : > { %v2417_v30 = vpop.f32.mrf.mxu1  ;;  %v2537_v21 = vld [vmem:[%s11830_s7 + $0xd0] sm:$0xff] }
 0x2fc   : > { %2503 = vst [vmem:[#allocation2] sm:$0xff] %v8487_v19  ;;  %v2500_v33 = vmax.f32 %v2217_v18, %v2491_v26  ;;  %v2495_v44 = vadd.f32 %v2494_v20, %v2417_v30  ;;  %v2535_v20 = vld [vmem:[%s11830_s7 + $0xc0] sm:$0xff]  ;;  %v2532_v18 = vld [vmem:[%s11830_s7 + $0xa8] sm:$0xff]  ;;  %v2534_v26 = vld [vmem:[%s11830_s7 + $0xb8] sm:$0xff] }
 0x2fd   : > { %v2419_v25 = vpop.f32.mrf.mxu1  ;;  %v2531_v30 = vld [vmem:[%s11830_s7 + $0xa0] sm:$0xff] }
 0x2fe   : > { %2505 = vst.msk [vmem:[#allocation2 + $0x8] sm:$0xff] %vm2504_vm4, %v2500_v33  ;;  %v2501_v34 = vmax.f32 %v2221_v24, %v2495_v44  ;;  %v2497_v45 = vadd.f32 %v2496_v5, %v2419_v25  ;;  %v2533_v24 = vld [vmem:[%s11830_s7 + $0xb0] sm:$0xff]  ;;  %v2528_v33 = vld [vmem:[%s11830_s7 + $0x88] sm:$0xff]  ;;  %v2530_v44 = vld [vmem:[%s11830_s7 + $0x98] sm:$0xff] }
 0x2ff   : > { %v2527_v5 = vld [vmem:[%s11830_s7 + $0x80] sm:$0xff]  ;;  %v2529_v25 = vld [vmem:[%s11830_s7 + $0x90] sm:$0xff] }
 0x300   : > { %2506 = vst [vmem:[#allocation2 + $0x10] sm:$0xf] %v2501_v34  ;;  %v2502_v46 = vmax.f32 %v2223_v27, %v2497_v45  ;;  %v2524_v27 = vld [vmem:[%s11830_s7 + $0x68] sm:$0xff]  ;;  %v2526_v34 = vld [vmem:[%s11830_s7 + $0x78] sm:$0xff]  ;;  %v2523_v45 = vld [vmem:[%s11830_s7 + $0x60] sm:$0xff] }
 0x302   : > { %2508 = vst.msk [vmem:[#allocation2 + $0x18] sm:$0xf] %vm2507_vm5, %v2502_v46  ;;  %v2525_v46 = vld [vmem:[%s11830_s7 + $0x70] sm:$0xff] }
 0x303   : > { %v2631_v36 = vld [vmem:[#allocation2] sm:$0xfe] }
 0x304   : > { %v2761_v31 = vrot.slane %v2631_v36, 1  ;;  %v2519_v36 = vld [vmem:[%s11830_s7 + $0x40] sm:$0xff] }
 0x305   : > { %v2632_v22 = vld [vmem:[#allocation2 + $0x8] sm:$0xfe] }
 0x306   : > { %v2764_v47 = vrot.slane %v2632_v22, 1  ;;  %v2510_v41 = vld [vmem:[#allocation2 + $0x8] sm:$0xff] }
 0x307   : > { %v2633_v35 = vld [vmem:[#allocation2 + $0x10] sm:$0x1]  ;;  %v2520_v22 = vld [vmem:[%s11830_s7 + $0x48] sm:$0xff] }
 0x308   : > { %v2762_v38 = vrot.slane %v2633_v35, 1  ;;  %v2522_v35 = vld [vmem:[%s11830_s7 + $0x58] sm:$0xff] }
 0x309   : > { %v2634_v37 = vld [vmem:[#allocation2 + $0x18] sm:$0x1] }
 0x30a   : > { %v2765_v48 = vrot.slane %v2634_v37, 1  ;;  %v2763_v39 = vsel %vm2760_vm6, %v2761_v31, %v2762_v38  ;;  %v2521_v37 = vld [vmem:[%s11830_s7 + $0x50] sm:$0xff]  ;;  %v2516_v38 = vld [vmem:[%s11830_s7 + $0x28] sm:$0xff] }
 0x30b   : > { %v2517_v31 = vld [vmem:[%s11830_s7 + $0x30] sm:$0xff] }
 0x30c   : > { %v2766_v32 = vsel %vm2760_vm6, %v2764_v47, %v2765_v48  ;;  %v2518_v47 = vld [vmem:[%s11830_s7 + $0x38] sm:$0xff]  ;;  %v2515_v48 = vld [vmem:[%s11830_s7 + $0x20] sm:$0xff] }
 0x30d   : > { %6141 = vmatprep.mubr.msk.f32.mxu0 %vm2504_vm4, %v2766_v32  ;;  %6142 = vmatprep.mubr.msk.f32.mxu1 %vm2504_vm4, %v2766_v32  ;;  %v2512_v32 = vld [vmem:[%s11830_s7 + $0x8] sm:$0xff] }
 0x30e   : > { %2835 = vmatmul.mubr.f32.vlgmr.msra.gmra.mxu0 %v2763_v39  ;;  %2906 = vmatmul.mubr.f32.vlgmr.msra.gmra.mxu1 %v2763_v39  ;;  %v2513_v39 = vld [vmem:[%s11830_s7 + $0x10] sm:$0xff] }
 0x30f   : > { %2916 = vmatpush1.msra.mxu0 %v2571_v49  ;;  %2987 = vmatpush1.msra.mxu1 %v2573_v28  ;;  %v2514_v49 = vld [vmem:[%s11830_s7 + $0x18] sm:$0xff]  ;;  %v2511_v28 = vld [vmem:[%s11830_s7] sm:$0xff] }
 0x310   : > { %2917 = vmatprep.subr.mxu0 %v2568_v40  ;;  %6143 = vmatprep.mubr.msk.f32.mxu0 %vm2504_vm4, %v2510_v41  ;;  %v2628_v40 = vld [vmem:[%s11830_s7 + $0x3a8] sm:$0xff] }
 0x311   : > { %2988 = vmatprep.subr.mxu1 %v2570_v51  ;;  %6144 = vmatprep.mubr.msk.f32.mxu1 %vm2504_vm4, %v2510_v41  ;;  %v2630_v51 = vld [vmem:[%s11830_s7 + $0x3b8] sm:$0xff]  ;;  %v2627_v41 = vld [vmem:[%s11830_s7 + $0x3a0] sm:$0xff] }
 0x312   : > { %2918 = vmatpush1.msra.mxu0 %v2567_v52  ;;  %2989 = vmatpush1.msra.mxu1 %v2569_v42  ;;  %v2629_v52 = vld [vmem:[%s11830_s7 + $0x3b0] sm:$0xff]  ;;  %v2624_v42 = vld [vmem:[%s11830_s7 + $0x388] sm:$0xff] }
 0x313   : > { %2919 = vmatprep.subr.mxu0 %v2564_v53  ;;  %2990 = vmatprep.subr.mxu1 %v2566_v43  ;;  %v2626_v53 = vld [vmem:[%s11830_s7 + $0x398] sm:$0xff]  ;;  %v2623_v43 = vld [vmem:[%s11830_s7 + $0x380] sm:$0xff] }
 0x314   : > { %2920 = vmatpush1.msra.mxu0 %v2563_v54  ;;  %2991 = vmatpush1.msra.mxu1 %v2565_v55  ;;  %v2625_v54 = vld [vmem:[%s11830_s7 + $0x390] sm:$0xff]  ;;  %v2620_v55 = vld [vmem:[%s11830_s7 + $0x368] sm:$0xff] }
 0x315   : > { %2921 = vmatprep.subr.mxu0 %v2560_v56  ;;  %2992 = vmatprep.subr.mxu1 %v2562_v57  ;;  %v2622_v56 = vld [vmem:[%s11830_s7 + $0x378] sm:$0xff]  ;;  %v2619_v57 = vld [vmem:[%s11830_s7 + $0x360] sm:$0xff] }
 0x316   : > { %2922 = vmatpush1.msra.mxu0 %v2559_v58  ;;  %2993 = vmatpush1.msra.mxu1 %v2561_v29  ;;  %v2621_v58 = vld [vmem:[%s11830_s7 + $0x370] sm:$0xff]  ;;  %v2616_v29 = vld [vmem:[%s11830_s7 + $0x348] sm:$0xff] }
 0x317   : > { %2923 = vmatprep.subr.mxu0 %v2556_v59  ;;  %2994 = vmatprep.subr.mxu1 %v2558_v1  ;;  %v2618_v59 = vld [vmem:[%s11830_s7 + $0x358] sm:$0xff]  ;;  %v2615_v1 = vld [vmem:[%s11830_s7 + $0x340] sm:$0xff] }
 0x318   : > { %2924 = vmatpush1.msra.mxu0 %v2555_v61  ;;  %2995 = vmatpush1.msra.mxu1 %v2557_v62  ;;  %v2617_v61 = vld [vmem:[%s11830_s7 + $0x350] sm:$0xff]  ;;  %v2612_v62 = vld [vmem:[%s11830_s7 + $0x328] sm:$0xff] }
 0x319   : > { %2925 = vmatprep.subr.mxu0 %v2552_v63  ;;  %2996 = vmatprep.subr.mxu1 %v2554_v0  ;;  %v2614_v63 = vld [vmem:[%s11830_s7 + $0x338] sm:$0xff]  ;;  %v2611_v0 = vld [vmem:[%s11830_s7 + $0x320] sm:$0xff] }
 0x31a   : > { %2926 = vmatpush1.msra.mxu0 %v2551_v2  ;;  %2997 = vmatpush1.msra.mxu1 %v2553_v6  ;;  %v2613_v2 = vld [vmem:[%s11830_s7 + $0x330] sm:$0xff]  ;;  %v2608_v6 = vld [vmem:[%s11830_s7 + $0x308] sm:$0xff] }
 0x31b   : > { %2927 = vmatprep.subr.mxu0 %v2548_v3  ;;  %2998 = vmatprep.subr.mxu1 %v2550_v60  ;;  %v2610_v3 = vld [vmem:[%s11830_s7 + $0x318] sm:$0xff]  ;;  %v2607_v60 = vld [vmem:[%s11830_s7 + $0x300] sm:$0xff] }
 0x31c   : > { %2928 = vmatpush1.msra.mxu0 %v2547_v7  ;;  %2999 = vmatpush1.msra.mxu1 %v2549_v4  ;;  %v2609_v7 = vld [vmem:[%s11830_s7 + $0x310] sm:$0xff]  ;;  %v2604_v4 = vld [vmem:[%s11830_s7 + $0x2e8] sm:$0xff] }
 0x31d   : > { %2929 = vmatprep.subr.mxu0 %v2544_v15  ;;  %3000 = vmatprep.subr.mxu1 %v2546_v9  ;;  %v2606_v15 = vld [vmem:[%s11830_s7 + $0x2f8] sm:$0xff]  ;;  %v2603_v9 = vld [vmem:[%s11830_s7 + $0x2e0] sm:$0xff] }
 0x31e   : > { %2930 = vmatpush1.msra.mxu0 %v2543_v16  ;;  %3001 = vmatpush1.msra.mxu1 %v2545_v14  ;;  %v2605_v16 = vld [vmem:[%s11830_s7 + $0x2f0] sm:$0xff]  ;;  %v2600_v14 = vld [vmem:[%s11830_s7 + $0x2c8] sm:$0xff] }
 0x31f   : > { %2931 = vmatprep.subr.mxu0 %v2540_v13  ;;  %3002 = vmatprep.subr.mxu1 %v2542_v8  ;;  %v2602_v13 = vld [vmem:[%s11830_s7 + $0x2d8] sm:$0xff]  ;;  %v2599_v8 = vld [vmem:[%s11830_s7 + $0x2c0] sm:$0xff] }
 0x320   : > { %2932 = vmatpush1.msra.mxu0 %v2539_v12  ;;  %3003 = vmatpush1.msra.mxu1 %v2541_v17  ;;  %v2601_v12 = vld [vmem:[%s11830_s7 + $0x2d0] sm:$0xff]  ;;  %v2596_v17 = vld [vmem:[%s11830_s7 + $0x2a8] sm:$0xff] }
 0x321   : > { %2933 = vmatprep.subr.mxu0 %v2536_v10  ;;  %3004 = vmatprep.subr.mxu1 %v2538_v11  ;;  %v2598_v10 = vld [vmem:[%s11830_s7 + $0x2b8] sm:$0xff]  ;;  %v2595_v11 = vld [vmem:[%s11830_s7 + $0x2a0] sm:$0xff] }
 0x322   : > { %2934 = vmatpush1.msra.mxu0 %v2535_v20  ;;  %3005 = vmatpush1.msra.mxu1 %v2537_v21  ;;  %v2597_v20 = vld [vmem:[%s11830_s7 + $0x2b0] sm:$0xff]  ;;  %v2592_v21 = vld [vmem:[%s11830_s7 + $0x288] sm:$0xff] }
 0x323   : > { %2935 = vmatprep.subr.mxu0 %v2532_v18  ;;  %3006 = vmatprep.subr.mxu1 %v2534_v26  ;;  %v2594_v18 = vld [vmem:[%s11830_s7 + $0x298] sm:$0xff]  ;;  %v2591_v26 = vld [vmem:[%s11830_s7 + $0x280] sm:$0xff] }
 0x324   : > { %2936 = vmatpush1.msra.mxu0 %v2531_v30  ;;  %3007 = vmatpush1.msra.mxu1 %v2533_v24  ;;  %v2593_v30 = vld [vmem:[%s11830_s7 + $0x290] sm:$0xff]  ;;  %v2588_v24 = vld [vmem:[%s11830_s7 + $0x268] sm:$0xff] }
 0x325   : > { %2937 = vmatprep.subr.mxu0 %v2528_v33  ;;  %3008 = vmatprep.subr.mxu1 %v2530_v44  ;;  %v2590_v33 = vld [vmem:[%s11830_s7 + $0x278] sm:$0xff]  ;;  %v2587_v44 = vld [vmem:[%s11830_s7 + $0x260] sm:$0xff] }
 0x326   : > { %2938 = vmatpush1.msra.mxu0 %v2527_v5  ;;  %3009 = vmatpush1.msra.mxu1 %v2529_v25  ;;  %v2589_v5 = vld [vmem:[%s11830_s7 + $0x270] sm:$0xff]  ;;  %v2584_v25 = vld [vmem:[%s11830_s7 + $0x248] sm:$0xff] }
 0x327   : > { %2939 = vmatprep.subr.mxu0 %v2524_v27  ;;  %3010 = vmatprep.subr.mxu1 %v2526_v34  ;;  %v2586_v27 = vld [vmem:[%s11830_s7 + $0x258] sm:$0xff]  ;;  %v2583_v34 = vld [vmem:[%s11830_s7 + $0x240] sm:$0xff] }
 0x328   : > { %2940 = vmatpush1.msra.mxu0 %v2523_v45  ;;  %3011 = vmatpush1.msra.mxu1 %v2525_v46  ;;  %v2585_v45 = vld [vmem:[%s11830_s7 + $0x250] sm:$0xff]  ;;  %v2580_v46 = vld [vmem:[%s11830_s7 + $0x228] sm:$0xff] }
 0x329   : > { %2941 = vmatprep.subr.mxu0 %v2520_v22  ;;  %3012 = vmatprep.subr.mxu1 %v2522_v35  ;;  %v2582_v22 = vld [vmem:[%s11830_s7 + $0x238] sm:$0xff]  ;;  %v2579_v35 = vld [vmem:[%s11830_s7 + $0x220] sm:$0xff] }
 0x32a   : > { %2942 = vmatpush1.msra.mxu0 %v2519_v36  ;;  %3013 = vmatpush1.msra.mxu1 %v2521_v37  ;;  %v2581_v36 = vld [vmem:[%s11830_s7 + $0x230] sm:$0xff]  ;;  %v3060_v37 = vld [vmem:[#allocation2 + $0x18] sm:$0x3] }
 0x32b   : > { %2943 = vmatprep.subr.mxu0 %v2516_v38  ;;  %3014 = vmatprep.subr.mxu1 %v2518_v47  ;;  %v2576_v38 = vld [vmem:[%s11830_s7 + $0x208] sm:$0xff]  ;;  %v2578_v47 = vld [vmem:[%s11830_s7 + $0x218] sm:$0xff] }
 0x32c   : > { %2944 = vmatpush1.msra.mxu0 %v2515_v48  ;;  %3015 = vmatpush1.msra.mxu1 %v2517_v31  ;;  %v2575_v48 = vld [vmem:[%s11830_s7 + $0x200] sm:$0xff]  ;;  %v2577_v31 = vld [vmem:[%s11830_s7 + $0x210] sm:$0xff] }
 0x32d   : > { %2945 = vmatprep.subr.mxu0 %v2512_v32  ;;  %3016 = vmatprep.subr.mxu1 %v2514_v49  ;;  %v3058_v32 = vld [vmem:[#allocation2 + $0x8] sm:$0xfc]  ;;  %v3191_v49 = vrot.slane %v3060_v37, 2  ;;  %v6156_v37 = vld [vmem:[%s11830_s7 + $0x7d8] sm:$0xff] }
 0x32e   : > { %2946 = vmatpush1.msra.mxu0 %v2511_v28  ;;  %3017 = vmatpush1.msra.mxu1 %v2513_v39  ;;  %v6206_v28 = vld [vmem:[%s11830_s7 + $0x968] sm:$0xff]  ;;  %v6208_v39 = vld [vmem:[%s11830_s7 + $0x978] sm:$0xff] }
 0x32f   : > { %2951 = vmatprep.subr.mxu0 %v2628_v40  ;;  %3022 = vmatprep.subr.mxu1 %v2630_v51  ;;  %v6205_v40 = vld [vmem:[%s11830_s7 + $0x960] sm:$0xff]  ;;  %v3190_v51 = vrot.slane %v3058_v32, 2 }
 0x330   : > { %2952 = vmatpush2.msra.mxu0 %v2627_v41  ;;  %3023 = vmatpush2.msra.mxu1 %v2629_v52  ;;  %v6207_v41 = vld [vmem:[%s11830_s7 + $0x970] sm:$0xff]  ;;  %v6149_v32 = vld [vmem:[%s11830_s7 + $0x7a0] sm:$0xff] }
 0x331   : > { %2953 = vmatprep.subr.mxu0 %v2624_v42  ;;  %3024 = vmatprep.subr.mxu1 %v2626_v53  ;;  %v3192_v52 = vsel %vm3186_vm7, %v3190_v51, %v3191_v49  ;;  %v6202_v42 = vld [vmem:[%s11830_s7 + $0x948] sm:$0xff]  ;;  %v6204_v53 = vld [vmem:[%s11830_s7 + $0x958] sm:$0xff]  ;;  %v6151_v49 = vld [vmem:[%s11830_s7 + $0x7b0] sm:$0xff] }
 0x332   : > { %2954 = vmatpush2.msra.mxu0 %v2623_v43  ;;  %3025 = vmatpush2.msra.mxu1 %v2625_v54  ;;  %v6203_v43 = vld [vmem:[%s11830_s7 + $0x950] sm:$0xff]  ;;  %v6198_v54 = vld [vmem:[%s11830_s7 + $0x928] sm:$0xff] }
 0x333   : > { %2955 = vmatprep.subr.mxu0 %v2620_v55  ;;  %3026 = vmatprep.subr.mxu1 %v2622_v56  ;;  %v6200_v55 = vld [vmem:[%s11830_s7 + $0x938] sm:$0xff]  ;;  %v6197_v56 = vld [vmem:[%s11830_s7 + $0x920] sm:$0xff]  ;;  %v6147_v51 = vld [vmem:[%s11830_s7 + $0x790] sm:$0xff] }
 0x334   : > { %2956 = vmatpush2.msra.mxu0 %v2619_v57  ;;  %3027 = vmatpush2.msra.mxu1 %v2621_v58  ;;  %v6199_v57 = vld [vmem:[%s11830_s7 + $0x930] sm:$0xff]  ;;  %v6194_v58 = vld [vmem:[%s11830_s7 + $0x908] sm:$0xff] }
 0x335   : > { %2957 = vmatprep.subr.mxu0 %v2616_v29  ;;  %3028 = vmatprep.subr.mxu1 %v2618_v59  ;;  %v6196_v29 = vld [vmem:[%s11830_s7 + $0x918] sm:$0xff]  ;;  %v6193_v59 = vld [vmem:[%s11830_s7 + $0x900] sm:$0xff] }
 0x336   : > { %2958 = vmatpush2.msra.mxu0 %v2615_v1  ;;  %3029 = vmatpush2.msra.mxu1 %v2617_v61  ;;  %v6195_v1 = vld [vmem:[%s11830_s7 + $0x910] sm:$0xff]  ;;  %v6190_v61 = vld [vmem:[%s11830_s7 + $0x8e8] sm:$0xff] }
 0x337   : > { %2959 = vmatprep.subr.mxu0 %v2612_v62  ;;  %3030 = vmatprep.subr.mxu1 %v2614_v63  ;;  %v6192_v62 = vld [vmem:[%s11830_s7 + $0x8f8] sm:$0xff]  ;;  %v6189_v63 = vld [vmem:[%s11830_s7 + $0x8e0] sm:$0xff] }
 0x338   : > { %2960 = vmatpush2.msra.mxu0 %v2611_v0  ;;  %3031 = vmatpush2.msra.mxu1 %v2613_v2  ;;  %v6191_v0 = vld [vmem:[%s11830_s7 + $0x8f0] sm:$0xff]  ;;  %v6186_v2 = vld [vmem:[%s11830_s7 + $0x8c8] sm:$0xff] }
 0x339   : > { %2961 = vmatprep.subr.mxu0 %v2608_v6  ;;  %3032 = vmatprep.subr.mxu1 %v2610_v3  ;;  %v6188_v6 = vld [vmem:[%s11830_s7 + $0x8d8] sm:$0xff]  ;;  %v6185_v3 = vld [vmem:[%s11830_s7 + $0x8c0] sm:$0xff] }
 0x33a   : > { %2962 = vmatpush2.msra.mxu0 %v2607_v60  ;;  %3033 = vmatpush2.msra.mxu1 %v2609_v7  ;;  %v6187_v60 = vld [vmem:[%s11830_s7 + $0x8d0] sm:$0xff]  ;;  %v6182_v7 = vld [vmem:[%s11830_s7 + $0x8a8] sm:$0xff] }
 0x33b   : > { %2963 = vmatprep.subr.mxu0 %v2604_v4  ;;  %3034 = vmatprep.subr.mxu1 %v2606_v15  ;;  %v6184_v4 = vld [vmem:[%s11830_s7 + $0x8b8] sm:$0xff]  ;;  %v6181_v15 = vld [vmem:[%s11830_s7 + $0x8a0] sm:$0xff] }
 0x33c   : > { %2964 = vmatpush2.msra.mxu0 %v2603_v9  ;;  %3035 = vmatpush2.msra.mxu1 %v2605_v16  ;;  %v6183_v9 = vld [vmem:[%s11830_s7 + $0x8b0] sm:$0xff]  ;;  %v6178_v16 = vld [vmem:[%s11830_s7 + $0x888] sm:$0xff] }
 0x33d   : > { %2965 = vmatprep.subr.mxu0 %v2600_v14  ;;  %3036 = vmatprep.subr.mxu1 %v2602_v13  ;;  %v6180_v14 = vld [vmem:[%s11830_s7 + $0x898] sm:$0xff]  ;;  %v6177_v13 = vld [vmem:[%s11830_s7 + $0x880] sm:$0xff] }
 0x33e   : > { %2966 = vmatpush2.msra.mxu0 %v2599_v8  ;;  %3037 = vmatpush2.msra.mxu1 %v2601_v12  ;;  %v6179_v8 = vld [vmem:[%s11830_s7 + $0x890] sm:$0xff]  ;;  %v6174_v12 = vld [vmem:[%s11830_s7 + $0x868] sm:$0xff] }
 0x33f   : > { %2967 = vmatprep.subr.mxu0 %v2596_v17  ;;  %3038 = vmatprep.subr.mxu1 %v2598_v10  ;;  %v6176_v17 = vld [vmem:[%s11830_s7 + $0x878] sm:$0xff]  ;;  %v6173_v10 = vld [vmem:[%s11830_s7 + $0x860] sm:$0xff] }
 0x340   : > { %2968 = vmatpush2.msra.mxu0 %v2595_v11  ;;  %3039 = vmatpush2.msra.mxu1 %v2597_v20  ;;  %v6175_v11 = vld [vmem:[%s11830_s7 + $0x870] sm:$0xff]  ;;  %v6170_v20 = vld [vmem:[%s11830_s7 + $0x848] sm:$0xff] }
 0x341   : > { %2969 = vmatprep.subr.mxu0 %v2592_v21  ;;  %3040 = vmatprep.subr.mxu1 %v2594_v18  ;;  %v6172_v21 = vld [vmem:[%s11830_s7 + $0x858] sm:$0xff]  ;;  %v6169_v18 = vld [vmem:[%s11830_s7 + $0x840] sm:$0xff] }
 0x342   : > { %2970 = vmatpush2.msra.mxu0 %v2591_v26  ;;  %3041 = vmatpush2.msra.mxu1 %v2593_v30  ;;  %v6171_v26 = vld [vmem:[%s11830_s7 + $0x850] sm:$0xff]  ;;  %v6166_v30 = vld [vmem:[%s11830_s7 + $0x828] sm:$0xff] }
 0x343   : > { %2971 = vmatprep.subr.mxu0 %v2588_v24  ;;  %3042 = vmatprep.subr.mxu1 %v2590_v33  ;;  %v6168_v24 = vld [vmem:[%s11830_s7 + $0x838] sm:$0xff]  ;;  %v6165_v33 = vld [vmem:[%s11830_s7 + $0x820] sm:$0xff] }
 0x344   : > { %2972 = vmatpush2.msra.mxu0 %v2587_v44  ;;  %3043 = vmatpush2.msra.mxu1 %v2589_v5  ;;  %v6167_v44 = vld [vmem:[%s11830_s7 + $0x830] sm:$0xff]  ;;  %v6162_v5 = vld [vmem:[%s11830_s7 + $0x808] sm:$0xff] }
 0x345   : > { %2973 = vmatprep.subr.mxu0 %v2584_v25  ;;  %3044 = vmatprep.subr.mxu1 %v2586_v27  ;;  %v6164_v25 = vld [vmem:[%s11830_s7 + $0x818] sm:$0xff]  ;;  %v6161_v27 = vld [vmem:[%s11830_s7 + $0x800] sm:$0xff] }
 0x346   : > { %2974 = vmatpush2.msra.mxu0 %v2583_v34  ;;  %3045 = vmatpush2.msra.mxu1 %v2585_v45  ;;  %v6163_v34 = vld [vmem:[%s11830_s7 + $0x810] sm:$0xff]  ;;  %v6158_v45 = vld [vmem:[%s11830_s7 + $0x7e8] sm:$0xff] }
 0x347   : > { %2975 = vmatprep.subr.mxu0 %v2580_v46  ;;  %3046 = vmatprep.subr.mxu1 %v2582_v22  ;;  %v6160_v46 = vld [vmem:[%s11830_s7 + $0x7f8] sm:$0xff]  ;;  %v6157_v22 = vld [vmem:[%s11830_s7 + $0x7e0] sm:$0xff] }
 0x348   : > { %2976 = vmatpush2.msra.mxu0 %v2579_v35  ;;  %3047 = vmatpush2.msra.mxu1 %v2581_v36  ;;  %v6159_v35 = vld [vmem:[%s11830_s7 + $0x7f0] sm:$0xff]  ;;  %v6154_v36 = vld [vmem:[%s11830_s7 + $0x7c8] sm:$0xff] }
 0x349   : > { %2977 = vmatprep.subr.mxu0 %v2576_v38  ;;  %3048 = vmatprep.subr.mxu1 %v2578_v47  ;;  %v6153_v38 = vld [vmem:[%s11830_s7 + $0x7c0] sm:$0xff]  ;;  %v6155_v47 = vld [vmem:[%s11830_s7 + $0x7d0] sm:$0xff] }
 0x34a   : > { %2978 = vmatpush2.msra.mxu0 %v2575_v48  ;;  %3049 = vmatpush2.msra.mxu1 %v2577_v31  ;;  %v6150_v48 = vld [vmem:[%s11830_s7 + $0x7a8] sm:$0xff]  ;;  %v6152_v31 = vld [vmem:[%s11830_s7 + $0x7b8] sm:$0xff] }
 0x34b   : > { %2980 = vmatmul.mubr.f32.vlgmr.msra.gmra.mxu0 %v8487_v19  ;;  %3051 = vmatmul.mubr.f32.vlgmr.msra.gmra.mxu1 %v8487_v19  ;;  %v6201_v19 = vld [vmem:[%s11830_s7 + $0x940] sm:$0xff] }
 0x34c   : > { %3196 = vmatprep.subr.mxu0 %v6206_v28  ;;  %3267 = vmatprep.subr.mxu1 %v6208_v39  ;;  %v6146_v28 = vld [vmem:[%s11830_s7 + $0x788] sm:$0xff]  ;;  %v6148_v39 = vld [vmem:[%s11830_s7 + $0x798] sm:$0xff] }
 0x34d   : > { %3197 = vmatpush1.msra.mxu0 %v6205_v40  ;;  %6265 = vmatprep.mubr.msk.f32.mxu0 %vm2504_vm4, %v3192_v52  ;;  %v6145_v40 = vld [vmem:[%s11830_s7 + $0x780] sm:$0xff] }
 0x34e   : > { %3268 = vmatpush1.msra.mxu1 %v6207_v41  ;;  %6266 = vmatprep.mubr.msk.f32.mxu1 %vm2504_vm4, %v3192_v52  ;;  %v6262_v41 = vld [vmem:[%s11830_s7 + $0xb28] sm:$0xff]  ;;  %v6264_v52 = vld [vmem:[%s11830_s7 + $0xb38] sm:$0xff] }
 0x34f   : > { %3198 = vmatprep.subr.mxu0 %v6202_v42  ;;  %3269 = vmatprep.subr.mxu1 %v6204_v53  ;;  %v6261_v42 = vld [vmem:[%s11830_s7 + $0xb20] sm:$0xff]  ;;  %v6263_v53 = vld [vmem:[%s11830_s7 + $0xb30] sm:$0xff] }
 0x350   : > { %3199 = vmatpush1.msra.mxu0 %v6201_v19  ;;  %3270 = vmatpush1.msra.mxu1 %v6203_v43  ;;  %v6258_v19 = vld [vmem:[%s11830_s7 + $0xb08] sm:$0xff]  ;;  %v6260_v43 = vld [vmem:[%s11830_s7 + $0xb18] sm:$0xff] }
 0x351   : > { %3200 = vmatprep.subr.mxu0 %v6198_v54  ;;  %3271 = vmatprep.subr.mxu1 %v6200_v55  ;;  %v6257_v54 = vld [vmem:[%s11830_s7 + $0xb00] sm:$0xff]  ;;  %v6259_v55 = vld [vmem:[%s11830_s7 + $0xb10] sm:$0xff] }
 0x352   : > { %3201 = vmatpush1.msra.mxu0 %v6197_v56  ;;  %3272 = vmatpush1.msra.mxu1 %v6199_v57  ;;  %v6254_v56 = vld [vmem:[%s11830_s7 + $0xae8] sm:$0xff]  ;;  %v6256_v57 = vld [vmem:[%s11830_s7 + $0xaf8] sm:$0xff] }
 0x353   : > { %3202 = vmatprep.subr.mxu0 %v6194_v58  ;;  %3273 = vmatprep.subr.mxu1 %v6196_v29  ;;  %v6253_v58 = vld [vmem:[%s11830_s7 + $0xae0] sm:$0xff]  ;;  %v6255_v29 = vld [vmem:[%s11830_s7 + $0xaf0] sm:$0xff] }
 0x354   : > { %3203 = vmatpush1.msra.mxu0 %v6193_v59  ;;  %3274 = vmatpush1.msra.mxu1 %v6195_v1  ;;  %v6250_v59 = vld [vmem:[%s11830_s7 + $0xac8] sm:$0xff]  ;;  %v6252_v1 = vld [vmem:[%s11830_s7 + $0xad8] sm:$0xff] }
 0x355   : > { %3204 = vmatprep.subr.mxu0 %v6190_v61  ;;  %3275 = vmatprep.subr.mxu1 %v6192_v62  ;;  %v6249_v61 = vld [vmem:[%s11830_s7 + $0xac0] sm:$0xff]  ;;  %v6251_v62 = vld [vmem:[%s11830_s7 + $0xad0] sm:$0xff] }
 0x356   : > { %3205 = vmatpush1.msra.mxu0 %v6189_v63  ;;  %3276 = vmatpush1.msra.mxu1 %v6191_v0  ;;  %v6246_v63 = vld [vmem:[%s11830_s7 + $0xaa8] sm:$0xff]  ;;  %v6248_v0 = vld [vmem:[%s11830_s7 + $0xab8] sm:$0xff] }
 0x357   : > { %3206 = vmatprep.subr.mxu0 %v6186_v2  ;;  %3277 = vmatprep.subr.mxu1 %v6188_v6  ;;  %v6245_v2 = vld [vmem:[%s11830_s7 + $0xaa0] sm:$0xff]  ;;  %v6247_v6 = vld [vmem:[%s11830_s7 + $0xab0] sm:$0xff] }
 0x358   : > { %3207 = vmatpush1.msra.mxu0 %v6185_v3  ;;  %3278 = vmatpush1.msra.mxu1 %v6187_v60  ;;  %v6242_v3 = vld [vmem:[%s11830_s7 + $0xa88] sm:$0xff]  ;;  %v6244_v60 = vld [vmem:[%s11830_s7 + $0xa98] sm:$0xff] }
 0x359   : > { %3208 = vmatprep.subr.mxu0 %v6182_v7  ;;  %3279 = vmatprep.subr.mxu1 %v6184_v4  ;;  %v6241_v7 = vld [vmem:[%s11830_s7 + $0xa80] sm:$0xff]  ;;  %v6243_v4 = vld [vmem:[%s11830_s7 + $0xa90] sm:$0xff] }
 0x35a   : > { %3209 = vmatpush1.msra.mxu0 %v6181_v15  ;;  %3280 = vmatpush1.msra.mxu1 %v6183_v9  ;;  %v6238_v15 = vld [vmem:[%s11830_s7 + $0xa68] sm:$0xff]  ;;  %v6240_v9 = vld [vmem:[%s11830_s7 + $0xa78] sm:$0xff] }
 0x35b   : > { %3210 = vmatprep.subr.mxu0 %v6178_v16  ;;  %3281 = vmatprep.subr.mxu1 %v6180_v14  ;;  %v6237_v16 = vld [vmem:[%s11830_s7 + $0xa60] sm:$0xff]  ;;  %v6239_v14 = vld [vmem:[%s11830_s7 + $0xa70] sm:$0xff] }
 0x35c   : > { %3211 = vmatpush1.msra.mxu0 %v6177_v13  ;;  %3282 = vmatpush1.msra.mxu1 %v6179_v8  ;;  %v6234_v13 = vld [vmem:[%s11830_s7 + $0xa48] sm:$0xff]  ;;  %v6236_v8 = vld [vmem:[%s11830_s7 + $0xa58] sm:$0xff] }
 0x35d   : > { %3212 = vmatprep.subr.mxu0 %v6174_v12  ;;  %3283 = vmatprep.subr.mxu1 %v6176_v17  ;;  %v6233_v12 = vld [vmem:[%s11830_s7 + $0xa40] sm:$0xff]  ;;  %v6235_v17 = vld [vmem:[%s11830_s7 + $0xa50] sm:$0xff] }
 0x35e   : > { %3213 = vmatpush1.msra.mxu0 %v6173_v10  ;;  %3284 = vmatpush1.msra.mxu1 %v6175_v11  ;;  %v6230_v10 = vld [vmem:[%s11830_s7 + $0xa28] sm:$0xff]  ;;  %v6232_v11 = vld [vmem:[%s11830_s7 + $0xa38] sm:$0xff] }
 0x35f   : > { %3214 = vmatprep.subr.mxu0 %v6170_v20  ;;  %3285 = vmatprep.subr.mxu1 %v6172_v21  ;;  %v6229_v20 = vld [vmem:[%s11830_s7 + $0xa20] sm:$0xff]  ;;  %v6231_v21 = vld [vmem:[%s11830_s7 + $0xa30] sm:$0xff] }
 0x360   : > { %3215 = vmatpush1.msra.mxu0 %v6169_v18  ;;  %3286 = vmatpush1.msra.mxu1 %v6171_v26  ;;  %v6226_v18 = vld [vmem:[%s11830_s7 + $0xa08] sm:$0xff]  ;;  %v6228_v26 = vld [vmem:[%s11830_s7 + $0xa18] sm:$0xff] }
 0x361   : > { %3216 = vmatprep.subr.mxu0 %v6166_v30  ;;  %3287 = vmatprep.subr.mxu1 %v6168_v24  ;;  %v6225_v30 = vld [vmem:[%s11830_s7 + $0xa00] sm:$0xff]  ;;  %v6227_v24 = vld [vmem:[%s11830_s7 + $0xa10] sm:$0xff] }
 0x362   : > { %3217 = vmatpush1.msra.mxu0 %v6165_v33  ;;  %3288 = vmatpush1.msra.mxu1 %v6167_v44  ;;  %v6222_v33 = vld [vmem:[%s11830_s7 + $0x9e8] sm:$0xff]  ;;  %v6224_v44 = vld [vmem:[%s11830_s7 + $0x9f8] sm:$0xff] }
 0x363   : > { %3218 = vmatprep.subr.mxu0 %v6162_v5  ;;  %3289 = vmatprep.subr.mxu1 %v6164_v25  ;;  %v6221_v5 = vld [vmem:[%s11830_s7 + $0x9e0] sm:$0xff]  ;;  %v6223_v25 = vld [vmem:[%s11830_s7 + $0x9f0] sm:$0xff] }
 0x364   : > { %3219 = vmatpush1.msra.mxu0 %v6161_v27  ;;  %3290 = vmatpush1.msra.mxu1 %v6163_v34  ;;  %v6218_v27 = vld [vmem:[%s11830_s7 + $0x9c8] sm:$0xff]  ;;  %v6220_v34 = vld [vmem:[%s11830_s7 + $0x9d8] sm:$0xff] }
 0x365   : > { %3220 = vmatprep.subr.mxu0 %v6158_v45  ;;  %3291 = vmatprep.subr.mxu1 %v6160_v46  ;;  %v6217_v45 = vld [vmem:[%s11830_s7 + $0x9c0] sm:$0xff]  ;;  %v6219_v46 = vld [vmem:[%s11830_s7 + $0x9d0] sm:$0xff] }
 0x366   : > { %3221 = vmatpush1.msra.mxu0 %v6157_v22  ;;  %3292 = vmatpush1.msra.mxu1 %v6159_v35  ;;  %v3059_v22 = vld [vmem:[#allocation2 + $0x10] sm:$0x3]  ;;  %v6214_v35 = vld [vmem:[%s11830_s7 + $0x9a8] sm:$0xff] }
 0x367   : > { %3222 = vmatprep.subr.mxu0 %v6154_v36  ;;  %3293 = vmatprep.subr.mxu1 %v6156_v37  ;;  %v6216_v36 = vld [vmem:[%s11830_s7 + $0x9b8] sm:$0xff]  ;;  %v3057_v37 = vld [vmem:[#allocation2] sm:$0xfc] }
 0x368   : > { %3223 = vmatpush1.msra.mxu0 %v6153_v38  ;;  %3294 = vmatpush1.msra.mxu1 %v6155_v47  ;;  %v6213_v38 = vld [vmem:[%s11830_s7 + $0x9a0] sm:$0xff]  ;;  %v6215_v47 = vld [vmem:[%s11830_s7 + $0x9b0] sm:$0xff] }
 0x369   : > { %3224 = vmatprep.subr.mxu0 %v6150_v48  ;;  %3295 = vmatprep.subr.mxu1 %v6152_v31  ;;  %v3345_v48 = vld [vmem:[#allocation2 + $0x18] sm:$0x7]  ;;  %v6210_v31 = vld [vmem:[%s11830_s7 + $0x988] sm:$0xff] }
 0x36a   : > { %3225 = vmatpush1.msra.mxu0 %v6149_v32  ;;  %3296 = vmatpush1.msra.mxu1 %v6151_v49  ;;  %v6212_v32 = vld [vmem:[%s11830_s7 + $0x998] sm:$0xff]  ;;  %v3188_v49 = vrot.slane %v3059_v22, 2  ;;  %v6284_v22 = vld [vmem:[%s11830_s7 + $0xbc8] sm:$0xff] }
 0x36b   : > { %3226 = vmatprep.subr.mxu0 %v6146_v28  ;;  %3297 = vmatprep.subr.mxu1 %v6148_v39  ;;  %v6209_v28 = vld [vmem:[%s11830_s7 + $0x980] sm:$0xff]  ;;  %v6211_v39 = vld [vmem:[%s11830_s7 + $0x990] sm:$0xff] }
 0x36c   : > { %3227 = vmatpush1.msra.mxu0 %v6145_v40  ;;  %3298 = vmatpush1.msra.mxu1 %v6147_v51  ;;  %v3343_v40 = vld [vmem:[#allocation2 + $0x8] sm:$0xf8]  ;;  %v3187_v51 = vrot.slane %v3057_v37, 2  ;;  %v6285_v37 = vld [vmem:[%s11830_s7 + $0xbd0] sm:$0xff] }
 0x36d   : > { %3232 = vmatprep.subr.mxu0 %v6262_v41  ;;  %3303 = vmatprep.subr.mxu1 %v6264_v52  ;;  %v3476_v41 = vrot.slane %v3345_v48, 3  ;;  %v6328_v52 = vld [vmem:[%s11830_s7 + $0xd28] sm:$0xff]  ;;  %v6279_v48 = vld [vmem:[%s11830_s7 + $0xba0] sm:$0xff] }
 0x36e   : > { %3233 = vmatpush2.msra.mxu0 %v6261_v42  ;;  %3304 = vmatpush2.msra.mxu1 %v6263_v53  ;;  %v6330_v42 = vld [vmem:[%s11830_s7 + $0xd38] sm:$0xff]  ;;  %v3189_v53 = vsel %vm3186_vm7, %v3187_v51, %v3188_v49 }
 0x36f   : > { %3234 = vmatprep.subr.mxu0 %v6258_v19  ;;  %3305 = vmatprep.subr.mxu1 %v6260_v43  ;;  %v6327_v19 = vld [vmem:[%s11830_s7 + $0xd20] sm:$0xff]  ;;  %v3475_v43 = vrot.slane %v3343_v40, 3  ;;  %v6278_v49 = vld [vmem:[%s11830_s7 + $0xb98] sm:$0xff]  ;;  %v6272_v40 = vld [vmem:[%s11830_s7 + $0xb68] sm:$0xff] }
 0x370   : > { %3235 = vmatpush2.msra.mxu0 %v6257_v54  ;;  %3306 = vmatpush2.msra.mxu1 %v6259_v55  ;;  %v6329_v54 = vld [vmem:[%s11830_s7 + $0xd30] sm:$0xff]  ;;  %v6274_v51 = vld [vmem:[%s11830_s7 + $0xb78] sm:$0xff] }
 0x371   : > { %3236 = vmatprep.subr.mxu0 %v6254_v56  ;;  %3307 = vmatprep.subr.mxu1 %v6256_v57  ;;  %v3477_v55 = vsel %vm3471_vm8, %v3475_v43, %v3476_v41  ;;  %v6324_v56 = vld [vmem:[%s11830_s7 + $0xd08] sm:$0xff]  ;;  %v6326_v57 = vld [vmem:[%s11830_s7 + $0xd18] sm:$0xff]  ;;  %v6271_v41 = vld [vmem:[%s11830_s7 + $0xb60] sm:$0xff] }
 0x372   : > { %3237 = vmatpush2.msra.mxu0 %v6253_v58  ;;  %3308 = vmatpush2.msra.mxu1 %v6255_v29  ;;  %v6323_v58 = vld [vmem:[%s11830_s7 + $0xd00] sm:$0xff]  ;;  %v6325_v29 = vld [vmem:[%s11830_s7 + $0xd10] sm:$0xff] }
 0x373   : > { %3238 = vmatprep.subr.mxu0 %v6250_v59  ;;  %3309 = vmatprep.subr.mxu1 %v6252_v1  ;;  %v6320_v59 = vld [vmem:[%s11830_s7 + $0xce8] sm:$0xff]  ;;  %v6322_v1 = vld [vmem:[%s11830_s7 + $0xcf8] sm:$0xff]  ;;  %v6269_v43 = vld [vmem:[%s11830_s7 + $0xb50] sm:$0xff] }
 0x374   : > { %3239 = vmatpush2.msra.mxu0 %v6249_v61  ;;  %3310 = vmatpush2.msra.mxu1 %v6251_v62  ;;  %v6319_v61 = vld [vmem:[%s11830_s7 + $0xce0] sm:$0xff]  ;;  %v6321_v62 = vld [vmem:[%s11830_s7 + $0xcf0] sm:$0xff] }
 0x375   : > { %3240 = vmatprep.subr.mxu0 %v6246_v63  ;;  %3311 = vmatprep.subr.mxu1 %v6248_v0  ;;  %v6316_v63 = vld [vmem:[%s11830_s7 + $0xcc8] sm:$0xff]  ;;  %v6318_v0 = vld [vmem:[%s11830_s7 + $0xcd8] sm:$0xff] }
 0x376   : > { %3241 = vmatpush2.msra.mxu0 %v6245_v2  ;;  %3312 = vmatpush2.msra.mxu1 %v6247_v6  ;;  %v6315_v2 = vld [vmem:[%s11830_s7 + $0xcc0] sm:$0xff]  ;;  %v6317_v6 = vld [vmem:[%s11830_s7 + $0xcd0] sm:$0xff] }
 0x377   : > { %3242 = vmatprep.subr.mxu0 %v6242_v3  ;;  %3313 = vmatprep.subr.mxu1 %v6244_v60  ;;  %v6312_v3 = vld [vmem:[%s11830_s7 + $0xca8] sm:$0xff]  ;;  %v6314_v60 = vld [vmem:[%s11830_s7 + $0xcb8] sm:$0xff] }
 0x378   : > { %3243 = vmatpush2.msra.mxu0 %v6241_v7  ;;  %3314 = vmatpush2.msra.mxu1 %v6243_v4  ;;  %v6311_v7 = vld [vmem:[%s11830_s7 + $0xca0] sm:$0xff]  ;;  %v6313_v4 = vld [vmem:[%s11830_s7 + $0xcb0] sm:$0xff] }
 0x379   : > { %3244 = vmatprep.subr.mxu0 %v6238_v15  ;;  %3315 = vmatprep.subr.mxu1 %v6240_v9  ;;  %v6308_v15 = vld [vmem:[%s11830_s7 + $0xc88] sm:$0xff]  ;;  %v6310_v9 = vld [vmem:[%s11830_s7 + $0xc98] sm:$0xff] }
 0x37a   : > { %3245 = vmatpush2.msra.mxu0 %v6237_v16  ;;  %3316 = vmatpush2.msra.mxu1 %v6239_v14  ;;  %v6307_v16 = vld [vmem:[%s11830_s7 + $0xc80] sm:$0xff]  ;;  %v6309_v14 = vld [vmem:[%s11830_s7 + $0xc90] sm:$0xff] }
 0x37b   : > { %3246 = vmatprep.subr.mxu0 %v6234_v13  ;;  %3317 = vmatprep.subr.mxu1 %v6236_v8  ;;  %v6304_v13 = vld [vmem:[%s11830_s7 + $0xc68] sm:$0xff]  ;;  %v6306_v8 = vld [vmem:[%s11830_s7 + $0xc78] sm:$0xff] }
 0x37c   : > { %3247 = vmatpush2.msra.mxu0 %v6233_v12  ;;  %3318 = vmatpush2.msra.mxu1 %v6235_v17  ;;  %v6303_v12 = vld [vmem:[%s11830_s7 + $0xc60] sm:$0xff]  ;;  %v6305_v17 = vld [vmem:[%s11830_s7 + $0xc70] sm:$0xff] }
 0x37d   : > { %3248 = vmatprep.subr.mxu0 %v6230_v10  ;;  %3319 = vmatprep.subr.mxu1 %v6232_v11  ;;  %v6300_v10 = vld [vmem:[%s11830_s7 + $0xc48] sm:$0xff]  ;;  %v6302_v11 = vld [vmem:[%s11830_s7 + $0xc58] sm:$0xff] }
 0x37e   : > { %3249 = vmatpush2.msra.mxu0 %v6229_v20  ;;  %3320 = vmatpush2.msra.mxu1 %v6231_v21  ;;  %v6299_v20 = vld [vmem:[%s11830_s7 + $0xc40] sm:$0xff]  ;;  %v6301_v21 = vld [vmem:[%s11830_s7 + $0xc50] sm:$0xff] }
 0x37f   : > { %3250 = vmatprep.subr.mxu0 %v6226_v18  ;;  %3321 = vmatprep.subr.mxu1 %v6228_v26  ;;  %v6296_v18 = vld [vmem:[%s11830_s7 + $0xc28] sm:$0xff]  ;;  %v6298_v26 = vld [vmem:[%s11830_s7 + $0xc38] sm:$0xff] }
 0x380   : > { %3251 = vmatpush2.msra.mxu0 %v6225_v30  ;;  %3322 = vmatpush2.msra.mxu1 %v6227_v24  ;;  %v6295_v30 = vld [vmem:[%s11830_s7 + $0xc20] sm:$0xff]  ;;  %v6297_v24 = vld [vmem:[%s11830_s7 + $0xc30] sm:$0xff] }
 0x381   : > { %3252 = vmatprep.subr.mxu0 %v6222_v33  ;;  %3323 = vmatprep.subr.mxu1 %v6224_v44  ;;  %v6292_v33 = vld [vmem:[%s11830_s7 + $0xc08] sm:$0xff]  ;;  %v6294_v44 = vld [vmem:[%s11830_s7 + $0xc18] sm:$0xff] }
 0x382   : > { %3253 = vmatpush2.msra.mxu0 %v6221_v5  ;;  %3324 = vmatpush2.msra.mxu1 %v6223_v25  ;;  %v6291_v5 = vld [vmem:[%s11830_s7 + $0xc00] sm:$0xff]  ;;  %v6293_v25 = vld [vmem:[%s11830_s7 + $0xc10] sm:$0xff] }
 0x383   : > { %3254 = vmatprep.subr.mxu0 %v6218_v27  ;;  %3325 = vmatprep.subr.mxu1 %v6220_v34  ;;  %v6288_v27 = vld [vmem:[%s11830_s7 + $0xbe8] sm:$0xff]  ;;  %v6290_v34 = vld [vmem:[%s11830_s7 + $0xbf8] sm:$0xff] }
 0x384   : > { %3255 = vmatpush2.msra.mxu0 %v6217_v45  ;;  %3326 = vmatpush2.msra.mxu1 %v6219_v46  ;;  %v6287_v45 = vld [vmem:[%s11830_s7 + $0xbe0] sm:$0xff]  ;;  %v6289_v46 = vld [vmem:[%s11830_s7 + $0xbf0] sm:$0xff] }
 0x385   : > { %3256 = vmatprep.subr.mxu0 %v6214_v35  ;;  %3327 = vmatprep.subr.mxu1 %v6216_v36  ;;  %v6286_v35 = vld [vmem:[%s11830_s7 + $0xbd8] sm:$0xff]  ;;  %v6283_v36 = vld [vmem:[%s11830_s7 + $0xbc0] sm:$0xff] }
 0x386   : > { %3257 = vmatpush2.msra.mxu0 %v6213_v38  ;;  %3328 = vmatpush2.msra.mxu1 %v6215_v47  ;;  %v6280_v38 = vld [vmem:[%s11830_s7 + $0xba8] sm:$0xff]  ;;  %v6282_v47 = vld [vmem:[%s11830_s7 + $0xbb8] sm:$0xff] }
 0x387   : > { %3258 = vmatprep.subr.mxu0 %v6210_v31  ;;  %3329 = vmatprep.subr.mxu1 %v6212_v32  ;;  %v6281_v31 = vld [vmem:[%s11830_s7 + $0xbb0] sm:$0xff]  ;;  %v6276_v32 = vld [vmem:[%s11830_s7 + $0xb88] sm:$0xff] }
 0x388   : > { %3259 = vmatpush2.msra.mxu0 %v6209_v28  ;;  %3330 = vmatpush2.msra.mxu1 %v6211_v39  ;;  %v6275_v28 = vld [vmem:[%s11830_s7 + $0xb80] sm:$0xff]  ;;  %v6277_v39 = vld [vmem:[%s11830_s7 + $0xb90] sm:$0xff] }
 0x389   : > { %3261 = vmatmul.mubr.f32.vlgmr.msra.gmra.mxu0 %v3189_v53  ;;  %3332 = vmatmul.mubr.f32.vlgmr.msra.gmra.mxu1 %v3189_v53  ;;  %v6270_v53 = vld [vmem:[%s11830_s7 + $0xb58] sm:$0xff] }
 0x38a   : > { %3481 = vmatprep.subr.mxu0 %v6328_v52  ;;  %3552 = vmatprep.subr.mxu1 %v6330_v42  ;;  %v6273_v52 = vld [vmem:[%s11830_s7 + $0xb70] sm:$0xff]  ;;  %v6268_v42 = vld [vmem:[%s11830_s7 + $0xb48] sm:$0xff] }
 0x38b   : > { %3482 = vmatpush1.msra.mxu0 %v6327_v19  ;;  %6387 = vmatprep.mubr.msk.f32.mxu0 %vm2504_vm4, %v3477_v55  ;;  %v6267_v19 = vld [vmem:[%s11830_s7 + $0xb40] sm:$0xff] }
 0x38c   : > { %3553 = vmatpush1.msra.mxu1 %v6329_v54  ;;  %6388 = vmatprep.mubr.msk.f32.mxu1 %vm2504_vm4, %v3477_v55  ;;  %v6384_v54 = vld [vmem:[%s11830_s7 + $0xee8] sm:$0xff]  ;;  %v6386_v55 = vld [vmem:[%s11830_s7 + $0xef8] sm:$0xff] }
 0x38d   : > { %3483 = vmatprep.subr.mxu0 %v6324_v56  ;;  %3554 = vmatprep.subr.mxu1 %v6326_v57  ;;  %v6383_v56 = vld [vmem:[%s11830_s7 + $0xee0] sm:$0xff]  ;;  %v6385_v57 = vld [vmem:[%s11830_s7 + $0xef0] sm:$0xff] }
 0x38e   : > { %3484 = vmatpush1.msra.mxu0 %v6323_v58  ;;  %3555 = vmatpush1.msra.mxu1 %v6325_v29  ;;  %v6380_v58 = vld [vmem:[%s11830_s7 + $0xec8] sm:$0xff]  ;;  %v6382_v29 = vld [vmem:[%s11830_s7 + $0xed8] sm:$0xff] }
 0x38f   : > { %3485 = vmatprep.subr.mxu0 %v6320_v59  ;;  %3556 = vmatprep.subr.mxu1 %v6322_v1  ;;  %v6379_v59 = vld [vmem:[%s11830_s7 + $0xec0] sm:$0xff]  ;;  %v6381_v1 = vld [vmem:[%s11830_s7 + $0xed0] sm:$0xff] }
 0x390   : > { %3486 = vmatpush1.msra.mxu0 %v6319_v61  ;;  %3557 = vmatpush1.msra.mxu1 %v6321_v62  ;;  %v6376_v61 = vld [vmem:[%s11830_s7 + $0xea8] sm:$0xff]  ;;  %v6378_v62 = vld [vmem:[%s11830_s7 + $0xeb8] sm:$0xff] }
 0x391   : > { %3487 = vmatprep.subr.mxu0 %v6316_v63  ;;  %3558 = vmatprep.subr.mxu1 %v6318_v0  ;;  %v6375_v63 = vld [vmem:[%s11830_s7 + $0xea0] sm:$0xff]  ;;  %v6377_v0 = vld [vmem:[%s11830_s7 + $0xeb0] sm:$0xff] }
 0x392   : > { %3488 = vmatpush1.msra.mxu0 %v6315_v2  ;;  %3559 = vmatpush1.msra.mxu1 %v6317_v6  ;;  %v6372_v2 = vld [vmem:[%s11830_s7 + $0xe88] sm:$0xff]  ;;  %v6374_v6 = vld [vmem:[%s11830_s7 + $0xe98] sm:$0xff] }
 0x393   : > { %3489 = vmatprep.subr.mxu0 %v6312_v3  ;;  %3560 = vmatprep.subr.mxu1 %v6314_v60  ;;  %v6371_v3 = vld [vmem:[%s11830_s7 + $0xe80] sm:$0xff]  ;;  %v6373_v60 = vld [vmem:[%s11830_s7 + $0xe90] sm:$0xff] }
 0x394   : > { %3490 = vmatpush1.msra.mxu0 %v6311_v7  ;;  %3561 = vmatpush1.msra.mxu1 %v6313_v4  ;;  %v6368_v7 = vld [vmem:[%s11830_s7 + $0xe68] sm:$0xff]  ;;  %v6370_v4 = vld [vmem:[%s11830_s7 + $0xe78] sm:$0xff] }
 0x395   : > { %3491 = vmatprep.subr.mxu0 %v6308_v15  ;;  %3562 = vmatprep.subr.mxu1 %v6310_v9  ;;  %v6367_v15 = vld [vmem:[%s11830_s7 + $0xe60] sm:$0xff]  ;;  %v6369_v9 = vld [vmem:[%s11830_s7 + $0xe70] sm:$0xff] }
 0x396   : > { %3492 = vmatpush1.msra.mxu0 %v6307_v16  ;;  %3563 = vmatpush1.msra.mxu1 %v6309_v14  ;;  %v6364_v16 = vld [vmem:[%s11830_s7 + $0xe48] sm:$0xff]  ;;  %v6366_v14 = vld [vmem:[%s11830_s7 + $0xe58] sm:$0xff] }
 0x397   : > { %3493 = vmatprep.subr.mxu0 %v6304_v13  ;;  %3564 = vmatprep.subr.mxu1 %v6306_v8  ;;  %v6363_v13 = vld [vmem:[%s11830_s7 + $0xe40] sm:$0xff]  ;;  %v6365_v8 = vld [vmem:[%s11830_s7 + $0xe50] sm:$0xff] }
 0x398   : > { %3494 = vmatpush1.msra.mxu0 %v6303_v12  ;;  %3565 = vmatpush1.msra.mxu1 %v6305_v17  ;;  %v6360_v12 = vld [vmem:[%s11830_s7 + $0xe28] sm:$0xff]  ;;  %v6362_v17 = vld [vmem:[%s11830_s7 + $0xe38] sm:$0xff] }
 0x399   : > { %3495 = vmatprep.subr.mxu0 %v6300_v10  ;;  %3566 = vmatprep.subr.mxu1 %v6302_v11  ;;  %v6359_v10 = vld [vmem:[%s11830_s7 + $0xe20] sm:$0xff]  ;;  %v6361_v11 = vld [vmem:[%s11830_s7 + $0xe30] sm:$0xff] }
 0x39a   : > { %3496 = vmatpush1.msra.mxu0 %v6299_v20  ;;  %3567 = vmatpush1.msra.mxu1 %v6301_v21  ;;  %v6356_v20 = vld [vmem:[%s11830_s7 + $0xe08] sm:$0xff]  ;;  %v6358_v21 = vld [vmem:[%s11830_s7 + $0xe18] sm:$0xff] }
 0x39b   : > { %3497 = vmatprep.subr.mxu0 %v6296_v18  ;;  %3568 = vmatprep.subr.mxu1 %v6298_v26  ;;  %v6355_v18 = vld [vmem:[%s11830_s7 + $0xe00] sm:$0xff]  ;;  %v6357_v26 = vld [vmem:[%s11830_s7 + $0xe10] sm:$0xff] }
 0x39c   : > { %3498 = vmatpush1.msra.mxu0 %v6295_v30  ;;  %3569 = vmatpush1.msra.mxu1 %v6297_v24  ;;  %v6352_v30 = vld [vmem:[%s11830_s7 + $0xde8] sm:$0xff]  ;;  %v6354_v24 = vld [vmem:[%s11830_s7 + $0xdf8] sm:$0xff] }
 0x39d   : > { %3499 = vmatprep.subr.mxu0 %v6292_v33  ;;  %3570 = vmatprep.subr.mxu1 %v6294_v44  ;;  %v6351_v33 = vld [vmem:[%s11830_s7 + $0xde0] sm:$0xff]  ;;  %v6353_v44 = vld [vmem:[%s11830_s7 + $0xdf0] sm:$0xff] }
 0x39e   : > { %3500 = vmatpush1.msra.mxu0 %v6291_v5  ;;  %3571 = vmatpush1.msra.mxu1 %v6293_v25  ;;  %v6348_v5 = vld [vmem:[%s11830_s7 + $0xdc8] sm:$0xff]  ;;  %v6350_v25 = vld [vmem:[%s11830_s7 + $0xdd8] sm:$0xff] }
 0x39f   : > { %3501 = vmatprep.subr.mxu0 %v6288_v27  ;;  %3572 = vmatprep.subr.mxu1 %v6290_v34  ;;  %v6347_v27 = vld [vmem:[%s11830_s7 + $0xdc0] sm:$0xff]  ;;  %v6349_v34 = vld [vmem:[%s11830_s7 + $0xdd0] sm:$0xff] }
 0x3a0   : > { %3502 = vmatpush1.msra.mxu0 %v6287_v45  ;;  %3573 = vmatpush1.msra.mxu1 %v6289_v46  ;;  %v6344_v45 = vld [vmem:[%s11830_s7 + $0xda8] sm:$0xff]  ;;  %v6346_v46 = vld [vmem:[%s11830_s7 + $0xdb8] sm:$0xff] }
 0x3a1   : > { %3503 = vmatprep.subr.mxu0 %v6284_v22  ;;  %3574 = vmatprep.subr.mxu1 %v6286_v35  ;;  %v6343_v22 = vld [vmem:[%s11830_s7 + $0xda0] sm:$0xff]  ;;  %v6345_v35 = vld [vmem:[%s11830_s7 + $0xdb0] sm:$0xff] }
 0x3a2   : > { %3504 = vmatpush1.msra.mxu0 %v6283_v36  ;;  %3575 = vmatpush1.msra.mxu1 %v6285_v37  ;;  %v6340_v36 = vld [vmem:[%s11830_s7 + $0xd88] sm:$0xff]  ;;  %v6342_v37 = vld [vmem:[%s11830_s7 + $0xd98] sm:$0xff] }
 0x3a3   : > { %3505 = vmatprep.subr.mxu0 %v6280_v38  ;;  %3576 = vmatprep.subr.mxu1 %v6282_v47  ;;  %v6339_v38 = vld [vmem:[%s11830_s7 + $0xd80] sm:$0xff]  ;;  %v6341_v47 = vld [vmem:[%s11830_s7 + $0xd90] sm:$0xff] }
 0x3a4   : > { %3506 = vmatpush1.msra.mxu0 %v6279_v48  ;;  %3577 = vmatpush1.msra.mxu1 %v6281_v31  ;;  %v3344_v48 = vld [vmem:[#allocation2 + $0x10] sm:$0x7]  ;;  %v6336_v31 = vld [vmem:[%s11830_s7 + $0xd68] sm:$0xff] }
 0x3a5   : > { %3507 = vmatprep.subr.mxu0 %v6276_v32  ;;  %3578 = vmatprep.subr.mxu1 %v6278_v49  ;;  %v6338_v32 = vld [vmem:[%s11830_s7 + $0xd78] sm:$0xff]  ;;  %v3342_v49 = vld [vmem:[#allocation2] sm:$0xf8] }
 0x3a6   : > { %3508 = vmatpush1.msra.mxu0 %v6275_v28  ;;  %3579 = vmatpush1.msra.mxu1 %v6277_v39  ;;  %v6335_v28 = vld [vmem:[%s11830_s7 + $0xd60] sm:$0xff]  ;;  %v6337_v39 = vld [vmem:[%s11830_s7 + $0xd70] sm:$0xff] }
 0x3a7   : > { %3509 = vmatprep.subr.mxu0 %v6272_v40  ;;  %3580 = vmatprep.subr.mxu1 %v6274_v51  ;;  %v3630_v40 = vld [vmem:[#allocation2 + $0x18] sm:$0xf]  ;;  %v6332_v51 = vld [vmem:[%s11830_s7 + $0xd48] sm:$0xff] }
 0x3a8   : > { %3510 = vmatpush1.msra.mxu0 %v6271_v41  ;;  %3581 = vmatpush1.msra.mxu1 %v6273_v52  ;;  %v6334_v41 = vld [vmem:[%s11830_s7 + $0xd58] sm:$0xff]  ;;  %v3473_v52 = vrot.slane %v3344_v48, 3  ;;  %v6406_v48 = vld [vmem:[%s11830_s7 + $0xf88] sm:$0xff] }
 0x3a9   : > { %3511 = vmatprep.subr.mxu0 %v6268_v42  ;;  %3582 = vmatprep.subr.mxu1 %v6270_v53  ;;  %v6331_v42 = vld [vmem:[%s11830_s7 + $0xd40] sm:$0xff]  ;;  %v6333_v53 = vld [vmem:[%s11830_s7 + $0xd50] sm:$0xff] }
 0x3aa   : > { %3512 = vmatpush1.msra.mxu0 %v6267_v19  ;;  %3583 = vmatpush1.msra.mxu1 %v6269_v43  ;;  %v3628_v19 = vld [vmem:[#allocation2 + $0x8] sm:$0xf0]  ;;  %v3472_v43 = vrot.slane %v3342_v49, 3  ;;  %v6407_v49 = vld [vmem:[%s11830_s7 + $0xf90] sm:$0xff] }
 0x3ab   : > { %3517 = vmatprep.subr.mxu0 %v6384_v54  ;;  %3588 = vmatprep.subr.mxu1 %v6386_v55  ;;  %v3760_v54 = vrot.slane %v3630_v40, 4  ;;  %v6450_v55 = vld [vmem:[%s11830_s7 + $0x10e8] sm:$0xff]  ;;  %v6401_v40 = vld [vmem:[%s11830_s7 + $0xf60] sm:$0xff] }
 0x3ac   : > { %3518 = vmatpush2.msra.mxu0 %v6383_v56  ;;  %3589 = vmatpush2.msra.mxu1 %v6385_v57  ;;  %v6452_v56 = vld [vmem:[%s11830_s7 + $0x10f8] sm:$0xff]  ;;  %v3474_v57 = vsel %vm3471_vm8, %v3472_v43, %v3473_v52 }
 0x3ad   : > { %3519 = vmatprep.subr.mxu0 %v6380_v58  ;;  %3590 = vmatprep.subr.mxu1 %v6382_v29  ;;  %v6449_v58 = vld [vmem:[%s11830_s7 + $0x10e0] sm:$0xff]  ;;  %v3759_v29 = vrot.slane %v3628_v19, 4  ;;  %v6400_v52 = vld [vmem:[%s11830_s7 + $0xf58] sm:$0xff]  ;;  %v6394_v19 = vld [vmem:[%s11830_s7 + $0xf28] sm:$0xff] }
 0x3ae   : > { %3520 = vmatpush2.msra.mxu0 %v6379_v59  ;;  %3591 = vmatpush2.msra.mxu1 %v6381_v1  ;;  %v6451_v59 = vld [vmem:[%s11830_s7 + $0x10f0] sm:$0xff]  ;;  %v6396_v43 = vld [vmem:[%s11830_s7 + $0xf38] sm:$0xff] }
 0x3af   : > { %3521 = vmatprep.subr.mxu0 %v6376_v61  ;;  %3592 = vmatprep.subr.mxu1 %v6378_v62  ;;  %v3761_v1 = vsel %vm542_vm0, %v3759_v29, %v3760_v54  ;;  %v6446_v61 = vld [vmem:[%s11830_s7 + $0x10c8] sm:$0xff]  ;;  %v6448_v62 = vld [vmem:[%s11830_s7 + $0x10d8] sm:$0xff]  ;;  %v6393_v54 = vld [vmem:[%s11830_s7 + $0xf20] sm:$0xff] }
 0x3b0   : > { %3522 = vmatpush2.msra.mxu0 %v6375_v63  ;;  %3593 = vmatpush2.msra.mxu1 %v6377_v0  ;;  %v6445_v63 = vld [vmem:[%s11830_s7 + $0x10c0] sm:$0xff]  ;;  %v6447_v0 = vld [vmem:[%s11830_s7 + $0x10d0] sm:$0xff] }
 0x3b1   : > { %3523 = vmatprep.subr.mxu0 %v6372_v2  ;;  %3594 = vmatprep.subr.mxu1 %v6374_v6  ;;  %v6442_v2 = vld [vmem:[%s11830_s7 + $0x10a8] sm:$0xff]  ;;  %v6444_v6 = vld [vmem:[%s11830_s7 + $0x10b8] sm:$0xff]  ;;  %v6391_v29 = vld [vmem:[%s11830_s7 + $0xf10] sm:$0xff] }
 0x3b2   : > { %3524 = vmatpush2.msra.mxu0 %v6371_v3  ;;  %3595 = vmatpush2.msra.mxu1 %v6373_v60  ;;  %v6441_v3 = vld [vmem:[%s11830_s7 + $0x10a0] sm:$0xff]  ;;  %v6443_v60 = vld [vmem:[%s11830_s7 + $0x10b0] sm:$0xff] }
 0x3b3   : > { %3525 = vmatprep.subr.mxu0 %v6368_v7  ;;  %3596 = vmatprep.subr.mxu1 %v6370_v4  ;;  %v6438_v7 = vld [vmem:[%s11830_s7 + $0x1088] sm:$0xff]  ;;  %v6440_v4 = vld [vmem:[%s11830_s7 + $0x1098] sm:$0xff] }
 0x3b4   : > { %3526 = vmatpush2.msra.mxu0 %v6367_v15  ;;  %3597 = vmatpush2.msra.mxu1 %v6369_v9  ;;  %v6437_v15 = vld [vmem:[%s11830_s7 + $0x1080] sm:$0xff]  ;;  %v6439_v9 = vld [vmem:[%s11830_s7 + $0x1090] sm:$0xff] }
 0x3b5   : > { %3527 = vmatprep.subr.mxu0 %v6364_v16  ;;  %3598 = vmatprep.subr.mxu1 %v6366_v14  ;;  %v6434_v16 = vld [vmem:[%s11830_s7 + $0x1068] sm:$0xff]  ;;  %v6436_v14 = vld [vmem:[%s11830_s7 + $0x1078] sm:$0xff] }
 0x3b6   : > { %3528 = vmatpush2.msra.mxu0 %v6363_v13  ;;  %3599 = vmatpush2.msra.mxu1 %v6365_v8  ;;  %v6433_v13 = vld [vmem:[%s11830_s7 + $0x1060] sm:$0xff]  ;;  %v6435_v8 = vld [vmem:[%s11830_s7 + $0x1070] sm:$0xff] }
 0x3b7   : > { %3529 = vmatprep.subr.mxu0 %v6360_v12  ;;  %3600 = vmatprep.subr.mxu1 %v6362_v17  ;;  %v6430_v12 = vld [vmem:[%s11830_s7 + $0x1048] sm:$0xff]  ;;  %v6432_v17 = vld [vmem:[%s11830_s7 + $0x1058] sm:$0xff] }
 0x3b8   : > { %3530 = vmatpush2.msra.mxu0 %v6359_v10  ;;  %3601 = vmatpush2.msra.mxu1 %v6361_v11  ;;  %v6429_v10 = vld [vmem:[%s11830_s7 + $0x1040] sm:$0xff]  ;;  %v6431_v11 = vld [vmem:[%s11830_s7 + $0x1050] sm:$0xff] }
 0x3b9   : > { %3531 = vmatprep.subr.mxu0 %v6356_v20  ;;  %3602 = vmatprep.subr.mxu1 %v6358_v21  ;;  %v6426_v20 = vld [vmem:[%s11830_s7 + $0x1028] sm:$0xff]  ;;  %v6428_v21 = vld [vmem:[%s11830_s7 + $0x1038] sm:$0xff] }
 0x3ba   : > { %3532 = vmatpush2.msra.mxu0 %v6355_v18  ;;  %3603 = vmatpush2.msra.mxu1 %v6357_v26  ;;  %v6425_v18 = vld [vmem:[%s11830_s7 + $0x1020] sm:$0xff]  ;;  %v6427_v26 = vld [vmem:[%s11830_s7 + $0x1030] sm:$0xff] }
 0x3bb   : > { %3533 = vmatprep.subr.mxu0 %v6352_v30  ;;  %3604 = vmatprep.subr.mxu1 %v6354_v24  ;;  %v6422_v30 = vld [vmem:[%s11830_s7 + $0x1008] sm:$0xff]  ;;  %v6424_v24 = vld [vmem:[%s11830_s7 + $0x1018] sm:$0xff] }
 0x3bc   : > { %3534 = vmatpush2.msra.mxu0 %v6351_v33  ;;  %3605 = vmatpush2.msra.mxu1 %v6353_v44  ;;  %v6421_v33 = vld [vmem:[%s11830_s7 + $0x1000] sm:$0xff]  ;;  %v6423_v44 = vld [vmem:[%s11830_s7 + $0x1010] sm:$0xff] }
 0x3bd   : > { %3535 = vmatprep.subr.mxu0 %v6348_v5  ;;  %3606 = vmatprep.subr.mxu1 %v6350_v25  ;;  %v6418_v5 = vld [vmem:[%s11830_s7 + $0xfe8] sm:$0xff]  ;;  %v6420_v25 = vld [vmem:[%s11830_s7 + $0xff8] sm:$0xff] }
 0x3be   : > { %3536 = vmatpush2.msra.mxu0 %v6347_v27  ;;  %3607 = vmatpush2.msra.mxu1 %v6349_v34  ;;  %v6417_v27 = vld [vmem:[%s11830_s7 + $0xfe0] sm:$0xff]  ;;  %v6419_v34 = vld [vmem:[%s11830_s7 + $0xff0] sm:$0xff] }
 0x3bf   : > { %3537 = vmatprep.subr.mxu0 %v6344_v45  ;;  %3608 = vmatprep.subr.mxu1 %v6346_v46  ;;  %v6414_v45 = vld [vmem:[%s11830_s7 + $0xfc8] sm:$0xff]  ;;  %v6416_v46 = vld [vmem:[%s11830_s7 + $0xfd8] sm:$0xff] }
 0x3c0   : > { %3538 = vmatpush2.msra.mxu0 %v6343_v22  ;;  %3609 = vmatpush2.msra.mxu1 %v6345_v35  ;;  %v6413_v22 = vld [vmem:[%s11830_s7 + $0xfc0] sm:$0xff]  ;;  %v6415_v35 = vld [vmem:[%s11830_s7 + $0xfd0] sm:$0xff] }
 0x3c1   : > { %3539 = vmatprep.subr.mxu0 %v6340_v36  ;;  %3610 = vmatprep.subr.mxu1 %v6342_v37  ;;  %v6410_v36 = vld [vmem:[%s11830_s7 + $0xfa8] sm:$0xff]  ;;  %v6412_v37 = vld [vmem:[%s11830_s7 + $0xfb8] sm:$0xff] }
 0x3c2   : > { %3540 = vmatpush2.msra.mxu0 %v6339_v38  ;;  %3611 = vmatpush2.msra.mxu1 %v6341_v47  ;;  %v6409_v38 = vld [vmem:[%s11830_s7 + $0xfa0] sm:$0xff]  ;;  %v6411_v47 = vld [vmem:[%s11830_s7 + $0xfb0] sm:$0xff] }
 0x3c3   : > { %3541 = vmatprep.subr.mxu0 %v6336_v31  ;;  %3612 = vmatprep.subr.mxu1 %v6338_v32  ;;  %v6408_v31 = vld [vmem:[%s11830_s7 + $0xf98] sm:$0xff]  ;;  %v6405_v32 = vld [vmem:[%s11830_s7 + $0xf80] sm:$0xff] }
 0x3c4   : > { %3542 = vmatpush2.msra.mxu0 %v6335_v28  ;;  %3613 = vmatpush2.msra.mxu1 %v6337_v39  ;;  %v6402_v28 = vld [vmem:[%s11830_s7 + $0xf68] sm:$0xff]  ;;  %v6404_v39 = vld [vmem:[%s11830_s7 + $0xf78] sm:$0xff] }
 0x3c5   : > { %3543 = vmatprep.subr.mxu0 %v6332_v51  ;;  %3614 = vmatprep.subr.mxu1 %v6334_v41  ;;  %v6403_v51 = vld [vmem:[%s11830_s7 + $0xf70] sm:$0xff]  ;;  %v6398_v41 = vld [vmem:[%s11830_s7 + $0xf48] sm:$0xff] }
 0x3c6   : > { %3544 = vmatpush2.msra.mxu0 %v6331_v42  ;;  %3615 = vmatpush2.msra.mxu1 %v6333_v53  ;;  %v6397_v42 = vld [vmem:[%s11830_s7 + $0xf40] sm:$0xff]  ;;  %v6399_v53 = vld [vmem:[%s11830_s7 + $0xf50] sm:$0xff] }
 0x3c7   : > { %3546 = vmatmul.mubr.f32.vlgmr.msra.gmra.mxu0 %v3474_v57  ;;  %3617 = vmatmul.mubr.f32.vlgmr.msra.gmra.mxu1 %v3474_v57  ;;  %v6392_v57 = vld [vmem:[%s11830_s7 + $0xf18] sm:$0xff] }
 0x3c8   : > { %3765 = vmatprep.subr.mxu0 %v6450_v55  ;;  %3836 = vmatprep.subr.mxu1 %v6452_v56  ;;  %v6395_v55 = vld [vmem:[%s11830_s7 + $0xf30] sm:$0xff]  ;;  %v6390_v56 = vld [vmem:[%s11830_s7 + $0xf08] sm:$0xff] }
 0x3c9   : > { %3766 = vmatpush1.msra.mxu0 %v6449_v58  ;;  %6509 = vmatprep.mubr.msk.f32.mxu0 %vm2504_vm4, %v3761_v1  ;;  %v6389_v58 = vld [vmem:[%s11830_s7 + $0xf00] sm:$0xff] }
 0x3ca   : > { %3837 = vmatpush1.msra.mxu1 %v6451_v59  ;;  %6510 = vmatprep.mubr.msk.f32.mxu1 %vm2504_vm4, %v3761_v1  ;;  %v6506_v59 = vld [vmem:[%s11830_s7 + $0x12a8] sm:$0xff]  ;;  %v6508_v1 = vld [vmem:[%s11830_s7 + $0x12b8] sm:$0xff] }
 0x3cb   : > { %3767 = vmatprep.subr.mxu0 %v6446_v61  ;;  %3838 = vmatprep.subr.mxu1 %v6448_v62  ;;  %v6505_v61 = vld [vmem:[%s11830_s7 + $0x12a0] sm:$0xff]  ;;  %v6507_v62 = vld [vmem:[%s11830_s7 + $0x12b0] sm:$0xff] }
 0x3cc   : > { %3768 = vmatpush1.msra.mxu0 %v6445_v63  ;;  %3839 = vmatpush1.msra.mxu1 %v6447_v0  ;;  %v6502_v63 = vld [vmem:[%s11830_s7 + $0x1288] sm:$0xff]  ;;  %v6504_v0 = vld [vmem:[%s11830_s7 + $0x1298] sm:$0xff] }
 0x3cd   : > { %3769 = vmatprep.subr.mxu0 %v6442_v2  ;;  %3840 = vmatprep.subr.mxu1 %v6444_v6  ;;  %v6501_v2 = vld [vmem:[%s11830_s7 + $0x1280] sm:$0xff]  ;;  %v6503_v6 = vld [vmem:[%s11830_s7 + $0x1290] sm:$0xff] }
 0x3ce   : > { %3770 = vmatpush1.msra.mxu0 %v6441_v3  ;;  %3841 = vmatpush1.msra.mxu1 %v6443_v60  ;;  %v6498_v3 = vld [vmem:[%s11830_s7 + $0x1268] sm:$0xff]  ;;  %v6500_v60 = vld [vmem:[%s11830_s7 + $0x1278] sm:$0xff] }
 0x3cf   : > { %3771 = vmatprep.subr.mxu0 %v6438_v7  ;;  %3842 = vmatprep.subr.mxu1 %v6440_v4  ;;  %v6497_v7 = vld [vmem:[%s11830_s7 + $0x1260] sm:$0xff]  ;;  %v6499_v4 = vld [vmem:[%s11830_s7 + $0x1270] sm:$0xff] }
 0x3d0   : > { %3772 = vmatpush1.msra.mxu0 %v6437_v15  ;;  %3843 = vmatpush1.msra.mxu1 %v6439_v9  ;;  %v6494_v15 = vld [vmem:[%s11830_s7 + $0x1248] sm:$0xff]  ;;  %v6496_v9 = vld [vmem:[%s11830_s7 + $0x1258] sm:$0xff] }
 0x3d1   : > { %3773 = vmatprep.subr.mxu0 %v6434_v16  ;;  %3844 = vmatprep.subr.mxu1 %v6436_v14  ;;  %v6493_v16 = vld [vmem:[%s11830_s7 + $0x1240] sm:$0xff]  ;;  %v6495_v14 = vld [vmem:[%s11830_s7 + $0x1250] sm:$0xff] }
 0x3d2   : > { %3774 = vmatpush1.msra.mxu0 %v6433_v13  ;;  %3845 = vmatpush1.msra.mxu1 %v6435_v8  ;;  %v6490_v13 = vld [vmem:[%s11830_s7 + $0x1228] sm:$0xff]  ;;  %v6492_v8 = vld [vmem:[%s11830_s7 + $0x1238] sm:$0xff] }
 0x3d3   : > { %3775 = vmatprep.subr.mxu0 %v6430_v12  ;;  %3846 = vmatprep.subr.mxu1 %v6432_v17  ;;  %v6489_v12 = vld [vmem:[%s11830_s7 + $0x1220] sm:$0xff]  ;;  %v6491_v17 = vld [vmem:[%s11830_s7 + $0x1230] sm:$0xff] }
 0x3d4   : > { %3776 = vmatpush1.msra.mxu0 %v6429_v10  ;;  %3847 = vmatpush1.msra.mxu1 %v6431_v11  ;;  %v6486_v10 = vld [vmem:[%s11830_s7 + $0x1208] sm:$0xff]  ;;  %v6488_v11 = vld [vmem:[%s11830_s7 + $0x1218] sm:$0xff] }
 0x3d5   : > { %3777 = vmatprep.subr.mxu0 %v6426_v20  ;;  %3848 = vmatprep.subr.mxu1 %v6428_v21  ;;  %v6485_v20 = vld [vmem:[%s11830_s7 + $0x1200] sm:$0xff]  ;;  %v6487_v21 = vld [vmem:[%s11830_s7 + $0x1210] sm:$0xff] }
 0x3d6   : > { %3778 = vmatpush1.msra.mxu0 %v6425_v18  ;;  %3849 = vmatpush1.msra.mxu1 %v6427_v26  ;;  %v6482_v18 = vld [vmem:[%s11830_s7 + $0x11e8] sm:$0xff]  ;;  %v6484_v26 = vld [vmem:[%s11830_s7 + $0x11f8] sm:$0xff] }
 0x3d7   : > { %3779 = vmatprep.subr.mxu0 %v6422_v30  ;;  %3850 = vmatprep.subr.mxu1 %v6424_v24  ;;  %v6481_v30 = vld [vmem:[%s11830_s7 + $0x11e0] sm:$0xff]  ;;  %v6483_v24 = vld [vmem:[%s11830_s7 + $0x11f0] sm:$0xff] }
 0x3d8   : > { %3780 = vmatpush1.msra.mxu0 %v6421_v33  ;;  %3851 = vmatpush1.msra.mxu1 %v6423_v44  ;;  %v6478_v33 = vld [vmem:[%s11830_s7 + $0x11c8] sm:$0xff]  ;;  %v6480_v44 = vld [vmem:[%s11830_s7 + $0x11d8] sm:$0xff] }
 0x3d9   : > { %3781 = vmatprep.subr.mxu0 %v6418_v5  ;;  %3852 = vmatprep.subr.mxu1 %v6420_v25  ;;  %v6477_v5 = vld [vmem:[%s11830_s7 + $0x11c0] sm:$0xff]  ;;  %v6479_v25 = vld [vmem:[%s11830_s7 + $0x11d0] sm:$0xff] }
 0x3da   : > { %3782 = vmatpush1.msra.mxu0 %v6417_v27  ;;  %3853 = vmatpush1.msra.mxu1 %v6419_v34  ;;  %v6474_v27 = vld [vmem:[%s11830_s7 + $0x11a8] sm:$0xff]  ;;  %v6476_v34 = vld [vmem:[%s11830_s7 + $0x11b8] sm:$0xff] }
 0x3db   : > { %3783 = vmatprep.subr.mxu0 %v6414_v45  ;;  %3854 = vmatprep.subr.mxu1 %v6416_v46  ;;  %v6473_v45 = vld [vmem:[%s11830_s7 + $0x11a0] sm:$0xff]  ;;  %v6475_v46 = vld [vmem:[%s11830_s7 + $0x11b0] sm:$0xff] }
 0x3dc   : > { %3784 = vmatpush1.msra.mxu0 %v6413_v22  ;;  %3855 = vmatpush1.msra.mxu1 %v6415_v35  ;;  %v6470_v22 = vld [vmem:[%s11830_s7 + $0x1188] sm:$0xff]  ;;  %v6472_v35 = vld [vmem:[%s11830_s7 + $0x1198] sm:$0xff] }
 0x3dd   : > { %3785 = vmatprep.subr.mxu0 %v6410_v36  ;;  %3856 = vmatprep.subr.mxu1 %v6412_v37  ;;  %v6469_v36 = vld [vmem:[%s11830_s7 + $0x1180] sm:$0xff]  ;;  %v6471_v37 = vld [vmem:[%s11830_s7 + $0x1190] sm:$0xff] }
 0x3de   : > { %3786 = vmatpush1.msra.mxu0 %v6409_v38  ;;  %3857 = vmatpush1.msra.mxu1 %v6411_v47  ;;  %v6466_v38 = vld [vmem:[%s11830_s7 + $0x1168] sm:$0xff]  ;;  %v6468_v47 = vld [vmem:[%s11830_s7 + $0x1178] sm:$0xff] }
 0x3df   : > { %3787 = vmatprep.subr.mxu0 %v6406_v48  ;;  %3858 = vmatprep.subr.mxu1 %v6408_v31  ;;  %v6465_v48 = vld [vmem:[%s11830_s7 + $0x1160] sm:$0xff]  ;;  %v6467_v31 = vld [vmem:[%s11830_s7 + $0x1170] sm:$0xff] }
 0x3e0   : > { %3788 = vmatpush1.msra.mxu0 %v6405_v32  ;;  %3859 = vmatpush1.msra.mxu1 %v6407_v49  ;;  %v6462_v32 = vld [vmem:[%s11830_s7 + $0x1148] sm:$0xff]  ;;  %v6464_v49 = vld [vmem:[%s11830_s7 + $0x1158] sm:$0xff] }
 0x3e1   : > { %3789 = vmatprep.subr.mxu0 %v6402_v28  ;;  %3860 = vmatprep.subr.mxu1 %v6404_v39  ;;  %v6461_v28 = vld [vmem:[%s11830_s7 + $0x1140] sm:$0xff]  ;;  %v6463_v39 = vld [vmem:[%s11830_s7 + $0x1150] sm:$0xff] }
 0x3e2   : > { %3790 = vmatpush1.msra.mxu0 %v6401_v40  ;;  %3861 = vmatpush1.msra.mxu1 %v6403_v51  ;;  %v3629_v40 = vld [vmem:[#allocation2 + $0x10] sm:$0xf]  ;;  %v6458_v51 = vld [vmem:[%s11830_s7 + $0x1128] sm:$0xff] }
 0x3e3   : > { %3791 = vmatprep.subr.mxu0 %v6398_v41  ;;  %3862 = vmatprep.subr.mxu1 %v6400_v52  ;;  %v6460_v41 = vld [vmem:[%s11830_s7 + $0x1138] sm:$0xff]  ;;  %v6457_v52 = vld [vmem:[%s11830_s7 + $0x1120] sm:$0xff] }
 0x3e4   : > { %3792 = vmatpush1.msra.mxu0 %v6397_v42  ;;  %3863 = vmatpush1.msra.mxu1 %v6399_v53  ;;  %v6459_v42 = vld [vmem:[%s11830_s7 + $0x1130] sm:$0xff]  ;;  %v3627_v53 = vld [vmem:[#allocation2] sm:$0xf0] }
 0x3e5   : > { %3793 = vmatprep.subr.mxu0 %v6394_v19  ;;  %3864 = vmatprep.subr.mxu1 %v6396_v43  ;;  %v6454_v19 = vld [vmem:[%s11830_s7 + $0x1108] sm:$0xff]  ;;  %v6456_v43 = vld [vmem:[%s11830_s7 + $0x1118] sm:$0xff] }
 0x3e6   : > { %3794 = vmatpush1.msra.mxu0 %v6393_v54  ;;  %3865 = vmatpush1.msra.mxu1 %v6395_v55  ;;  %v3757_v54 = vrot.slane %v3629_v40, 4  ;;  %v6453_v55 = vld [vmem:[%s11830_s7 + $0x1100] sm:$0xff] }
 0x3e7   : > { %3795 = vmatprep.subr.mxu0 %v6390_v56  ;;  %3866 = vmatprep.subr.mxu1 %v6392_v57  ;;  %v6455_v56 = vld [vmem:[%s11830_s7 + $0x1110] sm:$0xff]  ;;  %v3756_v57 = vrot.slane %v3627_v53, 4  ;;  %v4269_v53 = vld [vmem:[%s11834_s11 + $0xf8] sm:$0xff] }
 0x3e8   : > { %3796 = vmatpush1.msra.mxu0 %v6389_v58  ;;  %3867 = vmatpush1.msra.mxu1 %v6391_v29  ;;  %v2836_v29 = vpop.f32.mrf.mxu0 }
 0x3e9   : > { %3801 = vmatprep.subr.mxu0 %v6506_v59  ;;  %3872 = vmatprep.subr.mxu1 %v6508_v1  ;;  %v3758_v58 = vsel %vm542_vm0, %v3756_v57, %v3757_v54  ;;  %v2907_v59 = vpop.f32.mrf.mxu1  ;;  %v4332_v54 = vld [vmem:[%s11834_s11 + $0x2f0] sm:$0xff]  ;;  %v4330_v57 = vld [vmem:[%s11834_s11 + $0x2e0] sm:$0xff] }
 0x3ea   : > { %3802 = vmatpush2.msra.mxu0 %v6505_v61  ;;  %3873 = vmatpush2.msra.mxu1 %v6507_v62  ;;  %v2838_v1 = vpop.f32.mrf.mxu0 }
 0x3eb   : > { %3803 = vmatprep.subr.mxu0 %v6502_v63  ;;  %3874 = vmatprep.subr.mxu1 %v6504_v0  ;;  %v2909_v61 = vpop.f32.mrf.mxu1 }
 0x3ec   : > { %3804 = vmatpush2.msra.mxu0 %v6501_v2  ;;  %3875 = vmatpush2.msra.mxu1 %v6503_v6 }
 0x3ed   : > { %3805 = vmatprep.subr.mxu0 %v6498_v3  ;;  %3876 = vmatprep.subr.mxu1 %v6500_v60 }
 0x3ee   : > { %3806 = vmatpush2.msra.mxu0 %v6497_v7  ;;  %3877 = vmatpush2.msra.mxu1 %v6499_v4 }
 0x3ef   : > { %3807 = vmatprep.subr.mxu0 %v6494_v15  ;;  %3878 = vmatprep.subr.mxu1 %v6496_v9 }
 0x3f0   : > { %3808 = vmatpush2.msra.mxu0 %v6493_v16  ;;  %3879 = vmatpush2.msra.mxu1 %v6495_v14 }
 0x3f1   : > { %3809 = vmatprep.subr.mxu0 %v6490_v13  ;;  %3880 = vmatprep.subr.mxu1 %v6492_v8 }
 0x3f2   : > { %3810 = vmatpush2.msra.mxu0 %v6489_v12  ;;  %3881 = vmatpush2.msra.mxu1 %v6491_v17  ;;  %v3911_v17 = vld [vmem:[%s11831_s8] sm:$0xf] }
 0x3f3   : > { %3811 = vmatprep.subr.mxu0 %v6486_v10  ;;  %3882 = vmatprep.subr.mxu1 %v6488_v11 }
 0x3f4   : > { %3812 = vmatpush2.msra.mxu0 %v6485_v20  ;;  %3883 = vmatpush2.msra.mxu1 %v6487_v21 }
 0x3f5   : > { %3813 = vmatprep.subr.mxu0 %v6482_v18  ;;  %3884 = vmatprep.subr.mxu1 %v6484_v26 }
 0x3f6   : > { %3814 = vmatpush2.msra.mxu0 %v6481_v30  ;;  %3885 = vmatpush2.msra.mxu1 %v6483_v24  ;;  %v11863_v24 = vld [vmem:[#allocation8_spill] sm:$0xff] }
 0x3f7   : > { %3815 = vmatprep.subr.mxu0 %v6478_v33  ;;  %3886 = vmatprep.subr.mxu1 %v6480_v44  ;;  %v3916_v33 = vrot.slane %v3911_v17, %v11863_v24 }
 0x3f8   : > { %3816 = vmatpush2.msra.mxu0 %v6477_v5  ;;  %3887 = vmatpush2.msra.mxu1 %v6479_v25  ;;  %v11864_v5 = vld [vmem:[#allocation9_spill] sm:$0xff] }
 0x3f9   : > { %3817 = vmatprep.subr.mxu0 %v6474_v27  ;;  %3888 = vmatprep.subr.mxu1 %v6476_v34  ;;  %v3924_v25 = vrot.slane %v3911_v17, %v11864_v5  ;;  %v3920_v27 = vrot.slane %v3911_v17, %v7310_v23  ;;  %v11865_v34 = vld [vmem:[#allocation10_spill] sm:$0xff] }
 0x3fa   : > { %3818 = vmatpush2.msra.mxu0 %v6473_v45  ;;  %3889 = vmatpush2.msra.mxu1 %v6475_v46  ;;  %v3928_v45 = vrot.slane %v3911_v17, %v11865_v34  ;;  %v4319_v17 = vld [vmem:[%s11834_s11 + $0x288] sm:$0xff] }
 0x3fb   : > { %3819 = vmatprep.subr.mxu0 %v6470_v22  ;;  %3890 = vmatprep.subr.mxu1 %v6472_v35 }
 0x3fc   : > { %3820 = vmatpush2.msra.mxu0 %v6469_v36  ;;  %3891 = vmatpush2.msra.mxu1 %v6471_v37 }
 0x3fd   : > { %3821 = vmatprep.subr.mxu0 %v6466_v38  ;;  %3892 = vmatprep.subr.mxu1 %v6468_v47 }
 0x3fe   : > { %3822 = vmatpush2.msra.mxu0 %v6465_v48  ;;  %3893 = vmatpush2.msra.mxu1 %v6467_v31 }
 0x3ff   : > { %3823 = vmatprep.subr.mxu0 %v6462_v32  ;;  %3894 = vmatprep.subr.mxu1 %v6464_v49 }
 0x400   : > { %3824 = vmatpush2.msra.mxu0 %v6461_v28  ;;  %3895 = vmatpush2.msra.mxu1 %v6463_v39 }
 0x401   : > { %3825 = vmatprep.subr.mxu0 %v6458_v51  ;;  %3896 = vmatprep.subr.mxu1 %v6460_v41 }
 0x402   : > { %3826 = vmatpush2.msra.mxu0 %v6457_v52  ;;  %3897 = vmatpush2.msra.mxu1 %v6459_v42  ;;  %v3941_v52 = vld [vmem:[%s11832_s9] sm:$0xf] }
 0x403   : > { %3827 = vmatprep.subr.mxu0 %v6454_v19  ;;  %3898 = vmatprep.subr.mxu1 %v6456_v43  ;;  %v4088_v42 = vld [vmem:[%s11833_s10] sm:$0xf]  ;;  %v4333_v19 = vld [vmem:[%s11834_s11 + $0x2f8] sm:$0xff]  ;;  %v4268_v43 = vld [vmem:[%s11834_s11 + $0xf0] sm:$0xff] }
 0x404   : > { %3828 = vmatpush2.msra.mxu0 %v6453_v55  ;;  %3899 = vmatpush2.msra.mxu1 %v6455_v56  ;;  %v4267_v55 = vld [vmem:[%s11834_s11 + $0xe8] sm:$0xff]  ;;  %v4266_v56 = vld [vmem:[%s11834_s11 + $0xe0] sm:$0xff] }
 0x405   : > { %3830 = vmatmul.mubr.f32.vlgmr.msra.gmra.mxu0 %v3758_v58  ;;  %3901 = vmatmul.mubr.f32.vlgmr.msra.gmra.mxu1 %v3758_v58  ;;  %v4265_v58 = vld [vmem:[%s11834_s11 + $0xd8] sm:$0xff] }
 0x406   : > { %4010 = vmatprep.mubr.f32.mxu0 %v11862_v50  ;;  %4081 = vmatprep.mubr.f32.mxu1 %v11862_v50 }
 0x40b   : > { %v2981_v62 = vpop.f32.mrf.mxu0  ;;  %v3052_v63 = vpop.f32.mrf.mxu1 }
 0x40c   : > { %v2982_v9 = vadd.f32 %v2981_v62, %v2836_v29  ;;  %v3053_v16 = vadd.f32 %v3052_v63, %v2907_v59  ;;  %v4329_v29 = vld [vmem:[%s11834_s11 + $0x2d8] sm:$0xff]  ;;  %v4264_v59 = vld [vmem:[%s11834_s11 + $0xd0] sm:$0xff]  ;;  %v4327_v62 = vld [vmem:[%s11834_s11 + $0x2c8] sm:$0xff] }
 0x40d   : > { %v2983_v0 = vpop.f32.mrf.mxu0  ;;  %v3054_v2 = vpop.f32.mrf.mxu1  ;;  %v4262_v63 = vld [vmem:[%s11834_s11 + $0xc0] sm:$0xff] }
 0x40e   : > { %v2984_v14 = vadd.f32 %v2983_v0, %v2838_v1  ;;  %v3055_v13 = vadd.f32 %v3054_v2, %v2909_v61  ;;  %v4328_v1 = vld [vmem:[%s11834_s11 + $0x2d0] sm:$0xff]  ;;  %v4263_v61 = vld [vmem:[%s11834_s11 + $0xc8] sm:$0xff]  ;;  %v4326_v0 = vld [vmem:[%s11834_s11 + $0x2c0] sm:$0xff] }
 0x40f   : > { %v4261_v2 = vld [vmem:[%s11834_s11 + $0xb8] sm:$0xff] }
 0x449   : > { %v3262_v6 = vpop.f32.mrf.mxu0  ;;  %v3333_v3 = vpop.f32.mrf.mxu1 }
 0x44a   : > { %v3338_v8 = vadd.f32 %v3262_v6, %v2982_v9  ;;  %v3340_v12 = vadd.f32 %v3333_v3, %v3053_v16  ;;  %v4325_v6 = vld [vmem:[%s11834_s11 + $0x2b8] sm:$0xff]  ;;  %v4260_v3 = vld [vmem:[%s11834_s11 + $0xb0] sm:$0xff]  ;;  %v4322_v9 = vld [vmem:[%s11834_s11 + $0x2a0] sm:$0xff] }
 0x44b   : > { %v3264_v60 = vpop.f32.mrf.mxu0  ;;  %v3335_v7 = vpop.f32.mrf.mxu1  ;;  %v4257_v16 = vld [vmem:[%s11834_s11 + $0x98] sm:$0xff] }
 0x44c   : > { %v3339_v20 = vadd.f32 %v3264_v60, %v2984_v14  ;;  %v3341_v21 = vadd.f32 %v3335_v7, %v3055_v13  ;;  %v4324_v60 = vld [vmem:[%s11834_s11 + $0x2b0] sm:$0xff]  ;;  %v4259_v7 = vld [vmem:[%s11834_s11 + $0xa8] sm:$0xff]  ;;  %v4321_v14 = vld [vmem:[%s11834_s11 + $0x298] sm:$0xff] }
 0x44d   : > { %v4256_v13 = vld [vmem:[%s11834_s11 + $0x90] sm:$0xff] }
 0x487   : > { %v3547_v4 = vpop.f32.mrf.mxu0  ;;  %v3618_v15 = vpop.f32.mrf.mxu1 }
 0x488   : > { %v3623_v18 = vadd.f32 %v3547_v4, %v3338_v8  ;;  %v3625_v26 = vadd.f32 %v3618_v15, %v3340_v12  ;;  %v4323_v4 = vld [vmem:[%s11834_s11 + $0x2a8] sm:$0xff]  ;;  %v4258_v15 = vld [vmem:[%s11834_s11 + $0xa0] sm:$0xff]  ;;  %v4320_v8 = vld [vmem:[%s11834_s11 + $0x290] sm:$0xff] }
 0x489   : > { %v3549_v10 = vpop.f32.mrf.mxu0  ;;  %v3620_v11 = vpop.f32.mrf.mxu1  ;;  %v4255_v12 = vld [vmem:[%s11834_s11 + $0x88] sm:$0xff] }
 0x48a   : > { %v3624_v46 = vadd.f32 %v3549_v10, %v3339_v20  ;;  %v3626_v22 = vadd.f32 %v3620_v11, %v3341_v21  ;;  %v4254_v10 = vld [vmem:[%s11834_s11 + $0x80] sm:$0xff]  ;;  %v4253_v20 = vld [vmem:[%s11834_s11 + $0x78] sm:$0xff] }
 0x48b   : > { %v4318_v11 = vld [vmem:[%s11834_s11 + $0x280] sm:$0xff]  ;;  %v4317_v21 = vld [vmem:[%s11834_s11 + $0x278] sm:$0xff] }
 0x4c5   : > { %v3831_v30 = vpop.f32.mrf.mxu0  ;;  %v3902_v44 = vpop.f32.mrf.mxu1 }
 0x4c6   : > { %v3907_v35 = vadd.f32 %v3831_v30, %v3623_v18  ;;  %v3909_v36 = vadd.f32 %v3902_v44, %v3625_v26  ;;  %v4252_v18 = vld [vmem:[%s11834_s11 + $0x70] sm:$0xff]  ;;  %v4251_v30 = vld [vmem:[%s11834_s11 + $0x68] sm:$0xff]  ;;  %v4250_v44 = vld [vmem:[%s11834_s11 + $0x60] sm:$0xff] }
 0x4c7   : > { %v3833_v37 = vpop.f32.mrf.mxu0  ;;  %v3904_v38 = vpop.f32.mrf.mxu1  ;;  %v4316_v26 = vld [vmem:[%s11834_s11 + $0x270] sm:$0xff] }
 0x4c8   : > { %v3908_v47 = vadd.f32 %v3833_v37, %v3624_v46  ;;  %v3910_v48 = vadd.f32 %v3904_v38, %v3626_v22  ;;  %v3933_v31 = vadd.f32 %v3916_v33, %v3907_v35  ;;  %v3935_v32 = vadd.f32 %v3924_v25, %v3909_v36  ;;  %v4315_v33 = vld [vmem:[%s11834_s11 + $0x268] sm:$0xff]  ;;  %v4314_v25 = vld [vmem:[%s11834_s11 + $0x260] sm:$0xff]  ;;  %v4248_v46 = vld [vmem:[%s11834_s11 + $0x50] sm:$0xff] }
 0x4c9   : > { %v4312_v22 = vld [vmem:[%s11834_s11 + $0x250] sm:$0xff]  ;;  %v4247_v35 = vld [vmem:[%s11834_s11 + $0x48] sm:$0xff]  ;;  %v4246_v37 = vld [vmem:[%s11834_s11 + $0x40] sm:$0xff] }
 0x4ca   : > { %v3934_v49 = vadd.f32 %v3920_v27, %v3908_v47  ;;  %v3936_v28 = vadd.f32 %v3928_v45, %v3910_v48  ;;  %v3937_v51 = vmax.f32 %v3933_v31, 0.0  ;;  %v3939_v41 = vmax.f32 %v3935_v32, 0.0  ;;  %v4249_v27 = vld [vmem:[%s11834_s11 + $0x58] sm:$0xff]  ;;  %v4311_v36 = vld [vmem:[%s11834_s11 + $0x248] sm:$0xff]  ;;  %v4310_v38 = vld [vmem:[%s11834_s11 + $0x240] sm:$0xff] }
 0x4cb   : > { %v4313_v45 = vld [vmem:[%s11834_s11 + $0x258] sm:$0xff]  ;;  %v4244_v31 = vld [vmem:[%s11834_s11 + $0x30] sm:$0xff] }
 0x4cc   : > { %v3938_v39 = vmax.f32 %v3934_v49, 0.0  ;;  %v3940_v40 = vmax.f32 %v3936_v28, 0.0  ;;  %v4245_v47 = vld [vmem:[%s11834_s11 + $0x38] sm:$0xff]  ;;  %v4308_v32 = vld [vmem:[%s11834_s11 + $0x230] sm:$0xff]  ;;  %v4243_v49 = vld [vmem:[%s11834_s11 + $0x28] sm:$0xff] }
 0x4cd   : > { %v4309_v48 = vld [vmem:[%s11834_s11 + $0x238] sm:$0xff]  ;;  %v4307_v28 = vld [vmem:[%s11834_s11 + $0x228] sm:$0xff] }
 0x4ce   : > { %3976 = vmatprep.subr.mxu0 %v3938_v39  ;;  %4047 = vmatprep.subr.mxu1 %v3940_v40 }
 0x4cf   : > { %3977 = vmatpush1.msra.mxu0 %v3937_v51  ;;  %4048 = vmatpush1.msra.mxu1 %v3939_v41 }
 0x4d0   : > { %6511 = vmatmul.mubr.msk.f32.vlgmr.msra.gmra.mxu0 %vm3942_vm9, %v3941_v52  ;;  %6512 = vmatmul.mubr.msk.f32.vlgmr.msra.gmra.mxu1 %vm3942_vm9, %v3941_v52  ;;  %v4238_v52 = vld [vmem:[%s11834_s11] sm:$0xff] }
 0x4d1   : > { %4122 = vmatprep.subr.mxu0 %v3938_v39  ;;  %4193 = vmatprep.subr.mxu1 %v3940_v40  ;;  %v4242_v39 = vld [vmem:[%s11834_s11 + $0x20] sm:$0xff]  ;;  %v4241_v40 = vld [vmem:[%s11834_s11 + $0x18] sm:$0xff] }
 0x4d2   : > { %4123 = vmatpush1.msra.mxu0 %v3937_v51  ;;  %4194 = vmatpush1.msra.mxu1 %v3939_v41  ;;  %v4240_v51 = vld [vmem:[%s11834_s11 + $0x10] sm:$0xff]  ;;  %v4239_v41 = vld [vmem:[%s11834_s11 + $0x8] sm:$0xff] }
 0x4d3   : > { %4156 = vmatprep.mubr.f32.mxu0 %v11862_v50  ;;  %4227 = vmatprep.mubr.f32.mxu1 %v11862_v50  ;;  %v4331_v50 = vld [vmem:[%s11834_s11 + $0x2e8] sm:$0xff] }
 0x4d4   : > { %6513 = vmatmul.mubr.msk.f32.vlgmr.msra.gmra.mxu0 %vm3942_vm9, %v4088_v42  ;;  %6514 = vmatmul.mubr.msk.f32.vlgmr.msra.gmra.mxu1 %vm3942_vm9, %v4088_v42  ;;  %v4301_v42 = vld [vmem:[%s11834_s11 + $0x1f8] sm:$0xff] }
 0x4d5   : > { %4342 = vmatprep.subr.mxu0 %v4269_v53  ;;  %4413 = vmatprep.subr.mxu1 %v4333_v19  ;;  %v4300_v53 = vld [vmem:[%s11834_s11 + $0x1f0] sm:$0xff]  ;;  %v4299_v19 = vld [vmem:[%s11834_s11 + $0x1e8] sm:$0xff] }
 0x4d6   : > { %4343 = vmatpush1.msra.mxu0 %v4268_v43  ;;  %4414 = vmatpush1.msra.mxu1 %v4332_v54  ;;  %v4298_v43 = vld [vmem:[%s11834_s11 + $0x1e0] sm:$0xff]  ;;  %v4297_v54 = vld [vmem:[%s11834_s11 + $0x1d8] sm:$0xff] }
 0x4d7   : > { %4344 = vmatprep.subr.mxu0 %v4267_v55  ;;  %4415 = vmatprep.subr.mxu1 %v4331_v50  ;;  %v4296_v55 = vld [vmem:[%s11834_s11 + $0x1d0] sm:$0xff]  ;;  %v4295_v50 = vld [vmem:[%s11834_s11 + $0x1c8] sm:$0xff] }
 0x4d8   : > { %4345 = vmatpush1.msra.mxu0 %v4266_v56  ;;  %4416 = vmatpush1.msra.mxu1 %v4330_v57  ;;  %v4294_v56 = vld [vmem:[%s11834_s11 + $0x1c0] sm:$0xff]  ;;  %v4293_v57 = vld [vmem:[%s11834_s11 + $0x1b8] sm:$0xff] }
 0x4d9   : > { %4346 = vmatprep.subr.mxu0 %v4265_v58  ;;  %4417 = vmatprep.subr.mxu1 %v4329_v29  ;;  %v4292_v58 = vld [vmem:[%s11834_s11 + $0x1b0] sm:$0xff]  ;;  %v4291_v29 = vld [vmem:[%s11834_s11 + $0x1a8] sm:$0xff] }
 0x4da   : > { %4347 = vmatpush1.msra.mxu0 %v4264_v59  ;;  %4418 = vmatpush1.msra.mxu1 %v4328_v1  ;;  %v4290_v59 = vld [vmem:[%s11834_s11 + $0x1a0] sm:$0xff]  ;;  %v4289_v1 = vld [vmem:[%s11834_s11 + $0x198] sm:$0xff] }
 0x4db   : > { %4348 = vmatprep.subr.mxu0 %v4263_v61  ;;  %4419 = vmatprep.subr.mxu1 %v4327_v62  ;;  %v4288_v61 = vld [vmem:[%s11834_s11 + $0x190] sm:$0xff]  ;;  %v4287_v62 = vld [vmem:[%s11834_s11 + $0x188] sm:$0xff] }
 0x4dc   : > { %4349 = vmatpush1.msra.mxu0 %v4262_v63  ;;  %4420 = vmatpush1.msra.mxu1 %v4326_v0  ;;  %v4286_v63 = vld [vmem:[%s11834_s11 + $0x180] sm:$0xff]  ;;  %v4285_v0 = vld [vmem:[%s11834_s11 + $0x178] sm:$0xff] }
 0x4dd   : > { %4350 = vmatprep.subr.mxu0 %v4261_v2  ;;  %4421 = vmatprep.subr.mxu1 %v4325_v6  ;;  %v4284_v2 = vld [vmem:[%s11834_s11 + $0x170] sm:$0xff]  ;;  %v4283_v6 = vld [vmem:[%s11834_s11 + $0x168] sm:$0xff] }
 0x4de   : > { %4351 = vmatpush1.msra.mxu0 %v4260_v3  ;;  %4422 = vmatpush1.msra.mxu1 %v4324_v60  ;;  %v4282_v3 = vld [vmem:[%s11834_s11 + $0x160] sm:$0xff]  ;;  %v4281_v60 = vld [vmem:[%s11834_s11 + $0x158] sm:$0xff] }
 0x4df   : > { %4352 = vmatprep.subr.mxu0 %v4259_v7  ;;  %4423 = vmatprep.subr.mxu1 %v4323_v4  ;;  %v4280_v7 = vld [vmem:[%s11834_s11 + $0x150] sm:$0xff]  ;;  %v4279_v4 = vld [vmem:[%s11834_s11 + $0x148] sm:$0xff] }
 0x4e0   : > { %4353 = vmatpush1.msra.mxu0 %v4258_v15  ;;  %4424 = vmatpush1.msra.mxu1 %v4322_v9  ;;  %v4278_v15 = vld [vmem:[%s11834_s11 + $0x140] sm:$0xff] }
 0x4e1   : > { %4354 = vmatprep.subr.mxu0 %v4257_v16  ;;  %4425 = vmatprep.subr.mxu1 %v4321_v14  ;;  %v4306_v9 = vld [vmem:[%s11834_s11 + $0x220] sm:$0xff]  ;;  %v4277_v16 = vld [vmem:[%s11834_s11 + $0x138] sm:$0xff] }
 0x4e2   : > { %4355 = vmatpush1.msra.mxu0 %v4256_v13  ;;  %4426 = vmatpush1.msra.mxu1 %v4320_v8  ;;  %v4305_v14 = vld [vmem:[%s11834_s11 + $0x218] sm:$0xff]  ;;  %v4276_v13 = vld [vmem:[%s11834_s11 + $0x130] sm:$0xff] }
 0x4e3   : > { %4356 = vmatprep.subr.mxu0 %v4255_v12  ;;  %4427 = vmatprep.subr.mxu1 %v4319_v17  ;;  %v4304_v8 = vld [vmem:[%s11834_s11 + $0x210] sm:$0xff]  ;;  %v4275_v12 = vld [vmem:[%s11834_s11 + $0x128] sm:$0xff] }
 0x4e4   : > { %4357 = vmatpush1.msra.mxu0 %v4254_v10  ;;  %4428 = vmatpush1.msra.mxu1 %v4318_v11  ;;  %v4303_v17 = vld [vmem:[%s11834_s11 + $0x208] sm:$0xff]  ;;  %v4274_v10 = vld [vmem:[%s11834_s11 + $0x120] sm:$0xff] }
 0x4e5   : > { %4358 = vmatprep.subr.mxu0 %v4253_v20  ;;  %4429 = vmatprep.subr.mxu1 %v4317_v21  ;;  %v4302_v11 = vld [vmem:[%s11834_s11 + $0x200] sm:$0xff]  ;;  %v4273_v20 = vld [vmem:[%s11834_s11 + $0x118] sm:$0xff] }
 0x4e6   : > { %4359 = vmatpush1.msra.mxu0 %v4252_v18  ;;  %4430 = vmatpush1.msra.mxu1 %v4316_v26  ;;  %v4337_v21 = vld [vmem:[%s11834_s11 + $0x318] sm:$0xff]  ;;  %v4272_v18 = vld [vmem:[%s11834_s11 + $0x110] sm:$0xff] }
 0x4e7   : > { %4360 = vmatprep.subr.mxu0 %v4251_v30  ;;  %4431 = vmatprep.subr.mxu1 %v4315_v33  ;;  %v4336_v26 = vld [vmem:[%s11834_s11 + $0x310] sm:$0xff]  ;;  %v4271_v30 = vld [vmem:[%s11834_s11 + $0x108] sm:$0xff] }
 0x4e8   : > { %4361 = vmatpush1.msra.mxu0 %v4250_v44  ;;  %4432 = vmatpush1.msra.mxu1 %v4314_v25  ;;  %v4335_v33 = vld [vmem:[%s11834_s11 + $0x308] sm:$0xff]  ;;  %v4270_v44 = vld [vmem:[%s11834_s11 + $0x100] sm:$0xff] }
 0x4e9   : > { %4362 = vmatprep.subr.mxu0 %v4249_v27  ;;  %4433 = vmatprep.subr.mxu1 %v4313_v45  ;;  %v4334_v25 = vld [vmem:[%s11834_s11 + $0x300] sm:$0xff]  ;;  %v4515_v27 = vld [vmem:[%s11835_s12 + $0xf8] sm:$0xff] }
 0x4ea   : > { %4363 = vmatpush1.msra.mxu0 %v4248_v46  ;;  %4434 = vmatpush1.msra.mxu1 %v4312_v22  ;;  %v4579_v45 = vld [vmem:[%s11835_s12 + $0x2f8] sm:$0xff] }
 0x4eb   : > { %4364 = vmatprep.subr.mxu0 %v4247_v35  ;;  %4435 = vmatprep.subr.mxu1 %v4311_v36 }
 0x4ec   : > { %4365 = vmatpush1.msra.mxu0 %v4246_v37  ;;  %4436 = vmatpush1.msra.mxu1 %v4310_v38 }
 0x4ed   : > { %4366 = vmatprep.subr.mxu0 %v4245_v47  ;;  %4437 = vmatprep.subr.mxu1 %v4309_v48 }
 0x4ee   : > { %4367 = vmatpush1.msra.mxu0 %v4244_v31  ;;  %4438 = vmatpush1.msra.mxu1 %v4308_v32 }
 0x4ef   : > { %4368 = vmatprep.subr.mxu0 %v4243_v49  ;;  %4439 = vmatprep.subr.mxu1 %v4307_v28 }
 0x4f0   : > { %4369 = vmatpush1.msra.mxu0 %v4242_v39  ;;  %4440 = vmatpush1.msra.mxu1 %v4306_v9  ;;  %v4514_v39 = vld [vmem:[%s11835_s12 + $0xf0] sm:$0xff]  ;;  %v4564_v9 = vld [vmem:[%s11835_s12 + $0x280] sm:$0xff] }
 0x4f1   : > { %4370 = vmatprep.subr.mxu0 %v4241_v40  ;;  %4441 = vmatprep.subr.mxu1 %v4305_v14  ;;  %v4578_v40 = vld [vmem:[%s11835_s12 + $0x2f0] sm:$0xff]  ;;  %v4563_v14 = vld [vmem:[%s11835_s12 + $0x278] sm:$0xff] }
 0x4f2   : > { %4371 = vmatpush1.msra.mxu0 %v4240_v51  ;;  %4442 = vmatpush1.msra.mxu1 %v4304_v8  ;;  %v4513_v51 = vld [vmem:[%s11835_s12 + $0xe8] sm:$0xff]  ;;  %v4562_v8 = vld [vmem:[%s11835_s12 + $0x270] sm:$0xff] }
 0x4f3   : > { %4372 = vmatprep.subr.mxu0 %v4239_v41  ;;  %4443 = vmatprep.subr.mxu1 %v4303_v17  ;;  %v4577_v41 = vld [vmem:[%s11835_s12 + $0x2e8] sm:$0xff] }
 0x4f4   : > { %4373 = vmatpush1.msra.mxu0 %v4238_v52  ;;  %4444 = vmatpush1.msra.mxu1 %v4302_v11  ;;  %v4512_v52 = vld [vmem:[%s11835_s12 + $0xe0] sm:$0xff]  ;;  %v4561_v17 = vld [vmem:[%s11835_s12 + $0x268] sm:$0xff] }
 0x4f5   : > { %4374 = vmatprep.subr.mxu0 %v4301_v42  ;;  %4473 = vmatprep.subr.mxu1 %v4337_v21  ;;  %v4576_v42 = vld [vmem:[%s11835_s12 + $0x2e0] sm:$0xff]  ;;  %v4559_v21 = vld [vmem:[%s11835_s12 + $0x258] sm:$0xff] }
 0x4f6   : > { %4375 = vmatpush2.msra.mxu0 %v4300_v53  ;;  %4474 = vmatpush2.msra.mxu1 %v4336_v26  ;;  %v4511_v53 = vld [vmem:[%s11835_s12 + $0xd8] sm:$0xff]  ;;  %v4560_v11 = vld [vmem:[%s11835_s12 + $0x260] sm:$0xff]  ;;  %v4558_v26 = vld [vmem:[%s11835_s12 + $0x250] sm:$0xff] }
 0x4f7   : > { %4376 = vmatprep.subr.mxu0 %v4299_v19  ;;  %4475 = vmatprep.subr.mxu1 %v4335_v33  ;;  %v4575_v19 = vld [vmem:[%s11835_s12 + $0x2d8] sm:$0xff]  ;;  %v4557_v33 = vld [vmem:[%s11835_s12 + $0x248] sm:$0xff] }
 0x4f8   : > { %4377 = vmatpush2.msra.mxu0 %v4298_v43  ;;  %4476 = vmatpush2.msra.mxu1 %v4334_v25  ;;  %v4510_v43 = vld [vmem:[%s11835_s12 + $0xd0] sm:$0xff]  ;;  %v4556_v25 = vld [vmem:[%s11835_s12 + $0x240] sm:$0xff] }
 0x4f9   : > { %4378 = vmatprep.subr.mxu0 %v4297_v54  ;;  %4584 = vmatprep.subr.mxu1 %v4515_v27  ;;  %v4574_v54 = vld [vmem:[%s11835_s12 + $0x2d0] sm:$0xff]  ;;  %v4491_v27 = vld [vmem:[%s11835_s12 + $0x38] sm:$0xff] }
 0x4fa   : > { %4379 = vmatpush2.msra.mxu0 %v4296_v55  ;;  %v4509_v55 = vld [vmem:[%s11835_s12 + $0xc8] sm:$0xff] }
 0x4fb   : > { %4380 = vmatprep.subr.mxu0 %v4295_v50  ;;  %v4573_v50 = vld [vmem:[%s11835_s12 + $0x2c8] sm:$0xff] }
 0x4fc   : > { %4381 = vmatpush2.msra.mxu0 %v4294_v56  ;;  %v4508_v56 = vld [vmem:[%s11835_s12 + $0xc0] sm:$0xff] }
 0x4fd   : > { %4382 = vmatprep.subr.mxu0 %v4293_v57  ;;  %v4572_v57 = vld [vmem:[%s11835_s12 + $0x2c0] sm:$0xff] }
 0x4fe   : > { %4383 = vmatpush2.msra.mxu0 %v4292_v58  ;;  %v4507_v58 = vld [vmem:[%s11835_s12 + $0xb8] sm:$0xff] }
 0x4ff   : > { %4384 = vmatprep.subr.mxu0 %v4291_v29  ;;  %v4571_v29 = vld [vmem:[%s11835_s12 + $0x2b8] sm:$0xff] }
 0x500   : > { %4385 = vmatpush2.msra.mxu0 %v4290_v59  ;;  %v4506_v59 = vld [vmem:[%s11835_s12 + $0xb0] sm:$0xff] }
 0x501   : > { %4386 = vmatprep.subr.mxu0 %v4289_v1  ;;  %v4570_v1 = vld [vmem:[%s11835_s12 + $0x2b0] sm:$0xff] }
 0x502   : > { %4387 = vmatpush2.msra.mxu0 %v4288_v61  ;;  %v4505_v61 = vld [vmem:[%s11835_s12 + $0xa8] sm:$0xff] }
 0x503   : > { %4388 = vmatprep.subr.mxu0 %v4287_v62  ;;  %v4569_v62 = vld [vmem:[%s11835_s12 + $0x2a8] sm:$0xff] }
 0x504   : > { %4389 = vmatpush2.msra.mxu0 %v4286_v63  ;;  %v4504_v63 = vld [vmem:[%s11835_s12 + $0xa0] sm:$0xff] }
 0x505   : > { %4390 = vmatprep.subr.mxu0 %v4285_v0  ;;  %v4568_v0 = vld [vmem:[%s11835_s12 + $0x2a0] sm:$0xff] }
 0x506   : > { %4391 = vmatpush2.msra.mxu0 %v4284_v2  ;;  %v4503_v2 = vld [vmem:[%s11835_s12 + $0x98] sm:$0xff] }
 0x507   : > { %4392 = vmatprep.subr.mxu0 %v4283_v6  ;;  %v4567_v6 = vld [vmem:[%s11835_s12 + $0x298] sm:$0xff] }
 0x508   : > { %4393 = vmatpush2.msra.mxu0 %v4282_v3  ;;  %v4502_v3 = vld [vmem:[%s11835_s12 + $0x90] sm:$0xff] }
 0x509   : > { %4394 = vmatprep.subr.mxu0 %v4281_v60  ;;  %v4566_v60 = vld [vmem:[%s11835_s12 + $0x290] sm:$0xff] }
 0x50a   : > { %4395 = vmatpush2.msra.mxu0 %v4280_v7  ;;  %v4501_v7 = vld [vmem:[%s11835_s12 + $0x88] sm:$0xff] }
 0x50b   : > { %4396 = vmatprep.subr.mxu0 %v4279_v4  ;;  %v4565_v4 = vld [vmem:[%s11835_s12 + $0x288] sm:$0xff] }
 0x50c   : > { %4397 = vmatpush2.msra.mxu0 %v4278_v15  ;;  %v4500_v15 = vld [vmem:[%s11835_s12 + $0x80] sm:$0xff] }
 0x50d   : > { %4398 = vmatprep.subr.mxu0 %v4277_v16  ;;  %v4499_v16 = vld [vmem:[%s11835_s12 + $0x78] sm:$0xff] }
 0x50e   : > { %4399 = vmatpush2.msra.mxu0 %v4276_v13  ;;  %v4498_v13 = vld [vmem:[%s11835_s12 + $0x70] sm:$0xff] }
 0x50f   : > { %4400 = vmatprep.subr.mxu0 %v4275_v12  ;;  %v4497_v12 = vld [vmem:[%s11835_s12 + $0x68] sm:$0xff] }
 0x510   : > { %4401 = vmatpush2.msra.mxu0 %v4274_v10  ;;  %v4496_v10 = vld [vmem:[%s11835_s12 + $0x60] sm:$0xff] }
 0x511   : > { %4402 = vmatprep.subr.mxu0 %v4273_v20  ;;  %v4495_v20 = vld [vmem:[%s11835_s12 + $0x58] sm:$0xff] }
 0x512   : > { %4403 = vmatpush2.msra.mxu0 %v4272_v18  ;;  %v4494_v18 = vld [vmem:[%s11835_s12 + $0x50] sm:$0xff] }
 0x513   : > { %4404 = vmatprep.subr.mxu0 %v4271_v30  ;;  %v4493_v30 = vld [vmem:[%s11835_s12 + $0x48] sm:$0xff] }
 0x514   : > { %4405 = vmatpush2.msra.mxu0 %v4270_v44  ;;  %v4492_v44 = vld [vmem:[%s11835_s12 + $0x40] sm:$0xff] }
 0x515   : > { %4655 = vmatprep.subr.mxu0 %v4579_v45  ;;  %v4555_v45 = vld [vmem:[%s11835_s12 + $0x238] sm:$0xff] }
 0x590   : > { %v4012_v46 = vpop.f32.mrf.mxu0  ;;  %v4083_v22 = vpop.f32.mrf.mxu1 }
 0x592   : > { %v4014_v35 = vpop.f32.mrf.mxu0  ;;  %v4085_v36 = vpop.f32.mrf.mxu1 }
 0x594   : > { %v4158_v37 = vpop.f32.mrf.mxu0  ;;  %v4229_v38 = vpop.f32.mrf.mxu1 }
 0x595   : > { %v10270_v47 = vmax.f32 %v4012_v46, %v4158_v37  ;;  %v10274_v28 = vmax.f32 %v4083_v22, %v4229_v38  ;;  %v4490_v46 = vld [vmem:[%s11835_s12 + $0x30] sm:$0xff]  ;;  %v4488_v37 = vld [vmem:[%s11835_s12 + $0x20] sm:$0xff] }
 0x596   : > { %v4160_v48 = vpop.f32.mrf.mxu0  ;;  %v4231_v31 = vpop.f32.mrf.mxu1  ;;  %v4554_v22 = vld [vmem:[%s11835_s12 + $0x230] sm:$0xff]  ;;  %v4552_v38 = vld [vmem:[%s11835_s12 + $0x220] sm:$0xff] }
 0x597   : > { %v10272_v32 = vmax.f32 %v4014_v35, %v4160_v48  ;;  %v4237_v49 = vmax.f32 %v4085_v36, %v4231_v31  ;;  %v4489_v35 = vld [vmem:[%s11835_s12 + $0x28] sm:$0xff]  ;;  %v4487_v48 = vld [vmem:[%s11835_s12 + $0x18] sm:$0xff] }
 0x598   : > { %v4553_v36 = vld [vmem:[%s11835_s12 + $0x228] sm:$0xff]  ;;  %v4551_v31 = vld [vmem:[%s11835_s12 + $0x218] sm:$0xff] }
 0x599   : > { %4406 = vmatprep.mubr.f32.mxu0 %v10272_v32  ;;  %6515 = vmatprep.mubr.msk.f32.mxu1 %vm4338_vm10, %v4237_v49 }
 0x59a   : > { %4407 = vmatmul.mubr.f32.vlgmr.msra.gmra.mxu0 %v10270_v47  ;;  %4478 = vmatmul.mubr.f32.vlgmr.msra.gmra.mxu1 %v10274_v28 }
 0x59b   : > { %4585 = vmatpush1.msra.mxu1 %v4514_v39  ;;  %4656 = vmatpush1.msra.mxu0 %v4578_v40  ;;  %v4550_v39 = vld [vmem:[%s11835_s12 + $0x210] sm:$0xff]  ;;  %v4485_v40 = vld [vmem:[%s11835_s12 + $0x8] sm:$0xff] }
 0x59c   : > { %4586 = vmatprep.subr.mxu1 %v4513_v51  ;;  %4657 = vmatprep.subr.mxu0 %v4577_v41  ;;  %v4549_v51 = vld [vmem:[%s11835_s12 + $0x208] sm:$0xff]  ;;  %v4484_v41 = vld [vmem:[%s11835_s12] sm:$0xff] }
 0x59d   : > { %6516 = vmatprep.mubr.msk.f32.mxu0 %vm4338_vm10, %v4237_v49  ;;  %4587 = vmatpush1.msra.mxu1 %v4512_v52  ;;  %v4486_v49 = vld [vmem:[%s11835_s12 + $0x10] sm:$0xff]  ;;  %v4548_v52 = vld [vmem:[%s11835_s12 + $0x200] sm:$0xff] }
 0x59e   : > { %4658 = vmatpush1.msra.mxu0 %v4576_v42  ;;  %4588 = vmatprep.subr.mxu1 %v4511_v53  ;;  %v4547_v42 = vld [vmem:[%s11835_s12 + $0x1f8] sm:$0xff] }
 0x59f   : > { %4659 = vmatprep.subr.mxu0 %v4575_v19  ;;  %4589 = vmatpush1.msra.mxu1 %v4510_v43  ;;  %v4583_v53 = vld [vmem:[%s11835_s12 + $0x318] sm:$0xff]  ;;  %v4546_v19 = vld [vmem:[%s11835_s12 + $0x1f0] sm:$0xff] }
 0x5a0   : > { %4660 = vmatpush1.msra.mxu0 %v4574_v54  ;;  %4590 = vmatprep.subr.mxu1 %v4509_v55  ;;  %v4582_v43 = vld [vmem:[%s11835_s12 + $0x310] sm:$0xff]  ;;  %v4581_v54 = vld [vmem:[%s11835_s12 + $0x308] sm:$0xff]  ;;  %v4544_v55 = vld [vmem:[%s11835_s12 + $0x1e0] sm:$0xff] }
 0x5a1   : > { %4661 = vmatprep.subr.mxu0 %v4573_v50  ;;  %4591 = vmatpush1.msra.mxu1 %v4508_v56  ;;  %v4580_v50 = vld [vmem:[%s11835_s12 + $0x300] sm:$0xff]  ;;  %v4543_v56 = vld [vmem:[%s11835_s12 + $0x1d8] sm:$0xff] }
 0x5a2   : > { %4662 = vmatpush1.msra.mxu0 %v4572_v57  ;;  %4592 = vmatprep.subr.mxu1 %v4507_v58  ;;  %v4542_v57 = vld [vmem:[%s11835_s12 + $0x1d0] sm:$0xff]  ;;  %v4541_v58 = vld [vmem:[%s11835_s12 + $0x1c8] sm:$0xff] }
 0x5a3   : > { %4663 = vmatprep.subr.mxu0 %v4571_v29  ;;  %4593 = vmatpush1.msra.mxu1 %v4506_v59  ;;  %v4540_v29 = vld [vmem:[%s11835_s12 + $0x1c0] sm:$0xff]  ;;  %v4539_v59 = vld [vmem:[%s11835_s12 + $0x1b8] sm:$0xff] }
 0x5a4   : > { %4664 = vmatpush1.msra.mxu0 %v4570_v1  ;;  %4594 = vmatprep.subr.mxu1 %v4505_v61  ;;  %v4538_v1 = vld [vmem:[%s11835_s12 + $0x1b0] sm:$0xff]  ;;  %v4537_v61 = vld [vmem:[%s11835_s12 + $0x1a8] sm:$0xff] }
 0x5a5   : > { %4665 = vmatprep.subr.mxu0 %v4569_v62  ;;  %4595 = vmatpush1.msra.mxu1 %v4504_v63  ;;  %v4535_v62 = vld [vmem:[%s11835_s12 + $0x198] sm:$0xff]  ;;  %v4534_v63 = vld [vmem:[%s11835_s12 + $0x190] sm:$0xff] }
 0x5a6   : > { %4666 = vmatpush1.msra.mxu0 %v4568_v0  ;;  %4596 = vmatprep.subr.mxu1 %v4503_v2  ;;  %v4533_v0 = vld [vmem:[%s11835_s12 + $0x188] sm:$0xff]  ;;  %v4532_v2 = vld [vmem:[%s11835_s12 + $0x180] sm:$0xff] }
 0x5a7   : > { %4667 = vmatprep.subr.mxu0 %v4567_v6  ;;  %4597 = vmatpush1.msra.mxu1 %v4502_v3  ;;  %v4531_v6 = vld [vmem:[%s11835_s12 + $0x178] sm:$0xff]  ;;  %v4530_v3 = vld [vmem:[%s11835_s12 + $0x170] sm:$0xff] }
 0x5a8   : > { %4668 = vmatpush1.msra.mxu0 %v4566_v60  ;;  %4598 = vmatprep.subr.mxu1 %v4501_v7  ;;  %v4529_v60 = vld [vmem:[%s11835_s12 + $0x168] sm:$0xff]  ;;  %v4528_v7 = vld [vmem:[%s11835_s12 + $0x160] sm:$0xff] }
 0x5a9   : > { %4669 = vmatprep.subr.mxu0 %v4565_v4  ;;  %4599 = vmatpush1.msra.mxu1 %v4500_v15  ;;  %v4527_v4 = vld [vmem:[%s11835_s12 + $0x158] sm:$0xff]  ;;  %v4526_v15 = vld [vmem:[%s11835_s12 + $0x150] sm:$0xff] }
 0x5aa   : > { %4670 = vmatpush1.msra.mxu0 %v4564_v9  ;;  %4600 = vmatprep.subr.mxu1 %v4499_v16  ;;  %v4525_v9 = vld [vmem:[%s11835_s12 + $0x148] sm:$0xff]  ;;  %v4524_v16 = vld [vmem:[%s11835_s12 + $0x140] sm:$0xff] }
 0x5ab   : > { %4671 = vmatprep.subr.mxu0 %v4563_v14  ;;  %4601 = vmatpush1.msra.mxu1 %v4498_v13  ;;  %v4523_v14 = vld [vmem:[%s11835_s12 + $0x138] sm:$0xff]  ;;  %v4522_v13 = vld [vmem:[%s11835_s12 + $0x130] sm:$0xff] }
 0x5ac   : > { %4672 = vmatpush1.msra.mxu0 %v4562_v8  ;;  %4602 = vmatprep.subr.mxu1 %v4497_v12  ;;  %v4521_v8 = vld [vmem:[%s11835_s12 + $0x128] sm:$0xff]  ;;  %v4520_v12 = vld [vmem:[%s11835_s12 + $0x120] sm:$0xff] }
 0x5ad   : > { %4673 = vmatprep.subr.mxu0 %v4561_v17  ;;  %4603 = vmatpush1.msra.mxu1 %v4496_v10  ;;  %v4519_v17 = vld [vmem:[%s11835_s12 + $0x118] sm:$0xff]  ;;  %v4518_v10 = vld [vmem:[%s11835_s12 + $0x110] sm:$0xff] }
 0x5ae   : > { %4674 = vmatpush1.msra.mxu0 %v4560_v11  ;;  %4604 = vmatprep.subr.mxu1 %v4495_v20  ;;  %v4517_v11 = vld [vmem:[%s11835_s12 + $0x108] sm:$0xff]  ;;  %v4516_v20 = vld [vmem:[%s11835_s12 + $0x100] sm:$0xff] }
 0x5af   : > { %4675 = vmatprep.subr.mxu0 %v4559_v21  ;;  %4605 = vmatpush1.msra.mxu1 %v4494_v18  ;;  %v6578_v21 = vld [vmem:[%s11836_s13 + $0x508] sm:$0xff]  ;;  %v6580_v18 = vld [vmem:[%s11836_s13 + $0x518] sm:$0xff] }
 0x5b0   : > { %4676 = vmatpush1.msra.mxu0 %v4558_v26  ;;  %4606 = vmatprep.subr.mxu1 %v4493_v30  ;;  %v6577_v26 = vld [vmem:[%s11836_s13 + $0x500] sm:$0xff]  ;;  %v6579_v30 = vld [vmem:[%s11836_s13 + $0x510] sm:$0xff] }
 0x5b1   : > { %4677 = vmatprep.subr.mxu0 %v4557_v33  ;;  %4607 = vmatpush1.msra.mxu1 %v4492_v44  ;;  %v6576_v33 = vld [vmem:[%s11836_s13 + $0x4f8] sm:$0xff]  ;;  %v6573_v44 = vld [vmem:[%s11836_s13 + $0x4e0] sm:$0xff] }
 0x5b2   : > { %4678 = vmatpush1.msra.mxu0 %v4556_v25  ;;  %4608 = vmatprep.subr.mxu1 %v4491_v27  ;;  %v6575_v25 = vld [vmem:[%s11836_s13 + $0x4f0] sm:$0xff]  ;;  %v6570_v27 = vld [vmem:[%s11836_s13 + $0x4c8] sm:$0xff] }
 0x5b3   : > { %4679 = vmatprep.subr.mxu0 %v4555_v45  ;;  %4609 = vmatpush1.msra.mxu1 %v4490_v46  ;;  %v6572_v45 = vld [vmem:[%s11836_s13 + $0x4d8] sm:$0xff]  ;;  %v6569_v46 = vld [vmem:[%s11836_s13 + $0x4c0] sm:$0xff] }
 0x5b4   : > { %4680 = vmatpush1.msra.mxu0 %v4554_v22  ;;  %4610 = vmatprep.subr.mxu1 %v4489_v35  ;;  %v6571_v22 = vld [vmem:[%s11836_s13 + $0x4d0] sm:$0xff]  ;;  %v6566_v35 = vld [vmem:[%s11836_s13 + $0x4a8] sm:$0xff] }
 0x5b5   : > { %4681 = vmatprep.subr.mxu0 %v4553_v36  ;;  %4611 = vmatpush1.msra.mxu1 %v4488_v37  ;;  %v6568_v36 = vld [vmem:[%s11836_s13 + $0x4b8] sm:$0xff]  ;;  %v6565_v37 = vld [vmem:[%s11836_s13 + $0x4a0] sm:$0xff] }
 0x5b6   : > { %4682 = vmatpush1.msra.mxu0 %v4552_v38  ;;  %4612 = vmatprep.subr.mxu1 %v4487_v48  ;;  %v6567_v38 = vld [vmem:[%s11836_s13 + $0x4b0] sm:$0xff]  ;;  %v6562_v48 = vld [vmem:[%s11836_s13 + $0x488] sm:$0xff] }
 0x5b7   : > { %4683 = vmatprep.subr.mxu0 %v4551_v31  ;;  %4613 = vmatpush1.msra.mxu1 %v4486_v49  ;;  %v6564_v31 = vld [vmem:[%s11836_s13 + $0x498] sm:$0xff]  ;;  %v6561_v49 = vld [vmem:[%s11836_s13 + $0x480] sm:$0xff] }
 0x5b8   : > { %4648 = vmatprep.mubr.f32.mxu1 %v10272_v32  ;;  %4684 = vmatpush1.msra.mxu0 %v4550_v39  ;;  %v4545_v32 = vld [vmem:[%s11835_s12 + $0x1e8] sm:$0xff]  ;;  %v6563_v39 = vld [vmem:[%s11836_s13 + $0x490] sm:$0xff] }
 0x5b9   : > { %4614 = vmatprep.subr.mxu1 %v4485_v40  ;;  %4685 = vmatprep.subr.mxu0 %v4549_v51  ;;  %v6558_v40 = vld [vmem:[%s11836_s13 + $0x468] sm:$0xff]  ;;  %v6560_v51 = vld [vmem:[%s11836_s13 + $0x478] sm:$0xff] }
 0x5ba   : > { %4615 = vmatpush1.msra.mxu1 %v4484_v41  ;;  %4686 = vmatpush1.msra.mxu0 %v4548_v52  ;;  %v6557_v41 = vld [vmem:[%s11836_s13 + $0x460] sm:$0xff]  ;;  %v6559_v52 = vld [vmem:[%s11836_s13 + $0x470] sm:$0xff] }
 0x5bb   : > { %4616 = vmatprep.subr.mxu1 %v4547_v42  ;;  %4715 = vmatprep.subr.mxu0 %v4583_v53  ;;  %v6554_v42 = vld [vmem:[%s11836_s13 + $0x448] sm:$0xff]  ;;  %v6556_v53 = vld [vmem:[%s11836_s13 + $0x458] sm:$0xff] }
 0x5bc   : > { %4617 = vmatpush2.msra.mxu1 %v4546_v19  ;;  %4716 = vmatpush2.msra.mxu0 %v4582_v43  ;;  %v6553_v19 = vld [vmem:[%s11836_s13 + $0x440] sm:$0xff]  ;;  %v6555_v43 = vld [vmem:[%s11836_s13 + $0x450] sm:$0xff] }
 0x5bd   : > { %4618 = vmatprep.subr.mxu1 %v4545_v32  ;;  %4717 = vmatprep.subr.mxu0 %v4581_v54  ;;  %v6550_v32 = vld [vmem:[%s11836_s13 + $0x428] sm:$0xff]  ;;  %v6552_v54 = vld [vmem:[%s11836_s13 + $0x438] sm:$0xff] }
 0x5be   : > { %4619 = vmatpush2.msra.mxu1 %v4544_v55  ;;  %4718 = vmatpush2.msra.mxu0 %v4580_v50  ;;  %v6549_v55 = vld [vmem:[%s11836_s13 + $0x420] sm:$0xff]  ;;  %v6551_v50 = vld [vmem:[%s11836_s13 + $0x430] sm:$0xff] }
 0x5bf   : > { %4620 = vmatprep.subr.mxu1 %v4543_v56  ;;  %4720 = vmatmul.mubr.f32.vlgmr.msra.gmra.mxu0 %v10274_v28  ;;  %v4536_v28 = vld [vmem:[%s11835_s12 + $0x1a0] sm:$0xff]  ;;  %v6546_v56 = vld [vmem:[%s11836_s13 + $0x408] sm:$0xff] }
 0x5c0   : > { %4621 = vmatpush2.msra.mxu1 %v4542_v57  ;;  %4952 = vmatprep.subr.mxu0 %v6578_v21  ;;  %v6548_v57 = vld [vmem:[%s11836_s13 + $0x418] sm:$0xff]  ;;  %v6518_v21 = vld [vmem:[%s11836_s13 + $0x328] sm:$0xff] }
 0x5c1   : > { %4622 = vmatprep.subr.mxu1 %v4541_v58  ;;  %4953 = vmatpush1.msra.mxu0 %v6577_v26  ;;  %v6545_v58 = vld [vmem:[%s11836_s13 + $0x400] sm:$0xff] }
 0x5c2   : > { %4623 = vmatpush2.msra.mxu1 %v4540_v29  ;;  %v6547_v29 = vld [vmem:[%s11836_s13 + $0x410] sm:$0xff]  ;;  %v6517_v26 = vld [vmem:[%s11836_s13 + $0x320] sm:$0xff] }
 0x5c3   : > { %4624 = vmatprep.subr.mxu1 %v4539_v59  ;;  %v6542_v59 = vld [vmem:[%s11836_s13 + $0x3e8] sm:$0xff] }
 0x5c4   : > { %4625 = vmatpush2.msra.mxu1 %v4538_v1  ;;  %v6544_v1 = vld [vmem:[%s11836_s13 + $0x3f8] sm:$0xff] }
 0x5c5   : > { %4626 = vmatprep.subr.mxu1 %v4537_v61  ;;  %v6541_v61 = vld [vmem:[%s11836_s13 + $0x3e0] sm:$0xff] }
 0x5c6   : > { %4627 = vmatpush2.msra.mxu1 %v4536_v28  ;;  %v6543_v28 = vld [vmem:[%s11836_s13 + $0x3f0] sm:$0xff] }
 0x5c7   : > { %4628 = vmatprep.subr.mxu1 %v4535_v62  ;;  %v6538_v62 = vld [vmem:[%s11836_s13 + $0x3c8] sm:$0xff] }
 0x5c8   : > { %4629 = vmatpush2.msra.mxu1 %v4534_v63  ;;  %v6540_v63 = vld [vmem:[%s11836_s13 + $0x3d8] sm:$0xff] }
 0x5c9   : > { %4630 = vmatprep.subr.mxu1 %v4533_v0  ;;  %v6537_v0 = vld [vmem:[%s11836_s13 + $0x3c0] sm:$0xff] }
 0x5ca   : > { %4631 = vmatpush2.msra.mxu1 %v4532_v2  ;;  %v6539_v2 = vld [vmem:[%s11836_s13 + $0x3d0] sm:$0xff] }
 0x5cb   : > { %4632 = vmatprep.subr.mxu1 %v4531_v6  ;;  %v6534_v6 = vld [vmem:[%s11836_s13 + $0x3a8] sm:$0xff] }
 0x5cc   : > { %4633 = vmatpush2.msra.mxu1 %v4530_v3  ;;  %v6536_v3 = vld [vmem:[%s11836_s13 + $0x3b8] sm:$0xff] }
 0x5cd   : > { %4634 = vmatprep.subr.mxu1 %v4529_v60  ;;  %v6533_v60 = vld [vmem:[%s11836_s13 + $0x3a0] sm:$0xff] }
 0x5ce   : > { %4635 = vmatpush2.msra.mxu1 %v4528_v7  ;;  %v6535_v7 = vld [vmem:[%s11836_s13 + $0x3b0] sm:$0xff] }
 0x5cf   : > { %4636 = vmatprep.subr.mxu1 %v4527_v4  ;;  %v6530_v4 = vld [vmem:[%s11836_s13 + $0x388] sm:$0xff] }
 0x5d0   : > { %4637 = vmatpush2.msra.mxu1 %v4526_v15  ;;  %v6532_v15 = vld [vmem:[%s11836_s13 + $0x398] sm:$0xff] }
 0x5d1   : > { %4638 = vmatprep.subr.mxu1 %v4525_v9  ;;  %v6529_v9 = vld [vmem:[%s11836_s13 + $0x380] sm:$0xff] }
 0x5d2   : > { %4639 = vmatpush2.msra.mxu1 %v4524_v16  ;;  %v6531_v16 = vld [vmem:[%s11836_s13 + $0x390] sm:$0xff] }
 0x5d3   : > { %4640 = vmatprep.subr.mxu1 %v4523_v14  ;;  %v6526_v14 = vld [vmem:[%s11836_s13 + $0x368] sm:$0xff] }
 0x5d4   : > { %4641 = vmatpush2.msra.mxu1 %v4522_v13  ;;  %v6528_v13 = vld [vmem:[%s11836_s13 + $0x378] sm:$0xff] }
 0x5d5   : > { %4642 = vmatprep.subr.mxu1 %v4521_v8  ;;  %v6525_v8 = vld [vmem:[%s11836_s13 + $0x360] sm:$0xff] }
 0x5d6   : > { %4643 = vmatpush2.msra.mxu1 %v4520_v12  ;;  %v6527_v12 = vld [vmem:[%s11836_s13 + $0x370] sm:$0xff] }
 0x5d7   : > { %4644 = vmatprep.subr.mxu1 %v4519_v17  ;;  %v6522_v17 = vld [vmem:[%s11836_s13 + $0x348] sm:$0xff] }
 0x5d8   : > { %4645 = vmatpush2.msra.mxu1 %v4518_v10  ;;  %v6524_v10 = vld [vmem:[%s11836_s13 + $0x358] sm:$0xff] }
 0x5d9   : > { %4646 = vmatprep.subr.mxu1 %v4517_v11  ;;  %v6521_v11 = vld [vmem:[%s11836_s13 + $0x340] sm:$0xff] }
 0x5da   : > { %4647 = vmatpush2.msra.mxu1 %v4516_v20  ;;  %v6523_v20 = vld [vmem:[%s11836_s13 + $0x350] sm:$0xff] }
 0x5db   : > { %4649 = vmatmul.mubr.f32.vlgmr.msra.gmra.mxu1 %v10270_v47  ;;  %5023 = vmatprep.subr.mxu1 %v6580_v18  ;;  %v6574_v47 = vld [vmem:[%s11836_s13 + $0x4e8] sm:$0xff]  ;;  %v6520_v18 = vld [vmem:[%s11836_s13 + $0x338] sm:$0xff] }
 0x5dc   : > { %5024 = vmatpush1.msra.mxu1 %v6579_v30  ;;  %4954 = vmatprep.subr.mxu0 %v6574_v47  ;;  %v6519_v30 = vld [vmem:[%s11836_s13 + $0x330] sm:$0xff]  ;;  %v6614_v47 = vld [vmem:[%s11836_s13 + $0x628] sm:$0xff] }
 0x5dd   : > { %5025 = vmatprep.subr.mxu1 %v6576_v33  ;;  %4955 = vmatpush1.msra.mxu0 %v6573_v44  ;;  %v6616_v33 = vld [vmem:[%s11836_s13 + $0x638] sm:$0xff]  ;;  %v6613_v44 = vld [vmem:[%s11836_s13 + $0x620] sm:$0xff] }
 0x5de   : > { %5026 = vmatpush1.msra.mxu1 %v6575_v25  ;;  %4956 = vmatprep.subr.mxu0 %v6570_v27  ;;  %v6615_v25 = vld [vmem:[%s11836_s13 + $0x630] sm:$0xff]  ;;  %v6610_v27 = vld [vmem:[%s11836_s13 + $0x608] sm:$0xff] }
 0x5df   : > { %5027 = vmatprep.subr.mxu1 %v6572_v45  ;;  %4957 = vmatpush1.msra.mxu0 %v6569_v46  ;;  %v6612_v45 = vld [vmem:[%s11836_s13 + $0x618] sm:$0xff]  ;;  %v6609_v46 = vld [vmem:[%s11836_s13 + $0x600] sm:$0xff] }
 0x5e0   : > { %5028 = vmatpush1.msra.mxu1 %v6571_v22  ;;  %4958 = vmatprep.subr.mxu0 %v6566_v35  ;;  %v6611_v22 = vld [vmem:[%s11836_s13 + $0x610] sm:$0xff]  ;;  %v6606_v35 = vld [vmem:[%s11836_s13 + $0x5e8] sm:$0xff] }
 0x5e1   : > { %5029 = vmatprep.subr.mxu1 %v6568_v36  ;;  %4959 = vmatpush1.msra.mxu0 %v6565_v37  ;;  %v6608_v36 = vld [vmem:[%s11836_s13 + $0x5f8] sm:$0xff]  ;;  %v6605_v37 = vld [vmem:[%s11836_s13 + $0x5e0] sm:$0xff] }
 0x5e2   : > { %5030 = vmatpush1.msra.mxu1 %v6567_v38  ;;  %4960 = vmatprep.subr.mxu0 %v6562_v48  ;;  %v6607_v38 = vld [vmem:[%s11836_s13 + $0x5f0] sm:$0xff]  ;;  %v6602_v48 = vld [vmem:[%s11836_s13 + $0x5c8] sm:$0xff] }
 0x5e3   : > { %5031 = vmatprep.subr.mxu1 %v6564_v31  ;;  %4961 = vmatpush1.msra.mxu0 %v6561_v49  ;;  %v6604_v31 = vld [vmem:[%s11836_s13 + $0x5d8] sm:$0xff]  ;;  %v6601_v49 = vld [vmem:[%s11836_s13 + $0x5c0] sm:$0xff] }
 0x5e4   : > { %5032 = vmatpush1.msra.mxu1 %v6563_v39  ;;  %4962 = vmatprep.subr.mxu0 %v6558_v40  ;;  %v6603_v39 = vld [vmem:[%s11836_s13 + $0x5d0] sm:$0xff]  ;;  %v6598_v40 = vld [vmem:[%s11836_s13 + $0x5a8] sm:$0xff] }
 0x5e5   : > { %5033 = vmatprep.subr.mxu1 %v6560_v51  ;;  %4963 = vmatpush1.msra.mxu0 %v6557_v41  ;;  %v6600_v51 = vld [vmem:[%s11836_s13 + $0x5b8] sm:$0xff]  ;;  %v6597_v41 = vld [vmem:[%s11836_s13 + $0x5a0] sm:$0xff] }
 0x5e6   : > { %5034 = vmatpush1.msra.mxu1 %v6559_v52  ;;  %4964 = vmatprep.subr.mxu0 %v6554_v42  ;;  %v6599_v52 = vld [vmem:[%s11836_s13 + $0x5b0] sm:$0xff]  ;;  %v6594_v42 = vld [vmem:[%s11836_s13 + $0x588] sm:$0xff] }
 0x5e7   : > { %5035 = vmatprep.subr.mxu1 %v6556_v53  ;;  %4965 = vmatpush1.msra.mxu0 %v6553_v19  ;;  %v6596_v53 = vld [vmem:[%s11836_s13 + $0x598] sm:$0xff]  ;;  %v6593_v19 = vld [vmem:[%s11836_s13 + $0x580] sm:$0xff] }
 0x5e8   : > { %5036 = vmatpush1.msra.mxu1 %v6555_v43  ;;  %4966 = vmatprep.subr.mxu0 %v6550_v32  ;;  %v6595_v43 = vld [vmem:[%s11836_s13 + $0x590] sm:$0xff]  ;;  %v6590_v32 = vld [vmem:[%s11836_s13 + $0x568] sm:$0xff] }
 0x5e9   : > { %5037 = vmatprep.subr.mxu1 %v6552_v54  ;;  %4967 = vmatpush1.msra.mxu0 %v6549_v55  ;;  %v6592_v54 = vld [vmem:[%s11836_s13 + $0x578] sm:$0xff]  ;;  %v6589_v55 = vld [vmem:[%s11836_s13 + $0x560] sm:$0xff] }
 0x5ea   : > { %5038 = vmatpush1.msra.mxu1 %v6551_v50  ;;  %4968 = vmatprep.subr.mxu0 %v6546_v56  ;;  %v6591_v50 = vld [vmem:[%s11836_s13 + $0x570] sm:$0xff]  ;;  %v6586_v56 = vld [vmem:[%s11836_s13 + $0x548] sm:$0xff] }
 0x5eb   : > { %5039 = vmatprep.subr.mxu1 %v6548_v57  ;;  %4969 = vmatpush1.msra.mxu0 %v6545_v58  ;;  %v6588_v57 = vld [vmem:[%s11836_s13 + $0x558] sm:$0xff]  ;;  %v6585_v58 = vld [vmem:[%s11836_s13 + $0x540] sm:$0xff] }
 0x5ec   : > { %5040 = vmatpush1.msra.mxu1 %v6547_v29  ;;  %4970 = vmatprep.subr.mxu0 %v6542_v59  ;;  %v6587_v29 = vld [vmem:[%s11836_s13 + $0x550] sm:$0xff]  ;;  %v6582_v59 = vld [vmem:[%s11836_s13 + $0x528] sm:$0xff] }
 0x5ed   : > { %5041 = vmatprep.subr.mxu1 %v6544_v1  ;;  %4971 = vmatpush1.msra.mxu0 %v6541_v61  ;;  %v6584_v1 = vld [vmem:[%s11836_s13 + $0x538] sm:$0xff]  ;;  %v6581_v61 = vld [vmem:[%s11836_s13 + $0x520] sm:$0xff] }
 0x5ee   : > { %5042 = vmatpush1.msra.mxu1 %v6543_v28  ;;  %4972 = vmatprep.subr.mxu0 %v6538_v62  ;;  %v6583_v28 = vld [vmem:[%s11836_s13 + $0x530] sm:$0xff]  ;;  %v4797_v62 = vld [vmem:[%s11836_s13 + $0x1e8] sm:$0xff] }
 0x5ef   : > { %5043 = vmatprep.subr.mxu1 %v6540_v63  ;;  %4973 = vmatpush1.msra.mxu0 %v6537_v0  ;;  %v4799_v63 = vld [vmem:[%s11836_s13 + $0x1f8] sm:$0xff] }
 0x5f0   : > { %5044 = vmatpush1.msra.mxu1 %v6539_v2  ;;  %4974 = vmatprep.subr.mxu0 %v6534_v6 }
 0x5f1   : > { %5045 = vmatprep.subr.mxu1 %v6536_v3  ;;  %4975 = vmatpush1.msra.mxu0 %v6533_v60 }
 0x5f2   : > { %5046 = vmatpush1.msra.mxu1 %v6535_v7  ;;  %4976 = vmatprep.subr.mxu0 %v6530_v4 }
 0x5f3   : > { %5047 = vmatprep.subr.mxu1 %v6532_v15  ;;  %4977 = vmatpush1.msra.mxu0 %v6529_v9 }
 0x5f4   : > { %5048 = vmatpush1.msra.mxu1 %v6531_v16  ;;  %4978 = vmatprep.subr.mxu0 %v6526_v14 }
 0x5f5   : > { %5049 = vmatprep.subr.mxu1 %v6528_v13  ;;  %4979 = vmatpush1.msra.mxu0 %v6525_v8 }
 0x5f6   : > { %5050 = vmatpush1.msra.mxu1 %v6527_v12  ;;  %4980 = vmatprep.subr.mxu0 %v6522_v17 }
 0x5f7   : > { %5051 = vmatprep.subr.mxu1 %v6524_v10  ;;  %4981 = vmatpush1.msra.mxu0 %v6521_v11 }
 0x5f8   : > { %5052 = vmatpush1.msra.mxu1 %v6523_v20  ;;  %4982 = vmatprep.subr.mxu0 %v6518_v21 }
 0x5f9   : > { %5053 = vmatprep.subr.mxu1 %v6520_v18  ;;  %4983 = vmatpush1.msra.mxu0 %v6517_v26  ;;  %v4796_v18 = vld [vmem:[%s11836_s13 + $0x1e0] sm:$0xff]  ;;  %v4798_v26 = vld [vmem:[%s11836_s13 + $0x1f0] sm:$0xff] }
 0x5fa   : > { %5054 = vmatpush1.msra.mxu1 %v6519_v30  ;;  %4998 = vmatprep.subr.mxu0 %v6614_v47  ;;  %v4793_v30 = vld [vmem:[%s11836_s13 + $0x1c8] sm:$0xff] }
 0x5fb   : > { %5069 = vmatprep.subr.mxu1 %v6616_v33  ;;  %4999 = vmatpush2.msra.mxu0 %v6613_v44  ;;  %v4795_v33 = vld [vmem:[%s11836_s13 + $0x1d8] sm:$0xff]  ;;  %v4792_v44 = vld [vmem:[%s11836_s13 + $0x1c0] sm:$0xff] }
 0x5fc   : > { %5070 = vmatpush2.msra.mxu1 %v6615_v25  ;;  %5000 = vmatprep.subr.mxu0 %v6610_v27  ;;  %v4794_v25 = vld [vmem:[%s11836_s13 + $0x1d0] sm:$0xff]  ;;  %v4789_v27 = vld [vmem:[%s11836_s13 + $0x1a8] sm:$0xff] }
 0x5fd   : > { %5071 = vmatprep.subr.mxu1 %v6612_v45  ;;  %5001 = vmatpush2.msra.mxu0 %v6609_v46  ;;  %v4791_v45 = vld [vmem:[%s11836_s13 + $0x1b8] sm:$0xff]  ;;  %v4788_v46 = vld [vmem:[%s11836_s13 + $0x1a0] sm:$0xff] }
 0x5fe   : > { %5072 = vmatpush2.msra.mxu1 %v6611_v22  ;;  %5002 = vmatprep.subr.mxu0 %v6606_v35  ;;  %v4790_v22 = vld [vmem:[%s11836_s13 + $0x1b0] sm:$0xff]  ;;  %v4785_v35 = vld [vmem:[%s11836_s13 + $0x188] sm:$0xff] }
 0x5ff   : > { %5073 = vmatprep.subr.mxu1 %v6608_v36  ;;  %5003 = vmatpush2.msra.mxu0 %v6605_v37  ;;  %v4787_v36 = vld [vmem:[%s11836_s13 + $0x198] sm:$0xff]  ;;  %v4784_v37 = vld [vmem:[%s11836_s13 + $0x180] sm:$0xff] }
 0x600   : > { %5074 = vmatpush2.msra.mxu1 %v6607_v38  ;;  %5004 = vmatprep.subr.mxu0 %v6602_v48  ;;  %v4786_v38 = vld [vmem:[%s11836_s13 + $0x190] sm:$0xff]  ;;  %v4781_v48 = vld [vmem:[%s11836_s13 + $0x168] sm:$0xff] }
 0x601   : > { %5075 = vmatprep.subr.mxu1 %v6604_v31  ;;  %5005 = vmatpush2.msra.mxu0 %v6601_v49  ;;  %v4783_v31 = vld [vmem:[%s11836_s13 + $0x178] sm:$0xff]  ;;  %v4780_v49 = vld [vmem:[%s11836_s13 + $0x160] sm:$0xff] }
 0x602   : > { %5076 = vmatpush2.msra.mxu1 %v6603_v39  ;;  %5006 = vmatprep.subr.mxu0 %v6598_v40  ;;  %v4782_v39 = vld [vmem:[%s11836_s13 + $0x170] sm:$0xff]  ;;  %v4777_v40 = vld [vmem:[%s11836_s13 + $0x148] sm:$0xff] }
 0x603   : > { %5077 = vmatprep.subr.mxu1 %v6600_v51  ;;  %5007 = vmatpush2.msra.mxu0 %v6597_v41  ;;  %v4779_v51 = vld [vmem:[%s11836_s13 + $0x158] sm:$0xff]  ;;  %v4776_v41 = vld [vmem:[%s11836_s13 + $0x140] sm:$0xff] }
 0x604   : > { %5078 = vmatpush2.msra.mxu1 %v6599_v52  ;;  %5008 = vmatprep.subr.mxu0 %v6594_v42  ;;  %v4778_v52 = vld [vmem:[%s11836_s13 + $0x150] sm:$0xff]  ;;  %v4773_v42 = vld [vmem:[%s11836_s13 + $0x128] sm:$0xff] }
 0x605   : > { %5079 = vmatprep.subr.mxu1 %v6596_v53  ;;  %5009 = vmatpush2.msra.mxu0 %v6593_v19  ;;  %v4775_v53 = vld [vmem:[%s11836_s13 + $0x138] sm:$0xff]  ;;  %v4772_v19 = vld [vmem:[%s11836_s13 + $0x120] sm:$0xff] }
 0x606   : > { %5080 = vmatpush2.msra.mxu1 %v6595_v43  ;;  %5010 = vmatprep.subr.mxu0 %v6590_v32  ;;  %v4774_v43 = vld [vmem:[%s11836_s13 + $0x130] sm:$0xff]  ;;  %v4769_v32 = vld [vmem:[%s11836_s13 + $0x108] sm:$0xff] }
 0x607   : > { %5081 = vmatprep.subr.mxu1 %v6592_v54  ;;  %5011 = vmatpush2.msra.mxu0 %v6589_v55  ;;  %v4771_v54 = vld [vmem:[%s11836_s13 + $0x118] sm:$0xff]  ;;  %v4768_v55 = vld [vmem:[%s11836_s13 + $0x100] sm:$0xff] }
 0x608   : > { %5082 = vmatpush2.msra.mxu1 %v6591_v50  ;;  %5012 = vmatprep.subr.mxu0 %v6586_v56  ;;  %v4770_v50 = vld [vmem:[%s11836_s13 + $0x110] sm:$0xff]  ;;  %v4765_v56 = vld [vmem:[%s11836_s13 + $0xe8] sm:$0xff] }
 0x609   : > { %5083 = vmatprep.subr.mxu1 %v6588_v57  ;;  %5013 = vmatpush2.msra.mxu0 %v6585_v58  ;;  %v4767_v57 = vld [vmem:[%s11836_s13 + $0xf8] sm:$0xff]  ;;  %v4764_v58 = vld [vmem:[%s11836_s13 + $0xe0] sm:$0xff] }
 0x60a   : > { %5084 = vmatpush2.msra.mxu1 %v6587_v29  ;;  %5014 = vmatprep.subr.mxu0 %v6582_v59  ;;  %v4766_v29 = vld [vmem:[%s11836_s13 + $0xf0] sm:$0xff]  ;;  %v4761_v59 = vld [vmem:[%s11836_s13 + $0xc8] sm:$0xff] }
 0x60b   : > { %5085 = vmatprep.subr.mxu1 %v6584_v1  ;;  %5015 = vmatpush2.msra.mxu0 %v6581_v61  ;;  %v4763_v1 = vld [vmem:[%s11836_s13 + $0xd8] sm:$0xff]  ;;  %v4760_v61 = vld [vmem:[%s11836_s13 + $0xc0] sm:$0xff] }
 0x60c   : > { %5086 = vmatpush2.msra.mxu1 %v6583_v28  ;;  %5106 = vmatprep.subr.mxu0 %v4797_v62  ;;  %v4762_v28 = vld [vmem:[%s11836_s13 + $0xd0] sm:$0xff]  ;;  %v4757_v62 = vld [vmem:[%s11836_s13 + $0xa8] sm:$0xff] }
 0x60d   : > { %5177 = vmatprep.subr.mxu1 %v4799_v63  ;;  %v4759_v63 = vld [vmem:[%s11836_s13 + $0xb8] sm:$0xff] }
 0x65a   : > { %v4408_v0 = vpop.f32.mrf.mxu0  ;;  %v4479_v2 = vpop.f32.mrf.mxu1 }
 0x65b   : > { %v4480_v16 = vadd.f32 %v4479_v2, %v4408_v0  ;;  %v4756_v0 = vld [vmem:[%s11836_s13 + $0xa0] sm:$0xff]  ;;  %v4758_v2 = vld [vmem:[%s11836_s13 + $0xb0] sm:$0xff] }
 0x65c   : > { %v4410_v6 = vpop.f32.mrf.mxu0  ;;  %v4481_v3 = vpop.f32.mrf.mxu1 }
 0x65d   : > { %v4482_v14 = vadd.f32 %v4481_v3, %v4410_v6  ;;  %v4753_v6 = vld [vmem:[%s11836_s13 + $0x88] sm:$0xff]  ;;  %v4755_v3 = vld [vmem:[%s11836_s13 + $0x98] sm:$0xff] }
 0x67f   : > { %v4721_v60 = vpop.f32.mrf.mxu0 }
 0x681   : > { %v4723_v15 = vpop.f32.mrf.mxu0 }
 0x69b   : > { %v4650_v7 = vpop.f32.mrf.mxu1 }
 0x69c   : > { %v4722_v4 = vadd.f32 %v4721_v60, %v4650_v7  ;;  %v4752_v60 = vld [vmem:[%s11836_s13 + $0x80] sm:$0xff]  ;;  %v4754_v7 = vld [vmem:[%s11836_s13 + $0x90] sm:$0xff] }
 0x69d   : > { %v4652_v9 = vpop.f32.mrf.mxu1 }
 0x69e   : > { %v4724_v13 = vadd.f32 %v4723_v15, %v4652_v9  ;;  %v4726_v8 = vmax.f32 %v4480_v16, %v4722_v4  ;;  %v4749_v4 = vld [vmem:[%s11836_s13 + $0x68] sm:$0xff]  ;;  %v4751_v15 = vld [vmem:[%s11836_s13 + $0x78] sm:$0xff]  ;;  %v4748_v9 = vld [vmem:[%s11836_s13 + $0x60] sm:$0xff] }
 0x69f   : > { %v4750_v16 = vld [vmem:[%s11836_s13 + $0x70] sm:$0xff] }
 0x6a0   : > { %v4727_v12 = vmax.f32 %v4482_v14, %v4724_v13  ;;  %v4745_v14 = vld [vmem:[%s11836_s13 + $0x48] sm:$0xff]  ;;  %v4747_v13 = vld [vmem:[%s11836_s13 + $0x58] sm:$0xff] }
 0x6a2   : > { %v4730_v17 = vcombine.low %v4726_v8, %v4727_v12  ;;  %v4744_v8 = vld [vmem:[%s11836_s13 + $0x40] sm:$0xff]  ;;  %v4746_v12 = vld [vmem:[%s11836_s13 + $0x50] sm:$0xff] }
 0x6a4   : > { %4734 = vst.msk [vmem:[#allocation3] sm:$0xff] %vm4733_vm12, %v4730_v17  ;;  %v4741_v17 = vld [vmem:[%s11836_s13 + $0x28] sm:$0xff] }
 0x6ab   : > { %v4837_v10 = vld [vmem:[#allocation3 + $0x1] ss:$4 sm:$0x3]  ;;  %v10887_v21 = vld [vmem:[#allocation3] ss:$4 sm:$0x3] }
 0x6ac   : > { %v4947_v11 = vrot.slane %v4837_v10, %v7310_v23  ;;  %v4943_v20 = vrot.slane %v4837_v10, %v11863_v24  ;;  %v5102_v47 = vrot.slane %v10887_v21, %v7310_v23  ;;  %v4743_v10 = vld [vmem:[%s11836_s13 + $0x38] sm:$0xff] }
 0x6ae   : > { %6617 = vmatprep.mubr.msk.f32.mxu0 %vm4949_vm13, %v4947_v11  ;;  %6618 = vmatprep.mubr.msk.f32.mxu1 %vm4949_vm13, %v4947_v11  ;;  %v4740_v11 = vld [vmem:[%s11836_s13 + $0x20] sm:$0xff] }
 0x6af   : > { %5017 = vmatmul.mubr.f32.vlgmr.msra.gmra.mxu0 %v4943_v20  ;;  %5088 = vmatmul.mubr.f32.vlgmr.msra.gmra.mxu1 %v4943_v20  ;;  %v4742_v20 = vld [vmem:[%s11836_s13 + $0x30] sm:$0xff] }
 0x6b0   : > { %5107 = vmatpush1.msra.mxu0 %v4796_v18  ;;  %5178 = vmatpush1.msra.mxu1 %v4798_v26  ;;  %v4737_v18 = vld [vmem:[%s11836_s13 + $0x8] sm:$0xff]  ;;  %v4739_v26 = vld [vmem:[%s11836_s13 + $0x18] sm:$0xff] }
 0x6b1   : > { %5108 = vmatprep.subr.mxu0 %v4793_v30  ;;  %6619 = vmatprep.mubr.msk.f32.mxu0 %vm4949_vm13, %v5102_v47  ;;  %v4736_v30 = vld [vmem:[%s11836_s13] sm:$0xff] }
 0x6b2   : > { %5179 = vmatprep.subr.mxu1 %v4795_v33  ;;  %6620 = vmatprep.mubr.msk.f32.mxu1 %vm4949_vm13, %v5102_v47  ;;  %v4738_v47 = vld [vmem:[%s11836_s13 + $0x10] sm:$0xff]  ;;  %v4833_v33 = vld [vmem:[%s11836_s13 + $0x308] sm:$0xff] }
 0x6b3   : > { %5109 = vmatpush1.msra.mxu0 %v4792_v44  ;;  %5180 = vmatpush1.msra.mxu1 %v4794_v25  ;;  %v4835_v44 = vld [vmem:[%s11836_s13 + $0x318] sm:$0xff]  ;;  %v4832_v25 = vld [vmem:[%s11836_s13 + $0x300] sm:$0xff] }
 0x6b4   : > { %5110 = vmatprep.subr.mxu0 %v4789_v27  ;;  %5181 = vmatprep.subr.mxu1 %v4791_v45  ;;  %v4834_v27 = vld [vmem:[%s11836_s13 + $0x310] sm:$0xff]  ;;  %v4829_v45 = vld [vmem:[%s11836_s13 + $0x2e8] sm:$0xff] }
 0x6b5   : > { %5111 = vmatpush1.msra.mxu0 %v4788_v46  ;;  %5182 = vmatpush1.msra.mxu1 %v4790_v22  ;;  %v4831_v46 = vld [vmem:[%s11836_s13 + $0x2f8] sm:$0xff]  ;;  %v4828_v22 = vld [vmem:[%s11836_s13 + $0x2e0] sm:$0xff] }
 0x6b6   : > { %5112 = vmatprep.subr.mxu0 %v4785_v35  ;;  %5183 = vmatprep.subr.mxu1 %v4787_v36  ;;  %v4830_v35 = vld [vmem:[%s11836_s13 + $0x2f0] sm:$0xff]  ;;  %v4825_v36 = vld [vmem:[%s11836_s13 + $0x2c8] sm:$0xff] }
 0x6b7   : > { %5113 = vmatpush1.msra.mxu0 %v4784_v37  ;;  %5184 = vmatpush1.msra.mxu1 %v4786_v38  ;;  %v4827_v37 = vld [vmem:[%s11836_s13 + $0x2d8] sm:$0xff]  ;;  %v4824_v38 = vld [vmem:[%s11836_s13 + $0x2c0] sm:$0xff] }
 0x6b8   : > { %5114 = vmatprep.subr.mxu0 %v4781_v48  ;;  %5185 = vmatprep.subr.mxu1 %v4783_v31  ;;  %v4826_v48 = vld [vmem:[%s11836_s13 + $0x2d0] sm:$0xff]  ;;  %v4821_v31 = vld [vmem:[%s11836_s13 + $0x2a8] sm:$0xff] }
 0x6b9   : > { %5115 = vmatpush1.msra.mxu0 %v4780_v49  ;;  %5186 = vmatpush1.msra.mxu1 %v4782_v39  ;;  %v4823_v49 = vld [vmem:[%s11836_s13 + $0x2b8] sm:$0xff]  ;;  %v4820_v39 = vld [vmem:[%s11836_s13 + $0x2a0] sm:$0xff] }
 0x6ba   : > { %5116 = vmatprep.subr.mxu0 %v4777_v40  ;;  %5187 = vmatprep.subr.mxu1 %v4779_v51  ;;  %v4822_v40 = vld [vmem:[%s11836_s13 + $0x2b0] sm:$0xff]  ;;  %v4817_v51 = vld [vmem:[%s11836_s13 + $0x288] sm:$0xff] }
 0x6bb   : > { %5117 = vmatpush1.msra.mxu0 %v4776_v41  ;;  %5188 = vmatpush1.msra.mxu1 %v4778_v52  ;;  %v4819_v41 = vld [vmem:[%s11836_s13 + $0x298] sm:$0xff]  ;;  %v4816_v52 = vld [vmem:[%s11836_s13 + $0x280] sm:$0xff] }
 0x6bc   : > { %5118 = vmatprep.subr.mxu0 %v4773_v42  ;;  %5189 = vmatprep.subr.mxu1 %v4775_v53  ;;  %v4818_v42 = vld [vmem:[%s11836_s13 + $0x290] sm:$0xff]  ;;  %v4813_v53 = vld [vmem:[%s11836_s13 + $0x268] sm:$0xff] }
 0x6bd   : > { %5119 = vmatpush1.msra.mxu0 %v4772_v19  ;;  %5190 = vmatpush1.msra.mxu1 %v4774_v43  ;;  %v4815_v19 = vld [vmem:[%s11836_s13 + $0x278] sm:$0xff]  ;;  %v4812_v43 = vld [vmem:[%s11836_s13 + $0x260] sm:$0xff] }
 0x6be   : > { %5120 = vmatprep.subr.mxu0 %v4769_v32  ;;  %5191 = vmatprep.subr.mxu1 %v4771_v54  ;;  %v4814_v32 = vld [vmem:[%s11836_s13 + $0x270] sm:$0xff]  ;;  %v4809_v54 = vld [vmem:[%s11836_s13 + $0x248] sm:$0xff] }
 0x6bf   : > { %5121 = vmatpush1.msra.mxu0 %v4768_v55  ;;  %5192 = vmatpush1.msra.mxu1 %v4770_v50  ;;  %v4811_v55 = vld [vmem:[%s11836_s13 + $0x258] sm:$0xff]  ;;  %v4808_v50 = vld [vmem:[%s11836_s13 + $0x240] sm:$0xff] }
 0x6c0   : > { %5122 = vmatprep.subr.mxu0 %v4765_v56  ;;  %5193 = vmatprep.subr.mxu1 %v4767_v57  ;;  %v4810_v56 = vld [vmem:[%s11836_s13 + $0x250] sm:$0xff]  ;;  %v4805_v57 = vld [vmem:[%s11836_s13 + $0x228] sm:$0xff] }
 0x6c1   : > { %5123 = vmatpush1.msra.mxu0 %v4764_v58  ;;  %5194 = vmatpush1.msra.mxu1 %v4766_v29  ;;  %v4807_v58 = vld [vmem:[%s11836_s13 + $0x238] sm:$0xff]  ;;  %v4804_v29 = vld [vmem:[%s11836_s13 + $0x220] sm:$0xff] }
 0x6c2   : > { %5124 = vmatprep.subr.mxu0 %v4761_v59  ;;  %5195 = vmatprep.subr.mxu1 %v4763_v1  ;;  %v4806_v59 = vld [vmem:[%s11836_s13 + $0x230] sm:$0xff]  ;;  %v4801_v1 = vld [vmem:[%s11836_s13 + $0x208] sm:$0xff] }
 0x6c3   : > { %5125 = vmatpush1.msra.mxu0 %v4760_v61  ;;  %5196 = vmatpush1.msra.mxu1 %v4762_v28  ;;  %v4803_v61 = vld [vmem:[%s11836_s13 + $0x218] sm:$0xff]  ;;  %v4800_v28 = vld [vmem:[%s11836_s13 + $0x200] sm:$0xff] }
 0x6c4   : > { %5126 = vmatprep.subr.mxu0 %v4757_v62  ;;  %5197 = vmatprep.subr.mxu1 %v4759_v63  ;;  %v4802_v62 = vld [vmem:[%s11836_s13 + $0x210] sm:$0xff]  ;;  %v11189_v63 = vld [vmem:[#allocation3 + $0x2] ss:$4 sm:$0x3] }
 0x6c5   : > { %5127 = vmatpush1.msra.mxu0 %v4756_v0  ;;  %5198 = vmatpush1.msra.mxu1 %v4758_v2  ;;  %v5098_v0 = vrot.slane %v10887_v21, %v11863_v24  ;;  %v6682_v2 = vld [vmem:[%s11836_s13 + $0x828] sm:$0xff]  ;;  %v6683_v21 = vld [vmem:[%s11836_s13 + $0x830] sm:$0xff] }
 0x6c6   : > { %5128 = vmatprep.subr.mxu0 %v4753_v6  ;;  %5199 = vmatprep.subr.mxu1 %v4755_v3  ;;  %v6684_v6 = vld [vmem:[%s11836_s13 + $0x838] sm:$0xff]  ;;  %v6681_v3 = vld [vmem:[%s11836_s13 + $0x820] sm:$0xff] }
 0x6c7   : > { %5129 = vmatpush1.msra.mxu0 %v4752_v60  ;;  %5200 = vmatpush1.msra.mxu1 %v4754_v7  ;;  %v5359_v60 = vrot.slane %v11189_v63, %v7310_v23  ;;  %v6678_v7 = vld [vmem:[%s11836_s13 + $0x808] sm:$0xff] }
 0x6c8   : > { %5130 = vmatprep.subr.mxu0 %v4749_v4  ;;  %5201 = vmatprep.subr.mxu1 %v4751_v15  ;;  %v6680_v4 = vld [vmem:[%s11836_s13 + $0x818] sm:$0xff]  ;;  %v6677_v15 = vld [vmem:[%s11836_s13 + $0x800] sm:$0xff] }
 0x6c9   : > { %5131 = vmatpush1.msra.mxu0 %v4748_v9  ;;  %5202 = vmatpush1.msra.mxu1 %v4750_v16  ;;  %v6679_v9 = vld [vmem:[%s11836_s13 + $0x810] sm:$0xff]  ;;  %v6674_v16 = vld [vmem:[%s11836_s13 + $0x7e8] sm:$0xff] }
 0x6ca   : > { %5132 = vmatprep.subr.mxu0 %v4745_v14  ;;  %5203 = vmatprep.subr.mxu1 %v4747_v13  ;;  %v6676_v14 = vld [vmem:[%s11836_s13 + $0x7f8] sm:$0xff]  ;;  %v6673_v13 = vld [vmem:[%s11836_s13 + $0x7e0] sm:$0xff] }
 0x6cb   : > { %5133 = vmatpush1.msra.mxu0 %v4744_v8  ;;  %5204 = vmatpush1.msra.mxu1 %v4746_v12  ;;  %v6675_v8 = vld [vmem:[%s11836_s13 + $0x7f0] sm:$0xff]  ;;  %v6670_v12 = vld [vmem:[%s11836_s13 + $0x7c8] sm:$0xff] }
 0x6cc   : > { %5134 = vmatprep.subr.mxu0 %v4741_v17  ;;  %5205 = vmatprep.subr.mxu1 %v4743_v10  ;;  %v6672_v17 = vld [vmem:[%s11836_s13 + $0x7d8] sm:$0xff]  ;;  %v6669_v10 = vld [vmem:[%s11836_s13 + $0x7c0] sm:$0xff] }
 0x6cd   : > { %5135 = vmatpush1.msra.mxu0 %v4740_v11  ;;  %5206 = vmatpush1.msra.mxu1 %v4742_v20  ;;  %v6671_v11 = vld [vmem:[%s11836_s13 + $0x7d0] sm:$0xff]  ;;  %v6666_v20 = vld [vmem:[%s11836_s13 + $0x7a8] sm:$0xff] }
 0x6ce   : > { %5136 = vmatprep.subr.mxu0 %v4737_v18  ;;  %5207 = vmatprep.subr.mxu1 %v4739_v26  ;;  %v6668_v18 = vld [vmem:[%s11836_s13 + $0x7b8] sm:$0xff]  ;;  %v6665_v26 = vld [vmem:[%s11836_s13 + $0x7a0] sm:$0xff] }
 0x6cf   : > { %5137 = vmatpush1.msra.mxu0 %v4736_v30  ;;  %5208 = vmatpush1.msra.mxu1 %v4738_v47  ;;  %v6667_v30 = vld [vmem:[%s11836_s13 + $0x7b0] sm:$0xff]  ;;  %v6662_v47 = vld [vmem:[%s11836_s13 + $0x788] sm:$0xff] }
 0x6d0   : > { %5152 = vmatprep.subr.mxu0 %v4833_v33  ;;  %5223 = vmatprep.subr.mxu1 %v4835_v44  ;;  %v6664_v33 = vld [vmem:[%s11836_s13 + $0x798] sm:$0xff]  ;;  %v6661_v44 = vld [vmem:[%s11836_s13 + $0x780] sm:$0xff] }
 0x6d1   : > { %5153 = vmatpush2.msra.mxu0 %v4832_v25  ;;  %5224 = vmatpush2.msra.mxu1 %v4834_v27  ;;  %v6663_v25 = vld [vmem:[%s11836_s13 + $0x790] sm:$0xff]  ;;  %v6658_v27 = vld [vmem:[%s11836_s13 + $0x768] sm:$0xff] }
 0x6d2   : > { %5154 = vmatprep.subr.mxu0 %v4829_v45  ;;  %5225 = vmatprep.subr.mxu1 %v4831_v46  ;;  %v6660_v45 = vld [vmem:[%s11836_s13 + $0x778] sm:$0xff]  ;;  %v6657_v46 = vld [vmem:[%s11836_s13 + $0x760] sm:$0xff] }
 0x6d3   : > { %5155 = vmatpush2.msra.mxu0 %v4828_v22  ;;  %5226 = vmatpush2.msra.mxu1 %v4830_v35  ;;  %v6659_v22 = vld [vmem:[%s11836_s13 + $0x770] sm:$0xff]  ;;  %v6654_v35 = vld [vmem:[%s11836_s13 + $0x748] sm:$0xff] }
 0x6d4   : > { %5156 = vmatprep.subr.mxu0 %v4825_v36  ;;  %5227 = vmatprep.subr.mxu1 %v4827_v37  ;;  %v6656_v36 = vld [vmem:[%s11836_s13 + $0x758] sm:$0xff]  ;;  %v6653_v37 = vld [vmem:[%s11836_s13 + $0x740] sm:$0xff] }
 0x6d5   : > { %5157 = vmatpush2.msra.mxu0 %v4824_v38  ;;  %5228 = vmatpush2.msra.mxu1 %v4826_v48  ;;  %v6655_v38 = vld [vmem:[%s11836_s13 + $0x750] sm:$0xff]  ;;  %v6650_v48 = vld [vmem:[%s11836_s13 + $0x728] sm:$0xff] }
 0x6d6   : > { %5158 = vmatprep.subr.mxu0 %v4821_v31  ;;  %5229 = vmatprep.subr.mxu1 %v4823_v49  ;;  %v6652_v31 = vld [vmem:[%s11836_s13 + $0x738] sm:$0xff]  ;;  %v6649_v49 = vld [vmem:[%s11836_s13 + $0x720] sm:$0xff] }
 0x6d7   : > { %5159 = vmatpush2.msra.mxu0 %v4820_v39  ;;  %5230 = vmatpush2.msra.mxu1 %v4822_v40  ;;  %v6651_v39 = vld [vmem:[%s11836_s13 + $0x730] sm:$0xff]  ;;  %v6646_v40 = vld [vmem:[%s11836_s13 + $0x708] sm:$0xff] }
 0x6d8   : > { %5160 = vmatprep.subr.mxu0 %v4817_v51  ;;  %5231 = vmatprep.subr.mxu1 %v4819_v41  ;;  %v6648_v51 = vld [vmem:[%s11836_s13 + $0x718] sm:$0xff]  ;;  %v6645_v41 = vld [vmem:[%s11836_s13 + $0x700] sm:$0xff] }
 0x6d9   : > { %5161 = vmatpush2.msra.mxu0 %v4816_v52  ;;  %5232 = vmatpush2.msra.mxu1 %v4818_v42  ;;  %v6647_v52 = vld [vmem:[%s11836_s13 + $0x710] sm:$0xff]  ;;  %v6642_v42 = vld [vmem:[%s11836_s13 + $0x6e8] sm:$0xff] }
 0x6da   : > { %5162 = vmatprep.subr.mxu0 %v4813_v53  ;;  %5233 = vmatprep.subr.mxu1 %v4815_v19  ;;  %v6644_v53 = vld [vmem:[%s11836_s13 + $0x6f8] sm:$0xff]  ;;  %v6641_v19 = vld [vmem:[%s11836_s13 + $0x6e0] sm:$0xff] }
 0x6db   : > { %5163 = vmatpush2.msra.mxu0 %v4812_v43  ;;  %5234 = vmatpush2.msra.mxu1 %v4814_v32  ;;  %v6643_v43 = vld [vmem:[%s11836_s13 + $0x6f0] sm:$0xff]  ;;  %v6638_v32 = vld [vmem:[%s11836_s13 + $0x6c8] sm:$0xff] }
 0x6dc   : > { %5164 = vmatprep.subr.mxu0 %v4809_v54  ;;  %5235 = vmatprep.subr.mxu1 %v4811_v55  ;;  %v6640_v54 = vld [vmem:[%s11836_s13 + $0x6d8] sm:$0xff]  ;;  %v6637_v55 = vld [vmem:[%s11836_s13 + $0x6c0] sm:$0xff] }
 0x6dd   : > { %5165 = vmatpush2.msra.mxu0 %v4808_v50  ;;  %5236 = vmatpush2.msra.mxu1 %v4810_v56  ;;  %v6639_v50 = vld [vmem:[%s11836_s13 + $0x6d0] sm:$0xff]  ;;  %v6634_v56 = vld [vmem:[%s11836_s13 + $0x6a8] sm:$0xff] }
 0x6de   : > { %5166 = vmatprep.subr.mxu0 %v4805_v57  ;;  %5237 = vmatprep.subr.mxu1 %v4807_v58  ;;  %v6636_v57 = vld [vmem:[%s11836_s13 + $0x6b8] sm:$0xff]  ;;  %v6633_v58 = vld [vmem:[%s11836_s13 + $0x6a0] sm:$0xff] }
 0x6df   : > { %5167 = vmatpush2.msra.mxu0 %v4804_v29  ;;  %5238 = vmatpush2.msra.mxu1 %v4806_v59  ;;  %v6635_v29 = vld [vmem:[%s11836_s13 + $0x6b0] sm:$0xff]  ;;  %v6630_v59 = vld [vmem:[%s11836_s13 + $0x688] sm:$0xff] }
 0x6e0   : > { %5168 = vmatprep.subr.mxu0 %v4801_v1  ;;  %5239 = vmatprep.subr.mxu1 %v4803_v61  ;;  %v6632_v1 = vld [vmem:[%s11836_s13 + $0x698] sm:$0xff]  ;;  %v6629_v61 = vld [vmem:[%s11836_s13 + $0x680] sm:$0xff] }
 0x6e1   : > { %5169 = vmatpush2.msra.mxu0 %v4800_v28  ;;  %5240 = vmatpush2.msra.mxu1 %v4802_v62  ;;  %v6631_v28 = vld [vmem:[%s11836_s13 + $0x690] sm:$0xff]  ;;  %v6626_v62 = vld [vmem:[%s11836_s13 + $0x668] sm:$0xff] }
 0x6e2   : > { %5171 = vmatmul.mubr.f32.vlgmr.msra.gmra.mxu0 %v5098_v0  ;;  %5242 = vmatmul.mubr.f32.vlgmr.msra.gmra.mxu1 %v5098_v0  ;;  %v6628_v0 = vld [vmem:[%s11836_s13 + $0x678] sm:$0xff] }
 0x6e3   : > { %5363 = vmatprep.subr.mxu0 %v6682_v2  ;;  %5434 = vmatprep.subr.mxu1 %v6684_v6  ;;  %v6625_v2 = vld [vmem:[%s11836_s13 + $0x660] sm:$0xff]  ;;  %v6627_v6 = vld [vmem:[%s11836_s13 + $0x670] sm:$0xff] }
 0x6e4   : > { %5364 = vmatpush1.msra.mxu0 %v6681_v3  ;;  %6721 = vmatprep.mubr.msk.f32.mxu0 %vm4949_vm13, %v5359_v60  ;;  %v6622_v3 = vld [vmem:[%s11836_s13 + $0x648] sm:$0xff] }
 0x6e5   : > { %5435 = vmatpush1.msra.mxu1 %v6683_v21  ;;  %6722 = vmatprep.mubr.msk.f32.mxu1 %vm4949_vm13, %v5359_v60  ;;  %v6624_v60 = vld [vmem:[%s11836_s13 + $0x658] sm:$0xff]  ;;  %v6621_v21 = vld [vmem:[%s11836_s13 + $0x640] sm:$0xff] }
 0x6e6   : > { %5365 = vmatprep.subr.mxu0 %v6678_v7  ;;  %5436 = vmatprep.subr.mxu1 %v6680_v4  ;;  %v6623_v7 = vld [vmem:[%s11836_s13 + $0x650] sm:$0xff]  ;;  %v6718_v4 = vld [vmem:[%s11836_s13 + $0x948] sm:$0xff] }
 0x6e7   : > { %5366 = vmatpush1.msra.mxu0 %v6677_v15  ;;  %5437 = vmatpush1.msra.mxu1 %v6679_v9  ;;  %v6720_v15 = vld [vmem:[%s11836_s13 + $0x958] sm:$0xff]  ;;  %v6717_v9 = vld [vmem:[%s11836_s13 + $0x940] sm:$0xff] }
 0x6e8   : > { %5367 = vmatprep.subr.mxu0 %v6674_v16  ;;  %5438 = vmatprep.subr.mxu1 %v6676_v14  ;;  %v6719_v16 = vld [vmem:[%s11836_s13 + $0x950] sm:$0xff]  ;;  %v6714_v14 = vld [vmem:[%s11836_s13 + $0x928] sm:$0xff] }
 0x6e9   : > { %5368 = vmatpush1.msra.mxu0 %v6673_v13  ;;  %5439 = vmatpush1.msra.mxu1 %v6675_v8  ;;  %v6716_v13 = vld [vmem:[%s11836_s13 + $0x938] sm:$0xff]  ;;  %v6713_v8 = vld [vmem:[%s11836_s13 + $0x920] sm:$0xff] }
 0x6ea   : > { %5369 = vmatprep.subr.mxu0 %v6670_v12  ;;  %5440 = vmatprep.subr.mxu1 %v6672_v17  ;;  %v6715_v12 = vld [vmem:[%s11836_s13 + $0x930] sm:$0xff]  ;;  %v6710_v17 = vld [vmem:[%s11836_s13 + $0x908] sm:$0xff] }
 0x6eb   : > { %5370 = vmatpush1.msra.mxu0 %v6669_v10  ;;  %5441 = vmatpush1.msra.mxu1 %v6671_v11  ;;  %v6712_v10 = vld [vmem:[%s11836_s13 + $0x918] sm:$0xff]  ;;  %v6709_v11 = vld [vmem:[%s11836_s13 + $0x900] sm:$0xff] }
 0x6ec   : > { %5371 = vmatprep.subr.mxu0 %v6666_v20  ;;  %5442 = vmatprep.subr.mxu1 %v6668_v18  ;;  %v6711_v20 = vld [vmem:[%s11836_s13 + $0x910] sm:$0xff]  ;;  %v6706_v18 = vld [vmem:[%s11836_s13 + $0x8e8] sm:$0xff] }
 0x6ed   : > { %5372 = vmatpush1.msra.mxu0 %v6665_v26  ;;  %5443 = vmatpush1.msra.mxu1 %v6667_v30  ;;  %v6708_v26 = vld [vmem:[%s11836_s13 + $0x8f8] sm:$0xff]  ;;  %v6705_v30 = vld [vmem:[%s11836_s13 + $0x8e0] sm:$0xff] }
 0x6ee   : > { %5373 = vmatprep.subr.mxu0 %v6662_v47  ;;  %5444 = vmatprep.subr.mxu1 %v6664_v33  ;;  %v6707_v47 = vld [vmem:[%s11836_s13 + $0x8f0] sm:$0xff]  ;;  %v6702_v33 = vld [vmem:[%s11836_s13 + $0x8c8] sm:$0xff] }
 0x6ef   : > { %5374 = vmatpush1.msra.mxu0 %v6661_v44  ;;  %5445 = vmatpush1.msra.mxu1 %v6663_v25  ;;  %v6704_v44 = vld [vmem:[%s11836_s13 + $0x8d8] sm:$0xff]  ;;  %v6701_v25 = vld [vmem:[%s11836_s13 + $0x8c0] sm:$0xff] }
 0x6f0   : > { %5375 = vmatprep.subr.mxu0 %v6658_v27  ;;  %5446 = vmatprep.subr.mxu1 %v6660_v45  ;;  %v6703_v27 = vld [vmem:[%s11836_s13 + $0x8d0] sm:$0xff]  ;;  %v6698_v45 = vld [vmem:[%s11836_s13 + $0x8a8] sm:$0xff] }
 0x6f1   : > { %5376 = vmatpush1.msra.mxu0 %v6657_v46  ;;  %5447 = vmatpush1.msra.mxu1 %v6659_v22  ;;  %v6700_v46 = vld [vmem:[%s11836_s13 + $0x8b8] sm:$0xff]  ;;  %v6697_v22 = vld [vmem:[%s11836_s13 + $0x8a0] sm:$0xff] }
 0x6f2   : > { %5377 = vmatprep.subr.mxu0 %v6654_v35  ;;  %5448 = vmatprep.subr.mxu1 %v6656_v36  ;;  %v6699_v35 = vld [vmem:[%s11836_s13 + $0x8b0] sm:$0xff]  ;;  %v6694_v36 = vld [vmem:[%s11836_s13 + $0x888] sm:$0xff] }
 0x6f3   : > { %5378 = vmatpush1.msra.mxu0 %v6653_v37  ;;  %5449 = vmatpush1.msra.mxu1 %v6655_v38  ;;  %v6696_v37 = vld [vmem:[%s11836_s13 + $0x898] sm:$0xff]  ;;  %v6693_v38 = vld [vmem:[%s11836_s13 + $0x880] sm:$0xff] }
 0x6f4   : > { %5379 = vmatprep.subr.mxu0 %v6650_v48  ;;  %5450 = vmatprep.subr.mxu1 %v6652_v31  ;;  %v6695_v48 = vld [vmem:[%s11836_s13 + $0x890] sm:$0xff]  ;;  %v6690_v31 = vld [vmem:[%s11836_s13 + $0x868] sm:$0xff] }
 0x6f5   : > { %5380 = vmatpush1.msra.mxu0 %v6649_v49  ;;  %5451 = vmatpush1.msra.mxu1 %v6651_v39  ;;  %v6692_v49 = vld [vmem:[%s11836_s13 + $0x878] sm:$0xff]  ;;  %v6689_v39 = vld [vmem:[%s11836_s13 + $0x860] sm:$0xff] }
 0x6f6   : > { %5381 = vmatprep.subr.mxu0 %v6646_v40  ;;  %5452 = vmatprep.subr.mxu1 %v6648_v51  ;;  %v6691_v40 = vld [vmem:[%s11836_s13 + $0x870] sm:$0xff]  ;;  %v6686_v51 = vld [vmem:[%s11836_s13 + $0x848] sm:$0xff] }
 0x6f7   : > { %5382 = vmatpush1.msra.mxu0 %v6645_v41  ;;  %5453 = vmatpush1.msra.mxu1 %v6647_v52  ;;  %v6688_v41 = vld [vmem:[%s11836_s13 + $0x858] sm:$0xff]  ;;  %v6685_v52 = vld [vmem:[%s11836_s13 + $0x840] sm:$0xff] }
 0x6f8   : > { %5383 = vmatprep.subr.mxu0 %v6642_v42  ;;  %5454 = vmatprep.subr.mxu1 %v6644_v53  ;;  %v6687_v42 = vld [vmem:[%s11836_s13 + $0x850] sm:$0xff]  ;;  %v11497_v53 = vld [vmem:[#allocation3 + $0x3] ss:$4 sm:$0x3] }
 0x6f9   : > { %5384 = vmatpush1.msra.mxu0 %v6641_v19  ;;  %5455 = vmatpush1.msra.mxu1 %v6643_v43  ;;  %v5355_v19 = vrot.slane %v11189_v63, %v11863_v24  ;;  %v6784_v43 = vld [vmem:[%s11836_s13 + $0xb48] sm:$0xff]  ;;  %v6785_v63 = vld [vmem:[%s11836_s13 + $0xb50] sm:$0xff] }
 0x6fa   : > { %5385 = vmatprep.subr.mxu0 %v6638_v32  ;;  %5456 = vmatprep.subr.mxu1 %v6640_v54  ;;  %v6786_v32 = vld [vmem:[%s11836_s13 + $0xb58] sm:$0xff]  ;;  %v6783_v54 = vld [vmem:[%s11836_s13 + $0xb40] sm:$0xff] }
 0x6fb   : > { %5386 = vmatpush1.msra.mxu0 %v6637_v55  ;;  %5457 = vmatpush1.msra.mxu1 %v6639_v50  ;;  %v5620_v55 = vrot.slane %v11497_v53, %v7310_v23  ;;  %v6780_v50 = vld [vmem:[%s11836_s13 + $0xb28] sm:$0xff] }
 0x6fc   : > { %5387 = vmatprep.subr.mxu0 %v6634_v56  ;;  %5458 = vmatprep.subr.mxu1 %v6636_v57  ;;  %v6782_v56 = vld [vmem:[%s11836_s13 + $0xb38] sm:$0xff]  ;;  %v6779_v57 = vld [vmem:[%s11836_s13 + $0xb20] sm:$0xff] }
 0x6fd   : > { %5388 = vmatpush1.msra.mxu0 %v6633_v58  ;;  %5459 = vmatpush1.msra.mxu1 %v6635_v29  ;;  %v6781_v58 = vld [vmem:[%s11836_s13 + $0xb30] sm:$0xff]  ;;  %v6776_v29 = vld [vmem:[%s11836_s13 + $0xb08] sm:$0xff] }
 0x6fe   : > { %5389 = vmatprep.subr.mxu0 %v6630_v59  ;;  %5460 = vmatprep.subr.mxu1 %v6632_v1  ;;  %v6778_v59 = vld [vmem:[%s11836_s13 + $0xb18] sm:$0xff]  ;;  %v6775_v1 = vld [vmem:[%s11836_s13 + $0xb00] sm:$0xff] }
 0x6ff   : > { %5390 = vmatpush1.msra.mxu0 %v6629_v61  ;;  %5461 = vmatpush1.msra.mxu1 %v6631_v28  ;;  %v6777_v61 = vld [vmem:[%s11836_s13 + $0xb10] sm:$0xff]  ;;  %v6772_v28 = vld [vmem:[%s11836_s13 + $0xae8] sm:$0xff] }
 0x700   : > { %5391 = vmatprep.subr.mxu0 %v6626_v62  ;;  %5462 = vmatprep.subr.mxu1 %v6628_v0  ;;  %v6774_v62 = vld [vmem:[%s11836_s13 + $0xaf8] sm:$0xff]  ;;  %v6771_v0 = vld [vmem:[%s11836_s13 + $0xae0] sm:$0xff] }
 0x701   : > { %5392 = vmatpush1.msra.mxu0 %v6625_v2  ;;  %5463 = vmatpush1.msra.mxu1 %v6627_v6  ;;  %v6773_v2 = vld [vmem:[%s11836_s13 + $0xaf0] sm:$0xff]  ;;  %v6768_v6 = vld [vmem:[%s11836_s13 + $0xac8] sm:$0xff] }
 0x702   : > { %5393 = vmatprep.subr.mxu0 %v6622_v3  ;;  %5464 = vmatprep.subr.mxu1 %v6624_v60  ;;  %v6770_v3 = vld [vmem:[%s11836_s13 + $0xad8] sm:$0xff]  ;;  %v6767_v60 = vld [vmem:[%s11836_s13 + $0xac0] sm:$0xff] }
 0x703   : > { %5394 = vmatpush1.msra.mxu0 %v6621_v21  ;;  %5465 = vmatpush1.msra.mxu1 %v6623_v7  ;;  %v6769_v21 = vld [vmem:[%s11836_s13 + $0xad0] sm:$0xff]  ;;  %v6764_v7 = vld [vmem:[%s11836_s13 + $0xaa8] sm:$0xff] }
 0x704   : > { %5409 = vmatprep.subr.mxu0 %v6718_v4  ;;  %5480 = vmatprep.subr.mxu1 %v6720_v15  ;;  %v6766_v4 = vld [vmem:[%s11836_s13 + $0xab8] sm:$0xff]  ;;  %v6763_v15 = vld [vmem:[%s11836_s13 + $0xaa0] sm:$0xff] }
 0x705   : > { %5410 = vmatpush2.msra.mxu0 %v6717_v9  ;;  %5481 = vmatpush2.msra.mxu1 %v6719_v16  ;;  %v6765_v9 = vld [vmem:[%s11836_s13 + $0xab0] sm:$0xff]  ;;  %v6760_v16 = vld [vmem:[%s11836_s13 + $0xa88] sm:$0xff] }
 0x706   : > { %5411 = vmatprep.subr.mxu0 %v6714_v14  ;;  %5482 = vmatprep.subr.mxu1 %v6716_v13  ;;  %v6762_v14 = vld [vmem:[%s11836_s13 + $0xa98] sm:$0xff]  ;;  %v6759_v13 = vld [vmem:[%s11836_s13 + $0xa80] sm:$0xff] }
 0x707   : > { %5412 = vmatpush2.msra.mxu0 %v6713_v8  ;;  %5483 = vmatpush2.msra.mxu1 %v6715_v12  ;;  %v6761_v8 = vld [vmem:[%s11836_s13 + $0xa90] sm:$0xff]  ;;  %v6756_v12 = vld [vmem:[%s11836_s13 + $0xa68] sm:$0xff] }
 0x708   : > { %5413 = vmatprep.subr.mxu0 %v6710_v17  ;;  %5484 = vmatprep.subr.mxu1 %v6712_v10  ;;  %v6758_v17 = vld [vmem:[%s11836_s13 + $0xa78] sm:$0xff]  ;;  %v6755_v10 = vld [vmem:[%s11836_s13 + $0xa60] sm:$0xff] }
 0x709   : > { %5414 = vmatpush2.msra.mxu0 %v6709_v11  ;;  %5485 = vmatpush2.msra.mxu1 %v6711_v20  ;;  %v6757_v11 = vld [vmem:[%s11836_s13 + $0xa70] sm:$0xff]  ;;  %v6752_v20 = vld [vmem:[%s11836_s13 + $0xa48] sm:$0xff] }
 0x70a   : > { %5415 = vmatprep.subr.mxu0 %v6706_v18  ;;  %5486 = vmatprep.subr.mxu1 %v6708_v26  ;;  %v6754_v18 = vld [vmem:[%s11836_s13 + $0xa58] sm:$0xff]  ;;  %v6751_v26 = vld [vmem:[%s11836_s13 + $0xa40] sm:$0xff] }
 0x70b   : > { %5416 = vmatpush2.msra.mxu0 %v6705_v30  ;;  %5487 = vmatpush2.msra.mxu1 %v6707_v47  ;;  %v6753_v30 = vld [vmem:[%s11836_s13 + $0xa50] sm:$0xff]  ;;  %v6748_v47 = vld [vmem:[%s11836_s13 + $0xa28] sm:$0xff] }
 0x70c   : > { %5417 = vmatprep.subr.mxu0 %v6702_v33  ;;  %5488 = vmatprep.subr.mxu1 %v6704_v44  ;;  %v6750_v33 = vld [vmem:[%s11836_s13 + $0xa38] sm:$0xff]  ;;  %v6747_v44 = vld [vmem:[%s11836_s13 + $0xa20] sm:$0xff] }
 0x70d   : > { %5418 = vmatpush2.msra.mxu0 %v6701_v25  ;;  %5489 = vmatpush2.msra.mxu1 %v6703_v27  ;;  %v6749_v25 = vld [vmem:[%s11836_s13 + $0xa30] sm:$0xff]  ;;  %v6744_v27 = vld [vmem:[%s11836_s13 + $0xa08] sm:$0xff] }
 0x70e   : > { %5419 = vmatprep.subr.mxu0 %v6698_v45  ;;  %5490 = vmatprep.subr.mxu1 %v6700_v46  ;;  %v6746_v45 = vld [vmem:[%s11836_s13 + $0xa18] sm:$0xff]  ;;  %v6743_v46 = vld [vmem:[%s11836_s13 + $0xa00] sm:$0xff] }
 0x70f   : > { %5420 = vmatpush2.msra.mxu0 %v6697_v22  ;;  %5491 = vmatpush2.msra.mxu1 %v6699_v35  ;;  %v6745_v22 = vld [vmem:[%s11836_s13 + $0xa10] sm:$0xff]  ;;  %v6740_v35 = vld [vmem:[%s11836_s13 + $0x9e8] sm:$0xff] }
 0x710   : > { %5421 = vmatprep.subr.mxu0 %v6694_v36  ;;  %5492 = vmatprep.subr.mxu1 %v6696_v37  ;;  %v6742_v36 = vld [vmem:[%s11836_s13 + $0x9f8] sm:$0xff]  ;;  %v6739_v37 = vld [vmem:[%s11836_s13 + $0x9e0] sm:$0xff] }
 0x711   : > { %5422 = vmatpush2.msra.mxu0 %v6693_v38  ;;  %5493 = vmatpush2.msra.mxu1 %v6695_v48  ;;  %v6741_v38 = vld [vmem:[%s11836_s13 + $0x9f0] sm:$0xff]  ;;  %v6736_v48 = vld [vmem:[%s11836_s13 + $0x9c8] sm:$0xff] }
 0x712   : > { %5423 = vmatprep.subr.mxu0 %v6690_v31  ;;  %5494 = vmatprep.subr.mxu1 %v6692_v49  ;;  %v6738_v31 = vld [vmem:[%s11836_s13 + $0x9d8] sm:$0xff]  ;;  %v6735_v49 = vld [vmem:[%s11836_s13 + $0x9c0] sm:$0xff] }
 0x713   : > { %5424 = vmatpush2.msra.mxu0 %v6689_v39  ;;  %5495 = vmatpush2.msra.mxu1 %v6691_v40  ;;  %v6737_v39 = vld [vmem:[%s11836_s13 + $0x9d0] sm:$0xff]  ;;  %v6732_v40 = vld [vmem:[%s11836_s13 + $0x9a8] sm:$0xff] }
 0x714   : > { %5425 = vmatprep.subr.mxu0 %v6686_v51  ;;  %5496 = vmatprep.subr.mxu1 %v6688_v41  ;;  %v6734_v51 = vld [vmem:[%s11836_s13 + $0x9b8] sm:$0xff]  ;;  %v6731_v41 = vld [vmem:[%s11836_s13 + $0x9a0] sm:$0xff] }
 0x715   : > { %5426 = vmatpush2.msra.mxu0 %v6685_v52  ;;  %5497 = vmatpush2.msra.mxu1 %v6687_v42  ;;  %v6733_v52 = vld [vmem:[%s11836_s13 + $0x9b0] sm:$0xff]  ;;  %v6728_v42 = vld [vmem:[%s11836_s13 + $0x988] sm:$0xff] }
 0x716   : > { %5428 = vmatmul.mubr.f32.vlgmr.msra.gmra.mxu0 %v5355_v19  ;;  %5499 = vmatmul.mubr.f32.vlgmr.msra.gmra.mxu1 %v5355_v19  ;;  %v6730_v19 = vld [vmem:[%s11836_s13 + $0x998] sm:$0xff] }
 0x717   : > { %5624 = vmatprep.subr.mxu0 %v6784_v43  ;;  %5695 = vmatprep.subr.mxu1 %v6786_v32  ;;  %v6727_v43 = vld [vmem:[%s11836_s13 + $0x980] sm:$0xff]  ;;  %v6729_v32 = vld [vmem:[%s11836_s13 + $0x990] sm:$0xff] }
 0x718   : > { %5625 = vmatpush1.msra.mxu0 %v6783_v54  ;;  %6823 = vmatprep.mubr.msk.f32.mxu0 %vm4949_vm13, %v5620_v55  ;;  %v6724_v54 = vld [vmem:[%s11836_s13 + $0x968] sm:$0xff] }
 0x719   : > { %5696 = vmatpush1.msra.mxu1 %v6785_v63  ;;  %6824 = vmatprep.mubr.msk.f32.mxu1 %vm4949_vm13, %v5620_v55  ;;  %v6726_v55 = vld [vmem:[%s11836_s13 + $0x978] sm:$0xff]  ;;  %v6723_v63 = vld [vmem:[%s11836_s13 + $0x960] sm:$0xff] }
 0x71a   : > { %5626 = vmatprep.subr.mxu0 %v6780_v50  ;;  %5697 = vmatprep.subr.mxu1 %v6782_v56  ;;  %v6725_v50 = vld [vmem:[%s11836_s13 + $0x970] sm:$0xff]  ;;  %v6820_v56 = vld [vmem:[%s11836_s13 + $0xc68] sm:$0xff] }
 0x71b   : > { %5627 = vmatpush1.msra.mxu0 %v6779_v57  ;;  %5698 = vmatpush1.msra.mxu1 %v6781_v58  ;;  %v6822_v57 = vld [vmem:[%s11836_s13 + $0xc78] sm:$0xff]  ;;  %v6819_v58 = vld [vmem:[%s11836_s13 + $0xc60] sm:$0xff] }
 0x71c   : > { %5628 = vmatprep.subr.mxu0 %v6776_v29  ;;  %5699 = vmatprep.subr.mxu1 %v6778_v59  ;;  %v6821_v29 = vld [vmem:[%s11836_s13 + $0xc70] sm:$0xff]  ;;  %v6816_v59 = vld [vmem:[%s11836_s13 + $0xc48] sm:$0xff] }
 0x71d   : > { %5629 = vmatpush1.msra.mxu0 %v6775_v1  ;;  %5700 = vmatpush1.msra.mxu1 %v6777_v61  ;;  %v6818_v1 = vld [vmem:[%s11836_s13 + $0xc58] sm:$0xff]  ;;  %v6815_v61 = vld [vmem:[%s11836_s13 + $0xc40] sm:$0xff] }
 0x71e   : > { %5630 = vmatprep.subr.mxu0 %v6772_v28  ;;  %5701 = vmatprep.subr.mxu1 %v6774_v62  ;;  %v6817_v28 = vld [vmem:[%s11836_s13 + $0xc50] sm:$0xff]  ;;  %v6812_v62 = vld [vmem:[%s11836_s13 + $0xc28] sm:$0xff] }
 0x71f   : > { %5631 = vmatpush1.msra.mxu0 %v6771_v0  ;;  %5702 = vmatpush1.msra.mxu1 %v6773_v2  ;;  %v6814_v0 = vld [vmem:[%s11836_s13 + $0xc38] sm:$0xff]  ;;  %v6811_v2 = vld [vmem:[%s11836_s13 + $0xc20] sm:$0xff] }
 0x720   : > { %5632 = vmatprep.subr.mxu0 %v6768_v6  ;;  %5703 = vmatprep.subr.mxu1 %v6770_v3  ;;  %v6813_v6 = vld [vmem:[%s11836_s13 + $0xc30] sm:$0xff]  ;;  %v6808_v3 = vld [vmem:[%s11836_s13 + $0xc08] sm:$0xff] }
 0x721   : > { %5633 = vmatpush1.msra.mxu0 %v6767_v60  ;;  %5704 = vmatpush1.msra.mxu1 %v6769_v21  ;;  %v6810_v60 = vld [vmem:[%s11836_s13 + $0xc18] sm:$0xff]  ;;  %v6807_v21 = vld [vmem:[%s11836_s13 + $0xc00] sm:$0xff] }
 0x722   : > { %5634 = vmatprep.subr.mxu0 %v6764_v7  ;;  %5705 = vmatprep.subr.mxu1 %v6766_v4  ;;  %v6809_v7 = vld [vmem:[%s11836_s13 + $0xc10] sm:$0xff]  ;;  %v6804_v4 = vld [vmem:[%s11836_s13 + $0xbe8] sm:$0xff] }
 0x723   : > { %5635 = vmatpush1.msra.mxu0 %v6763_v15  ;;  %5706 = vmatpush1.msra.mxu1 %v6765_v9  ;;  %v6806_v15 = vld [vmem:[%s11836_s13 + $0xbf8] sm:$0xff]  ;;  %v6803_v9 = vld [vmem:[%s11836_s13 + $0xbe0] sm:$0xff] }
 0x724   : > { %5636 = vmatprep.subr.mxu0 %v6760_v16  ;;  %5707 = vmatprep.subr.mxu1 %v6762_v14  ;;  %v6805_v16 = vld [vmem:[%s11836_s13 + $0xbf0] sm:$0xff]  ;;  %v6800_v14 = vld [vmem:[%s11836_s13 + $0xbc8] sm:$0xff] }
 0x725   : > { %5637 = vmatpush1.msra.mxu0 %v6759_v13  ;;  %5708 = vmatpush1.msra.mxu1 %v6761_v8  ;;  %v6802_v13 = vld [vmem:[%s11836_s13 + $0xbd8] sm:$0xff]  ;;  %v6799_v8 = vld [vmem:[%s11836_s13 + $0xbc0] sm:$0xff] }
 0x726   : > { %5638 = vmatprep.subr.mxu0 %v6756_v12  ;;  %5709 = vmatprep.subr.mxu1 %v6758_v17  ;;  %v6801_v12 = vld [vmem:[%s11836_s13 + $0xbd0] sm:$0xff]  ;;  %v6796_v17 = vld [vmem:[%s11836_s13 + $0xba8] sm:$0xff] }
 0x727   : > { %5639 = vmatpush1.msra.mxu0 %v6755_v10  ;;  %5710 = vmatpush1.msra.mxu1 %v6757_v11  ;;  %v6798_v10 = vld [vmem:[%s11836_s13 + $0xbb8] sm:$0xff]  ;;  %v6795_v11 = vld [vmem:[%s11836_s13 + $0xba0] sm:$0xff] }
 0x728   : > { %5640 = vmatprep.subr.mxu0 %v6752_v20  ;;  %5711 = vmatprep.subr.mxu1 %v6754_v18  ;;  %v6797_v20 = vld [vmem:[%s11836_s13 + $0xbb0] sm:$0xff]  ;;  %v6792_v18 = vld [vmem:[%s11836_s13 + $0xb88] sm:$0xff] }
 0x729   : > { %5641 = vmatpush1.msra.mxu0 %v6751_v26  ;;  %5712 = vmatpush1.msra.mxu1 %v6753_v30  ;;  %v6794_v26 = vld [vmem:[%s11836_s13 + $0xb98] sm:$0xff]  ;;  %v6791_v30 = vld [vmem:[%s11836_s13 + $0xb80] sm:$0xff] }
 0x72a   : > { %5642 = vmatprep.subr.mxu0 %v6748_v47  ;;  %5713 = vmatprep.subr.mxu1 %v6750_v33  ;;  %v6793_v47 = vld [vmem:[%s11836_s13 + $0xb90] sm:$0xff]  ;;  %v6788_v33 = vld [vmem:[%s11836_s13 + $0xb68] sm:$0xff] }
 0x72b   : > { %5643 = vmatpush1.msra.mxu0 %v6747_v44  ;;  %5714 = vmatpush1.msra.mxu1 %v6749_v25  ;;  %v6790_v44 = vld [vmem:[%s11836_s13 + $0xb78] sm:$0xff]  ;;  %v6787_v25 = vld [vmem:[%s11836_s13 + $0xb60] sm:$0xff] }
 0x72c   : > { %5644 = vmatprep.subr.mxu0 %v6744_v27  ;;  %5715 = vmatprep.subr.mxu1 %v6746_v45  ;;  %v6789_v27 = vld [vmem:[%s11836_s13 + $0xb70] sm:$0xff]  ;;  %v5616_v45 = vrot.slane %v11497_v53, %v11863_v24 }
 0x72d   : > { %5645 = vmatpush1.msra.mxu0 %v6743_v46  ;;  %5716 = vmatpush1.msra.mxu1 %v6745_v22 }
 0x72e   : > { %5646 = vmatprep.subr.mxu0 %v6740_v35  ;;  %5717 = vmatprep.subr.mxu1 %v6742_v36 }
 0x72f   : > { %5647 = vmatpush1.msra.mxu0 %v6739_v37  ;;  %5718 = vmatpush1.msra.mxu1 %v6741_v38 }
 0x730   : > { %5648 = vmatprep.subr.mxu0 %v6736_v48  ;;  %5719 = vmatprep.subr.mxu1 %v6738_v31 }
 0x731   : > { %5649 = vmatpush1.msra.mxu0 %v6735_v49  ;;  %5720 = vmatpush1.msra.mxu1 %v6737_v39 }
 0x732   : > { %5650 = vmatprep.subr.mxu0 %v6732_v40  ;;  %5721 = vmatprep.subr.mxu1 %v6734_v51  ;;  %v5770_v40 = vld [vmem:[%s11837_s14] sm:$0xf] }
 0x733   : > { %5651 = vmatpush1.msra.mxu0 %v6731_v41  ;;  %5722 = vmatpush1.msra.mxu1 %v6733_v52 }
 0x734   : > { %5652 = vmatprep.subr.mxu0 %v6728_v42  ;;  %5723 = vmatprep.subr.mxu1 %v6730_v19  ;;  %v5775_v42 = vrot.slane %v5770_v40, %v11863_v24  ;;  %v5783_v19 = vrot.slane %v5770_v40, %v11864_v5 }
 0x735   : > { %5653 = vmatpush1.msra.mxu0 %v6727_v43  ;;  %5724 = vmatpush1.msra.mxu1 %v6729_v32  ;;  %v6847_v43 = vmov 1966171168  }
 0x736   : > { %5654 = vmatprep.subr.mxu0 %v6724_v54  ;;  %5725 = vmatprep.subr.mxu1 %v6726_v55  ;;  %v5807_v32 = vunpack.c.l.s4 %v6847_v43 }
 0x737   : > { %5655 = vmatpush1.msra.mxu0 %v6723_v63  ;;  %5726 = vmatpush1.msra.mxu1 %v6725_v50 }
 0x738   : > { %5670 = vmatprep.subr.mxu0 %v6820_v56  ;;  %5741 = vmatprep.subr.mxu1 %v6822_v57  ;;  %v5808_v24 = vunpack.c.0.s8 %v5807_v32 }
 0x739   : > { %5671 = vmatpush2.msra.mxu0 %v6819_v58  ;;  %5742 = vmatpush2.msra.mxu1 %v6821_v29  ;;  %v5779_v58 = vrot.slane %v5770_v40, %v7310_v23  ;;  %v5787_v29 = vrot.slane %v5770_v40, %v11865_v34 }
 0x73a   : > { %5672 = vmatprep.subr.mxu0 %v6816_v59  ;;  %5743 = vmatprep.subr.mxu1 %v6818_v1 }
 0x73b   : > { %5673 = vmatpush2.msra.mxu0 %v6815_v61  ;;  %5744 = vmatpush2.msra.mxu1 %v6817_v28 }
 0x73c   : > { %5674 = vmatprep.subr.mxu0 %v6812_v62  ;;  %5745 = vmatprep.subr.mxu1 %v6814_v0 }
 0x73d   : > { %5675 = vmatpush2.msra.mxu0 %v6811_v2  ;;  %5746 = vmatpush2.msra.mxu1 %v6813_v6 }
 0x73e   : > { %5676 = vmatprep.subr.mxu0 %v6808_v3  ;;  %5747 = vmatprep.subr.mxu1 %v6810_v60 }
 0x73f   : > { %5677 = vmatpush2.msra.mxu0 %v6807_v21  ;;  %5748 = vmatpush2.msra.mxu1 %v6809_v7  ;;  %v11866_v7 = vld [vmem:[#allocation7_spill] sm:$0xff] }
 0x740   : > { %5678 = vmatprep.subr.mxu0 %v6804_v4  ;;  %5749 = vmatprep.subr.mxu1 %v6806_v15  ;;  %v5811_v4 = vsub.s32 %v5808_v24, %v11866_v7 }
 0x741   : > { %5679 = vmatpush2.msra.mxu0 %v6803_v9  ;;  %5750 = vmatpush2.msra.mxu1 %v6805_v16 }
 0x742   : > { %5680 = vmatprep.subr.mxu0 %v6800_v14  ;;  %5751 = vmatprep.subr.mxu1 %v6802_v13 }
 0x743   : > { %5681 = vmatpush2.msra.mxu0 %v6799_v8  ;;  %5752 = vmatpush2.msra.mxu1 %v6801_v12 }
 0x744   : > { %5682 = vmatprep.subr.mxu0 %v6796_v17  ;;  %5753 = vmatprep.subr.mxu1 %v6798_v10  ;;  %v11867_v17 = vlaneseq }
 0x745   : > { %5683 = vmatpush2.msra.mxu0 %v6795_v11  ;;  %5754 = vmatpush2.msra.mxu1 %v6797_v20 }
 0x746   : > { %5684 = vmatprep.subr.mxu0 %v6792_v18  ;;  %5755 = vmatprep.subr.mxu1 %v6794_v26  ;;  %vm5831_vm14 = vcmp.lt.s32.totalorder %v11867_v17, 512 }
 0x747   : > { %5685 = vmatpush2.msra.mxu0 %v6791_v30  ;;  %5756 = vmatpush2.msra.mxu1 %v6793_v47 }
 0x748   : > { %5686 = vmatprep.subr.mxu0 %v6788_v33  ;;  %5757 = vmatprep.subr.mxu1 %v6790_v44 }
 0x749   : > { %5687 = vmatpush2.msra.mxu0 %v6787_v25  ;;  %5758 = vmatpush2.msra.mxu1 %v6789_v27 }
 0x74a   : > { %5689 = vmatmul.mubr.f32.vlgmr.msra.gmra.mxu0 %v5616_v45  ;;  %5760 = vmatmul.mubr.f32.vlgmr.msra.gmra.mxu1 %v5616_v45 }
 0x76f   : > { %v5018_v46 = vpop.f32.mrf.mxu0  ;;  %v5089_v22 = vpop.f32.mrf.mxu1 }
 0x771   : > { %v5020_v35 = vpop.f32.mrf.mxu0  ;;  %v5091_v36 = vpop.f32.mrf.mxu1 }
 0x7a2   : > { %v5172_v37 = vpop.f32.mrf.mxu0  ;;  %v5243_v38 = vpop.f32.mrf.mxu1 }
 0x7a3   : > { %v5173_v51 = vadd.f32 %v5172_v37, %v5018_v46  ;;  %v5244_v53 = vadd.f32 %v5243_v38, %v5089_v22 }
 0x7a4   : > { %v5174_v48 = vpop.f32.mrf.mxu0  ;;  %v5245_v31 = vpop.f32.mrf.mxu1 }
 0x7a5   : > { %v5175_v54 = vadd.f32 %v5174_v48, %v5020_v35  ;;  %v5246_v55 = vadd.f32 %v5245_v31, %v5091_v36 }
 0x7d6   : > { %v5429_v49 = vpop.f32.mrf.mxu0  ;;  %v5500_v39 = vpop.f32.mrf.mxu1 }
 0x7d7   : > { %v5505_v63 = vadd.f32 %v5429_v49, %v5173_v51  ;;  %v5507_v50 = vadd.f32 %v5500_v39, %v5244_v53 }
 0x7d8   : > { %v5431_v41 = vpop.f32.mrf.mxu0  ;;  %v5502_v52 = vpop.f32.mrf.mxu1 }
 0x7d9   : > { %v5506_v59 = vadd.f32 %v5431_v41, %v5175_v54  ;;  %v5508_v1 = vadd.f32 %v5502_v52, %v5246_v55 }
 0x80a   : > { %v5690_v56 = vpop.f32.mrf.mxu0  ;;  %v5761_v57 = vpop.f32.mrf.mxu1 }
 0x80b   : > { %v5766_v61 = vadd.f32 %v5690_v56, %v5505_v63  ;;  %v5768_v28 = vadd.f32 %v5761_v57, %v5507_v50 }
 0x80c   : > { %v5692_v62 = vpop.f32.mrf.mxu0  ;;  %v5763_v5 = vpop.f32.mrf.mxu1 }
 0x80d   : > { %v5792_v0 = vadd.f32 %v5775_v42, %v5766_v61  ;;  %v5794_v2 = vadd.f32 %v5783_v19, %v5768_v28  ;;  %v5767_v6 = vadd.f32 %v5692_v62, %v5506_v59  ;;  %v5769_v3 = vadd.f32 %v5763_v5, %v5508_v1 }
 0x80f   : > { %v5793_v60 = vadd.f32 %v5779_v58, %v5767_v6  ;;  %v5795_v21 = vadd.f32 %v5787_v29, %v5769_v3  ;;  %v5796_v15 = vmax.f32 %v5792_v0, 0.0  ;;  %v5798_v23 = vmax.f32 %v5794_v2, 0.0 }
 0x811   : > { %v5797_v9 = vmax.f32 %v5793_v60, 0.0  ;;  %v5799_v34 = vmax.f32 %v5795_v21, 0.0 }
 0x813   : > { %v5804_v16 = vcombine.low %v5796_v15, %v5797_v9  ;;  %v5805_v14 = vcombine.low %v5798_v23, %v5799_v34 }
 0x815   : > { %v5812_v13 = vrot.slane %v5804_v16, %v5811_v4  ;;  %v5819_v8 = vrot.slane %v5805_v14, %v5811_v4 }
 0x817   : > { %v5820_v12 = vcombine.low %v5812_v13, %v5819_v8 }
 0x819   : > { %v5827_v10 = vrot.slane %v5820_v12, %v5811_v4 }
 0x81b   : > { %5833 = vst.msk [vmem:[%s492_s26] sm:$0xf] %vm5831_vm14, %v5827_v10 }
 0x81c PF: > { %s25_s18 = sadd.s32 1, %s6844_s18  }
 0x81d   : > { %p22_p4 = scmp.ge.s32.totalorder %s25_s18, 4  }
 0x81f   :  { %24 = sbr.rel (!%p22_p4) target bundleno = 1 (0x1), region = 124 }

</bundles_post_ra>
